<compile_context>
chip_gen: v6e
topology: v6e:2x2x1
jax: 0.10.0
libtpu: 0.0.40
codegen_flags: <defaults>
</compile_context>

<pallas_src>
import functools

import jax
import jax.numpy as jnp
from jax.experimental import pallas as pl
from jax.experimental.pallas import tpu as pltpu


TM = 512   # rows (N*OH*OW axis) per tile
TN = 128   # output channels per tile (lane axis)

_VMEM_LIMIT = 64 * 1024 * 1024


def _round_up(v, m):
    return (v + m - 1) // m * m


def _pick_tk(K):
    for tk in (512, 256, 128):
        if K % tk == 0:
            return tk
    return K   # full-K block (legal: equals the array dim)


# ---------------------------------------------------------------------------
# Fused conv matmul kernels
# ---------------------------------------------------------------------------
def _mm_stats_kernel(a_ref, b_ref, o_ref, st_ref, acc_ref):
    """(TM, tk) @ (tk, TN) accumulated over the K grid axis; at the last K step
    the raw conv output is stored and per-tile partial BN stats are emitted."""
    kk = pl.program_id(2)

    @pl.when(kk == 0)
    def _():
        acc_ref[...] = jnp.zeros_like(acc_ref)

    acc_ref[...] += jnp.dot(a_ref[...], b_ref[...],
                            preferred_element_type=jnp.float32)

    @pl.when(kk == pl.num_programs(2) - 1)
    def _():
        acc = acc_ref[...]
        o_ref[...] = acc
        s = jnp.sum(acc, axis=0, keepdims=True)            # (1, TN)
        sq = jnp.sum(acc * acc, axis=0, keepdims=True)     # (1, TN)
        st_ref[...] = jnp.concatenate([s, sq], axis=0)[None, :, :]


def _mm_tanh_kernel(a_ref, b_ref, o_ref, acc_ref):
    """Same matmul, tanh fused into the output write (final generator layer)."""
    kk = pl.program_id(2)

    @pl.when(kk == 0)
    def _():
        acc_ref[...] = jnp.zeros_like(acc_ref)

    acc_ref[...] += jnp.dot(a_ref[...], b_ref[...],
                            preferred_element_type=jnp.float32)

    @pl.when(kk == pl.num_programs(2) - 1)
    def _():
        o_ref[...] = jnp.tanh(acc_ref[...])


def fused_conv_matmul(patches, weq_padded, *, want_stats):
    """patches: (M, K) f32.  weq_padded: (K, Cp) f32 with Cp % 128 == 0.

    Returns (out (Mp, Cp) f32, stats (Mp//TM, 2, Cp) f32 or None), Mp = ceil(M/TM)*TM.
    Zero-padded tail rows of `patches` contribute exactly 0 to the stats."""
    M, K = patches.shape
    Kb, Cp = weq_padded.shape
    assert K == Kb and Cp % TN == 0
    Mp = _round_up(M, TM)
    if Mp != M:
        patches = jnp.pad(patches, ((0, Mp - M), (0, 0)))

    a = patches.astype(jnp.bfloat16)          # bf16 MXU inputs, f32 accumulation
    b = weq_padded.astype(jnp.bfloat16)

    tk = _pick_tk(K)
    grid = (Mp // TM, Cp // TN, K // tk)      # reduction axis last
    in_specs = [pl.BlockSpec((TM, tk), lambda i, j, k: (i, k)),
                pl.BlockSpec((tk, TN), lambda i, j, k: (k, j))]
    cparams = pltpu.CompilerParams(
        dimension_semantics=("parallel", "parallel", "arbitrary"),
        vmem_limit_bytes=_VMEM_LIMIT)

    if want_stats:
        out, stats = pl.pallas_call(
            _mm_stats_kernel,
            out_shape=(jax.ShapeDtypeStruct((Mp, Cp), jnp.float32),
                       jax.ShapeDtypeStruct((Mp // TM, 2, Cp), jnp.float32)),
            grid_spec=pltpu.PrefetchScalarGridSpec(
                num_scalar_prefetch=0, grid=grid,
                in_specs=in_specs,
                out_specs=(pl.BlockSpec((TM, TN), lambda i, j, k: (i, j)),
                           pl.BlockSpec((1, 2, TN), lambda i, j, k: (i, 0, j))),
                scratch_shapes=[pltpu.VMEM((TM, TN), jnp.float32)]),
            compiler_params=cparams,
        )(a, b)
        return out, stats

    out = pl.pallas_call(
        _mm_tanh_kernel,
        out_shape=jax.ShapeDtypeStruct((Mp, Cp), jnp.float32),
        grid_spec=pltpu.PrefetchScalarGridSpec(
            num_scalar_prefetch=0, grid=grid,
            in_specs=in_specs,
            out_specs=pl.BlockSpec((TM, TN), lambda i, j, k: (i, j)),
            scratch_shapes=[pltpu.VMEM((TM, TN), jnp.float32)]),
        compiler_params=cparams,
    )(a, b)
    return out, None


# ---------------------------------------------------------------------------
# BatchNorm affine + ReLU (lane-dense, f32)
# ---------------------------------------------------------------------------
def _affine_relu_kernel(x_ref, s_ref, b_ref, o_ref):
    o_ref[...] = jnp.maximum(x_ref[...] * s_ref[...] + b_ref[...], 0.0)


def pallas_affine_relu(x, scale, shift):
    """x: (M, C) f32 with M % TM == 0 and C % 128 == 0; scale/shift: (1, C)."""
    M, C = x.shape
    return pl.pallas_call(
        _affine_relu_kernel,
        out_shape=jax.ShapeDtypeStruct((M, C), jnp.float32),
        grid_spec=pltpu.PrefetchScalarGridSpec(
            num_scalar_prefetch=0, grid=(M // TM,),
            in_specs=[pl.BlockSpec((TM, C), lambda i: (i, 0)),
                      # constant block index -> Pallas does not re-DMA per step
                      pl.BlockSpec((1, C), lambda i: (0, 0)),
                      pl.BlockSpec((1, C), lambda i: (0, 0))],
            out_specs=pl.BlockSpec((TM, C), lambda i: (i, 0))),
        compiler_params=pltpu.CompilerParams(
            dimension_semantics=("parallel",),
            vmem_limit_bytes=_VMEM_LIMIT),
    )(x, scale, shift)


# ---------------------------------------------------------------------------
# ConvTranspose2d lowering (JAX glue -> matmul pieces)
# ---------------------------------------------------------------------------
def _conv_pieces(x, w, stride, pad):
    """Lower ConvTranspose2d(x, w) to matmul pieces.

    Each piece is (patches (Mi, Ki) f32, weq (Ki, Co) f32, place) where
    place is None (full output) or the output parity (py, px) for the
    sub-pixel decomposition.  Also returns (N, OH, OW)."""
    N, H, W, Ci = x.shape
    _, Co, k, _ = w.shape
    OH = (H - 1) * stride - 2 * pad + k
    OW = (W - 1) * stride - 2 * pad + k

    if stride == 2 and k - 2 * pad == 2:
        # Sub-pixel decomposition: output position (2m+py, 2q+px) only touches
        # kernel taps kh ≡ (py+pad) mod 2 (and similarly kw), at input row
        # iy = m + (py+pad-kh)/2.  -> 4 small convs, no inserted zeros.
        taps, dys = {}, []
        for q in (0, 1):
            tq = []
            for kk in range(k):
                if (kk - q - pad) % 2 == 0:
                    d = (q + pad - kk) // 2
                    tq.append((d, kk))
                    dys.append(d)
            taps[q] = tq
        lo, hi = max(0, -min(dys)), max(0, max(dys))
        xp = jnp.pad(x, ((0, 0), (lo, hi), (lo, hi), (0, 0)))
        pieces = []
        for py in (0, 1):
            for px in (0, 1):
                cols, wrows = [], []
                for dy, kh in taps[py]:
                    for dx, kw in taps[px]:
                        cols.append(
                            xp[:, dy + lo:dy + lo + H, dx + lo:dx + lo + W, :])
                        wrows.append(w[:, :, kh, kw])          # (Ci, Co)
                patches = jnp.concatenate(cols, axis=-1).reshape(N * H * W, -1)
                weq = jnp.concatenate(wrows, axis=0)           # (T*Ci, Co)
                pieces.append((patches, weq, (py, px)))
        return pieces, (N, OH, OW)

    # Generic path (stride-1 first layer): dilate + pad + flipped-kernel im2col.
    Hd, Wd = (H - 1) * stride + 1, (W - 1) * stride + 1
    xd = jnp.zeros((N, Hd, Wd, Ci), x.dtype).at[:, ::stride, ::stride, :].set(x)
    pb = k - 1 - pad
    xpd = jnp.pad(xd, ((0, 0), (pb, pb), (pb, pb), (0, 0)))
    cols = [xpd[:, kh:kh + OH, kw:kw + OW, :]
            for kh in range(k) for kw in range(k)]
    patches = jnp.concatenate(cols, axis=-1).reshape(N * OH * OW, k * k * Ci)
    weq = jnp.transpose(w[:, :, ::-1, ::-1], (2, 3, 0, 1)).reshape(k * k * Ci, Co)
    return [(patches, weq, None)], (N, OH, OW)


def conv_transpose_layer(x, lyr, stride, pad, has_bn, eps):
    """One Generator block: ConvTranspose2d (+ BN + ReLU, or + Tanh)."""
    w = lyr["w"]
    Co = w.shape[1]
    Cp = _round_up(Co, TN)                         # lane-dense channel padding

    pieces, (N, OH, OW) = _conv_pieces(x, w, stride, pad)

    results = []
    for patches, weq, place in pieces:
        wpad = jnp.pad(weq, ((0, 0), (0, Cp - Co)))
        out, stats = fused_conv_matmul(patches, wpad, want_stats=has_bn)
        results.append((out, stats, patches.shape[0], place))

    if has_bn:
        # Finish BatchNorm2d (training-mode biased batch stats) from the fused
        # per-tile partial sums; zero-padded rows/channels contribute 0.
        tot = sum(r[1][:, 0, :].sum(axis=0) for r in results)
        tot2 = sum(r[1][:, 1, :].sum(axis=0) for r in results)
        cnt = float(N * OH * OW)
        mean = tot / cnt
        var = jnp.maximum(tot2 / cnt - mean * mean, 0.0)   # clamp: no negative var
        gamma = jnp.pad(lyr["gamma"], (0, Cp - Co))
        beta = jnp.pad(lyr["beta"], (0, Cp - Co))
        scale_v = gamma * jax.lax.rsqrt(var + eps)
        shift_v = beta - mean * scale_v
        results = [(pallas_affine_relu(out, scale_v[None, :], shift_v[None, :]),
                    None, m, place)
                   for out, _, m, place in results]

    # Assemble the NHWC activation (slice away row / channel padding).
    if results[0][3] is None:
        out, _, m, _ = results[0]
        return out[:m, :Co].reshape(N, OH, OW, Co)

    sub = {place: out[:m, :Co].reshape(N, OH // 2, OW // 2, Co)
           for out, _, m, place in results}
    y = jnp.stack([jnp.stack([sub[(0, 0)], sub[(0, 1)]], axis=3),
                   jnp.stack([sub[(1, 0)], sub[(1, 1)]], axis=3)], axis=2)
    return y.reshape(N, OH, OW, Co)


# ---------------------------------------------------------------------------
# Generator
# ---------------------------------------------------------------------------
def init_generator_params(key, latent_dim, img_channels, feature_maps):
    fm = feature_maps
    cfgs = [
        # (Ci,        Co,            k, s, p, has_bn)
        (latent_dim, fm * 8,         4, 1, 0, True),
        (fm * 8,     fm * 4,         4, 2, 1, True),
        (fm * 4,     fm * 2,         4, 2, 1, True),
        (fm * 2,     fm,             4, 2, 1, True),
        (fm,         img_channels,   4, 2, 1, False),
    ]
    params, static_cfg = [], []
    for ci, co, k, s, p, bn in cfgs:
        key, wk = jax.random.split(key)
        w = jax.random.normal(wk, (ci, co, k, k), jnp.float32) * 0.05
        lyr = {"w": w}
        if bn:
            # PyTorch BatchNorm2d default init: weight=1, bias=0
            lyr["gamma"] = jnp.ones((co,), jnp.float32)
            lyr["beta"] = jnp.zeros((co,), jnp.float32)
        params.append(lyr)
        static_cfg.append((s, p, bn))
    return params, tuple(static_cfg)


@functools.partial(jax.jit, static_argnames=("cfg",))
def generator_forward(x_nchw, params, cfg, eps=1e-5):
    # NCHW (PyTorch) -> NHWC internal layout
    x = jnp.transpose(x_nchw, (0, 2, 3, 1)).astype(jnp.float32)
    for lyr, (stride, pad, has_bn) in zip(params, cfg):
        x = conv_transpose_layer(x, lyr, stride, pad, has_bn, eps)
    # NHWC -> NCHW output convention
    return jnp.transpose(x, (0, 3, 1, 2))


if __name__ == "__main__":
    # Small config consistent with the module: (B, latent, 1, 1) -> (B, 3, 64, 64)
    latent_dim, img_channels, feature_maps, batch = 16, 3, 8, 2

    key = jax.random.PRNGKey(0)
    key, zkey = jax.random.split(key)
    z = jax.random.normal(zkey, (batch, latent_dim, 1, 1), jnp.float32)

    params, cfg = init_generator_params(key, latent_dim, img_channels, feature_maps)

    img = generator_forward(z, params, cfg)
    img = jax.block_until_ready(img)

    assert img.shape == (batch, img_channels, 64, 64), img.shape
    assert bool(jnp.all(jnp.isfinite(img)))
    assert bool(jnp.all(jnp.abs(img) <= 1.0 + 1e-6))   # tanh output range

    print("KERNEL_OK")
</pallas_src>

<mosaic_0001>
module attributes {stable_mosaic.version = 11 : i64} {
  func.func @_affine_relu_kernel(%arg0: i32, %arg1: memref<512x128xf32, #tpu.memory_space<vmem>>, %arg2: memref<1x128xf32, #tpu.memory_space<vmem>>, %arg3: memref<1x128xf32, #tpu.memory_space<vmem>>, %arg4: memref<512x128xf32, #tpu.memory_space<vmem>>) attributes {dimension_semantics = [#tpu.dimension_semantics<parallel>], iteration_bounds = array<i64: 1>, scalar_prefetch = 0 : i64, scratch_operands = 0 : i64, tpu.core_type = #tpu.core_type<tc>, window_params = [{transform_indices = @transform_0, window_bounds = array<i64: 512, 128>}, {pipeline_mode = #tpu.pipeline_mode<synchronous>, transform_indices = @transform_1, window_bounds = array<i64: 1, 128>}, {pipeline_mode = #tpu.pipeline_mode<synchronous>, transform_indices = @transform_2, window_bounds = array<i64: 1, 128>}, {transform_indices = @transform_3, window_bounds = array<i64: 512, 128>}]} {
    %c0 = arith.constant 0 : index
    %c0_0 = arith.constant 0 : index
    %0 = vector.load %arg1[%c0, %c0_0] : memref<512x128xf32, #tpu.memory_space<vmem>>, vector<512x128xf32>
    %c0_1 = arith.constant 0 : index
    %c0_2 = arith.constant 0 : index
    %1 = vector.load %arg2[%c0_1, %c0_2] : memref<1x128xf32, #tpu.memory_space<vmem>>, vector<1x128xf32>
    %2 = vector.broadcast %1 : vector<1x128xf32> to vector<512x128xf32>
    %3 = arith.mulf %0, %2 : vector<512x128xf32>
    %c0_3 = arith.constant 0 : index
    %c0_4 = arith.constant 0 : index
    %4 = vector.load %arg3[%c0_3, %c0_4] : memref<1x128xf32, #tpu.memory_space<vmem>>, vector<1x128xf32>
    %5 = vector.broadcast %4 : vector<1x128xf32> to vector<512x128xf32>
    %6 = arith.addf %3, %5 : vector<512x128xf32>
    %cst = arith.constant 0.000000e+00 : f32
    %7 = vector.broadcast %cst : f32 to vector<512x128xf32>
    %8 = arith.maximumf %6, %7 : vector<512x128xf32>
    %c0_5 = arith.constant 0 : index
    %c0_6 = arith.constant 0 : index
    %9 = vector.load %arg4[%c0_5, %c0_6] : memref<512x128xf32, #tpu.memory_space<vmem>>, vector<512x128xf32>
    tpu.vector_store %arg4[%c0_5, %c0_6], %8 {strides = array<i32>} : memref<512x128xf32, #tpu.memory_space<vmem>>, vector<512x128xf32>,
    return
  }
  func.func @transform_0(%arg0: i32) -> (i32, i32) {
    %c0_i32 = arith.constant 0 : i32
    %c0_i32_0 = arith.constant 0 : i32
    return %arg0, %c0_i32 : i32, i32
  }
  func.func @transform_1(%arg0: i32) -> (i32, i32) {
    %c0_i32 = arith.constant 0 : i32
    %c0_i32_0 = arith.constant 0 : i32
    %c0_i32_1 = arith.constant 0 : i32
    return %c0_i32, %c0_i32_0 : i32, i32
  }
  func.func @transform_2(%arg0: i32) -> (i32, i32) {
    %c0_i32 = arith.constant 0 : i32
    %c0_i32_0 = arith.constant 0 : i32
    %c0_i32_1 = arith.constant 0 : i32
    return %c0_i32, %c0_i32_0 : i32, i32
  }
  func.func @transform_3(%arg0: i32) -> (i32, i32) {
    %c0_i32 = arith.constant 0 : i32
    %c0_i32_0 = arith.constant 0 : i32
    return %arg0, %c0_i32 : i32, i32
  }
}

module attributes {stable_mosaic.version = 11 : i64} {
  func.func @_mm_stats_kernel(%arg0: i32, %arg1: i32, %arg2: i32, %arg3: memref<512x256xbf16, #tpu.memory_space<vmem>>, %arg4: memref<256x128xbf16, #tpu.memory_space<vmem>>, %arg5: memref<512x128xf32, #tpu.memory_space<vmem>>, %arg6: memref<1x2x128xf32, #tpu.memory_space<vmem>>, %arg7: memref<512x128xf32, #tpu.memory_space<vmem>>) attributes {dimension_semantics = [#tpu.dimension_semantics<parallel>, #tpu.dimension_semantics<parallel>, #tpu.dimension_semantics<arbitrary>], iteration_bounds = array<i64: 1, 1, 1>, scalar_prefetch = 0 : i64, scratch_operands = 1 : i64, tpu.core_type = #tpu.core_type<tc>, window_params = [{transform_indices = @transform_0, window_bounds = array<i64: 512, 256>}, {transform_indices = @transform_1, window_bounds = array<i64: 256, 128>}, {transform_indices = @transform_2, window_bounds = array<i64: 512, 128>}, {transform_indices = @transform_3, window_bounds = array<i64: 1, 2, 128>}]} {
    %c0_i32 = arith.constant 0 : i32
    %0 = arith.cmpi eq, %arg2, %c0_i32 : i32
    %1 = arith.extui %0 : i1 to i32
    %c0_i32_0 = arith.constant 0 : i32
    %2 = arith.cmpi ne, %1, %c0_i32_0 : i32
    scf.if %2 {
      %cst_10 = arith.constant 0.000000e+00 : f32
      %12 = vector.broadcast %cst_10 : f32 to vector<512x128xf32>
      %c0_11 = arith.constant 0 : index
      %c0_12 = arith.constant 0 : index
      %13 = vector.load %arg7[%c0_11, %c0_12] : memref<512x128xf32, #tpu.memory_space<vmem>>, vector<512x128xf32>
      tpu.vector_store %arg7[%c0_11, %c0_12], %12 {strides = array<i32>} : memref<512x128xf32, #tpu.memory_space<vmem>>, vector<512x128xf32>,
    } else {
    }
    %c0 = arith.constant 0 : index
    %c0_1 = arith.constant 0 : index
    %3 = vector.load %arg7[%c0, %c0_1] : memref<512x128xf32, #tpu.memory_space<vmem>>, vector<512x128xf32>
    %c0_2 = arith.constant 0 : index
    %c0_3 = arith.constant 0 : index
    %4 = vector.load %arg3[%c0_2, %c0_3] : memref<512x256xbf16, #tpu.memory_space<vmem>>, vector<512x256xbf16>
    %c0_4 = arith.constant 0 : index
    %c0_5 = arith.constant 0 : index
    %5 = vector.load %arg4[%c0_4, %c0_5] : memref<256x128xbf16, #tpu.memory_space<vmem>>, vector<256x128xbf16>
    %cst = arith.constant dense<0.000000e+00> : vector<512x128xf32>
    %6 = tpu.matmul %4, %5, %cst {dimension_numbers = #tpu.dot_dimension_numbers<[1], [0], [0], [1], [0, 0, 1, 1], [], []>} : vector<512x256xbf16>, vector<256x128xbf16>, vector<512x128xf32> -> vector<512x128xf32>
    %7 = arith.addf %3, %6 : vector<512x128xf32>
    %c0_6 = arith.constant 0 : index
    %c0_7 = arith.constant 0 : index
    %8 = vector.load %arg7[%c0_6, %c0_7] : memref<512x128xf32, #tpu.memory_space<vmem>>, vector<512x128xf32>
    tpu.vector_store %arg7[%c0_6, %c0_7], %7 {strides = array<i32>} : memref<512x128xf32, #tpu.memory_space<vmem>>, vector<512x128xf32>,
    %c0_i32_8 = arith.constant 0 : i32
    %9 = arith.cmpi eq, %arg2, %c0_i32_8 : i32
    %10 = arith.extui %9 : i1 to i32
    %c0_i32_9 = arith.constant 0 : i32
    %11 = arith.cmpi ne, %10, %c0_i32_9 : i32
    scf.if %11 {
      %c0_10 = arith.constant 0 : index
      %c0_11 = arith.constant 0 : index
      %12 = vector.load %arg7[%c0_10, %c0_11] : memref<512x128xf32, #tpu.memory_space<vmem>>, vector<512x128xf32>
      %c0_12 = arith.constant 0 : index
      %c0_13 = arith.constant 0 : index
      %13 = vector.load %arg5[%c0_12, %c0_13] : memref<512x128xf32, #tpu.memory_space<vmem>>, vector<512x128xf32>
      tpu.vector_store %arg5[%c0_12, %c0_13], %12 {strides = array<i32>} : memref<512x128xf32, #tpu.memory_space<vmem>>, vector<512x128xf32>,
      %cst_14 = arith.constant dense<0.000000e+00> : vector<128xf32>
      %14 = vector.multi_reduction <add>, %12, %cst_14 [0] : vector<512x128xf32> to vector<128xf32>
      %15 = vector.shape_cast %14 : vector<128xf32> to vector<1x128xf32>
      %16 = arith.mulf %12, %12 : vector<512x128xf32>
      %cst_15 = arith.constant dense<0.000000e+00> : vector<128xf32>
      %17 = vector.multi_reduction <add>, %16, %cst_15 [0] : vector<512x128xf32> to vector<128xf32>
      %18 = vector.shape_cast %17 : vector<128xf32> to vector<1x128xf32>
      %19 = tpu.concatenate %15, %18 in 0 : vector<1x128xf32>, vector<1x128xf32> -> vector<2x128xf32>
      %20 = vector.shape_cast %19 : vector<2x128xf32> to vector<1x2x128xf32>
      %c0_16 = arith.constant 0 : index
      %c0_17 = arith.constant 0 : index
      %c0_18 = arith.constant 0 : index
      %21 = vector.load %arg6[%c0_16, %c0_17, %c0_18] : memref<1x2x128xf32, #tpu.memory_space<vmem>>, vector<1x2x128xf32>
      tpu.vector_store %arg6[%c0_16, %c0_17, %c0_18], %20 {strides = array<i32>} : memref<1x2x128xf32, #tpu.memory_space<vmem>>, vector<1x2x128xf32>,
    } else {
    }
    return
  }
  func.func @transform_0(%arg0: i32, %arg1: i32, %arg2: i32) -> (i32, i32) {
    %c0_i32 = arith.constant 0 : i32
    return %arg0, %arg2 : i32, i32
  }
  func.func @transform_1(%arg0: i32, %arg1: i32, %arg2: i32) -> (i32, i32) {
    %c0_i32 = arith.constant 0 : i32
    return %arg2, %arg1 : i32, i32
  }
  func.func @transform_2(%arg0: i32, %arg1: i32, %arg2: i32) -> (i32, i32) {
    %c0_i32 = arith.constant 0 : i32
    return %arg0, %arg1 : i32, i32
  }
  func.func @transform_3(%arg0: i32, %arg1: i32, %arg2: i32) -> (i32, i32, i32) {
    %c0_i32 = arith.constant 0 : i32
    %c0_i32_0 = arith.constant 0 : i32
    return %arg0, %c0_i32, %arg1 : i32, i32, i32
  }
}

module attributes {stable_mosaic.version = 11 : i64} {
  func.func @_mm_stats_kernel(%arg0: i32, %arg1: i32, %arg2: i32, %arg3: memref<512x128xbf16, #tpu.memory_space<vmem>>, %arg4: memref<128x128xbf16, #tpu.memory_space<vmem>>, %arg5: memref<512x128xf32, #tpu.memory_space<vmem>>, %arg6: memref<1x2x128xf32, #tpu.memory_space<vmem>>, %arg7: memref<512x128xf32, #tpu.memory_space<vmem>>) attributes {dimension_semantics = [#tpu.dimension_semantics<parallel>, #tpu.dimension_semantics<parallel>, #tpu.dimension_semantics<arbitrary>], iteration_bounds = array<i64: 1, 1, 1>, scalar_prefetch = 0 : i64, scratch_operands = 1 : i64, tpu.core_type = #tpu.core_type<tc>, window_params = [{transform_indices = @transform_0, window_bounds = array<i64: 512, 128>}, {transform_indices = @transform_1, window_bounds = array<i64: 128, 128>}, {transform_indices = @transform_2, window_bounds = array<i64: 512, 128>}, {transform_indices = @transform_3, window_bounds = array<i64: 1, 2, 128>}]} {
    %c0_i32 = arith.constant 0 : i32
    %0 = arith.cmpi eq, %arg2, %c0_i32 : i32
    %1 = arith.extui %0 : i1 to i32
    %c0_i32_0 = arith.constant 0 : i32
    %2 = arith.cmpi ne, %1, %c0_i32_0 : i32
    scf.if %2 {
      %cst_10 = arith.constant 0.000000e+00 : f32
      %12 = vector.broadcast %cst_10 : f32 to vector<512x128xf32>
      %c0_11 = arith.constant 0 : index
      %c0_12 = arith.constant 0 : index
      %13 = vector.load %arg7[%c0_11, %c0_12] : memref<512x128xf32, #tpu.memory_space<vmem>>, vector<512x128xf32>
      tpu.vector_store %arg7[%c0_11, %c0_12], %12 {strides = array<i32>} : memref<512x128xf32, #tpu.memory_space<vmem>>, vector<512x128xf32>,
    } else {
    }
    %c0 = arith.constant 0 : index
    %c0_1 = arith.constant 0 : index
    %3 = vector.load %arg7[%c0, %c0_1] : memref<512x128xf32, #tpu.memory_space<vmem>>, vector<512x128xf32>
    %c0_2 = arith.constant 0 : index
    %c0_3 = arith.constant 0 : index
    %4 = vector.load %arg3[%c0_2, %c0_3] : memref<512x128xbf16, #tpu.memory_space<vmem>>, vector<512x128xbf16>
    %c0_4 = arith.constant 0 : index
    %c0_5 = arith.constant 0 : index
    %5 = vector.load %arg4[%c0_4, %c0_5] : memref<128x128xbf16, #tpu.memory_space<vmem>>, vector<128x128xbf16>
    %cst = arith.constant dense<0.000000e+00> : vector<512x128xf32>
    %6 = tpu.matmul %4, %5, %cst {dimension_numbers = #tpu.dot_dimension_numbers<[1], [0], [0], [1], [0, 0, 1, 1], [], []>} : vector<512x128xbf16>, vector<128x128xbf16>, vector<512x128xf32> -> vector<512x128xf32>
    %7 = arith.addf %3, %6 : vector<512x128xf32>
    %c0_6 = arith.constant 0 : index
    %c0_7 = arith.constant 0 : index
    %8 = vector.load %arg7[%c0_6, %c0_7] : memref<512x128xf32, #tpu.memory_space<vmem>>, vector<512x128xf32>
    tpu.vector_store %arg7[%c0_6, %c0_7], %7 {strides = array<i32>} : memref<512x128xf32, #tpu.memory_space<vmem>>, vector<512x128xf32>,
    %c0_i32_8 = arith.constant 0 : i32
    %9 = arith.cmpi eq, %arg2, %c0_i32_8 : i32
    %10 = arith.extui %9 : i1 to i32
    %c0_i32_9 = arith.constant 0 : i32
    %11 = arith.cmpi ne, %10, %c0_i32_9 : i32
    scf.if %11 {
      %c0_10 = arith.constant 0 : index
      %c0_11 = arith.constant 0 : index
      %12 = vector.load %arg7[%c0_10, %c0_11] : memref<512x128xf32, #tpu.memory_space<vmem>>, vector<512x128xf32>
      %c0_12 = arith.constant 0 : index
      %c0_13 = arith.constant 0 : index
      %13 = vector.load %arg5[%c0_12, %c0_13] : memref<512x128xf32, #tpu.memory_space<vmem>>, vector<512x128xf32>
      tpu.vector_store %arg5[%c0_12, %c0_13], %12 {strides = array<i32>} : memref<512x128xf32, #tpu.memory_space<vmem>>, vector<512x128xf32>,
      %cst_14 = arith.constant dense<0.000000e+00> : vector<128xf32>
      %14 = vector.multi_reduction <add>, %12, %cst_14 [0] : vector<512x128xf32> to vector<128xf32>
      %15 = vector.shape_cast %14 : vector<128xf32> to vector<1x128xf32>
      %16 = arith.mulf %12, %12 : vector<512x128xf32>
      %cst_15 = arith.constant dense<0.000000e+00> : vector<128xf32>
      %17 = vector.multi_reduction <add>, %16, %cst_15 [0] : vector<512x128xf32> to vector<128xf32>
      %18 = vector.shape_cast %17 : vector<128xf32> to vector<1x128xf32>
      %19 = tpu.concatenate %15, %18 in 0 : vector<1x128xf32>, vector<1x128xf32> -> vector<2x128xf32>
      %20 = vector.shape_cast %19 : vector<2x128xf32> to vector<1x2x128xf32>
      %c0_16 = arith.constant 0 : index
      %c0_17 = arith.constant 0 : index
      %c0_18 = arith.constant 0 : index
      %21 = vector.load %arg6[%c0_16, %c0_17, %c0_18] : memref<1x2x128xf32, #tpu.memory_space<vmem>>, vector<1x2x128xf32>
      tpu.vector_store %arg6[%c0_16, %c0_17, %c0_18], %20 {strides = array<i32>} : memref<1x2x128xf32, #tpu.memory_space<vmem>>, vector<1x2x128xf32>,
    } else {
    }
    return
  }
  func.func @transform_0(%arg0: i32, %arg1: i32, %arg2: i32) -> (i32, i32) {
    %c0_i32 = arith.constant 0 : i32
    return %arg0, %arg2 : i32, i32
  }
  func.func @transform_1(%arg0: i32, %arg1: i32, %arg2: i32) -> (i32, i32) {
    %c0_i32 = arith.constant 0 : i32
    return %arg2, %arg1 : i32, i32
  }
  func.func @transform_2(%arg0: i32, %arg1: i32, %arg2: i32) -> (i32, i32) {
    %c0_i32 = arith.constant 0 : i32
    return %arg0, %arg1 : i32, i32
  }
  func.func @transform_3(%arg0: i32, %arg1: i32, %arg2: i32) -> (i32, i32, i32) {
    %c0_i32 = arith.constant 0 : i32
    %c0_i32_0 = arith.constant 0 : i32
    return %arg0, %c0_i32, %arg1 : i32, i32, i32
  }
}

module attributes {stable_mosaic.version = 11 : i64} {
  func.func @_mm_stats_kernel(%arg0: i32, %arg1: i32, %arg2: i32, %arg3: memref<512x64xbf16, #tpu.memory_space<vmem>>, %arg4: memref<64x128xbf16, #tpu.memory_space<vmem>>, %arg5: memref<512x128xf32, #tpu.memory_space<vmem>>, %arg6: memref<1x2x128xf32, #tpu.memory_space<vmem>>, %arg7: memref<512x128xf32, #tpu.memory_space<vmem>>) attributes {dimension_semantics = [#tpu.dimension_semantics<parallel>, #tpu.dimension_semantics<parallel>, #tpu.dimension_semantics<arbitrary>], iteration_bounds = array<i64: 1, 1, 1>, scalar_prefetch = 0 : i64, scratch_operands = 1 : i64, tpu.core_type = #tpu.core_type<tc>, window_params = [{transform_indices = @transform_0, window_bounds = array<i64: 512, 64>}, {transform_indices = @transform_1, window_bounds = array<i64: 64, 128>}, {transform_indices = @transform_2, window_bounds = array<i64: 512, 128>}, {transform_indices = @transform_3, window_bounds = array<i64: 1, 2, 128>}]} {
    %c0_i32 = arith.constant 0 : i32
    %0 = arith.cmpi eq, %arg2, %c0_i32 : i32
    %1 = arith.extui %0 : i1 to i32
    %c0_i32_0 = arith.constant 0 : i32
    %2 = arith.cmpi ne, %1, %c0_i32_0 : i32
    scf.if %2 {
      %cst_10 = arith.constant 0.000000e+00 : f32
      %12 = vector.broadcast %cst_10 : f32 to vector<512x128xf32>
      %c0_11 = arith.constant 0 : index
      %c0_12 = arith.constant 0 : index
      %13 = vector.load %arg7[%c0_11, %c0_12] : memref<512x128xf32, #tpu.memory_space<vmem>>, vector<512x128xf32>
      tpu.vector_store %arg7[%c0_11, %c0_12], %12 {strides = array<i32>} : memref<512x128xf32, #tpu.memory_space<vmem>>, vector<512x128xf32>,
    } else {
    }
    %c0 = arith.constant 0 : index
    %c0_1 = arith.constant 0 : index
    %3 = vector.load %arg7[%c0, %c0_1] : memref<512x128xf32, #tpu.memory_space<vmem>>, vector<512x128xf32>
    %c0_2 = arith.constant 0 : index
    %c0_3 = arith.constant 0 : index
    %4 = vector.load %arg3[%c0_2, %c0_3] : memref<512x64xbf16, #tpu.memory_space<vmem>>, vector<512x64xbf16>
    %c0_4 = arith.constant 0 : index
    %c0_5 = arith.constant 0 : index
    %5 = vector.load %arg4[%c0_4, %c0_5] : memref<64x128xbf16, #tpu.memory_space<vmem>>, vector<64x128xbf16>
    %cst = arith.constant dense<0.000000e+00> : vector<512x128xf32>
    %6 = tpu.matmul %4, %5, %cst {dimension_numbers = #tpu.dot_dimension_numbers<[1], [0], [0], [1], [0, 0, 1, 1], [], []>} : vector<512x64xbf16>, vector<64x128xbf16>, vector<512x128xf32> -> vector<512x128xf32>
    %7 = arith.addf %3, %6 : vector<512x128xf32>
    %c0_6 = arith.constant 0 : index
    %c0_7 = arith.constant 0 : index
    %8 = vector.load %arg7[%c0_6, %c0_7] : memref<512x128xf32, #tpu.memory_space<vmem>>, vector<512x128xf32>
    tpu.vector_store %arg7[%c0_6, %c0_7], %7 {strides = array<i32>} : memref<512x128xf32, #tpu.memory_space<vmem>>, vector<512x128xf32>,
    %c0_i32_8 = arith.constant 0 : i32
    %9 = arith.cmpi eq, %arg2, %c0_i32_8 : i32
    %10 = arith.extui %9 : i1 to i32
    %c0_i32_9 = arith.constant 0 : i32
    %11 = arith.cmpi ne, %10, %c0_i32_9 : i32
    scf.if %11 {
      %c0_10 = arith.constant 0 : index
      %c0_11 = arith.constant 0 : index
      %12 = vector.load %arg7[%c0_10, %c0_11] : memref<512x128xf32, #tpu.memory_space<vmem>>, vector<512x128xf32>
      %c0_12 = arith.constant 0 : index
      %c0_13 = arith.constant 0 : index
      %13 = vector.load %arg5[%c0_12, %c0_13] : memref<512x128xf32, #tpu.memory_space<vmem>>, vector<512x128xf32>
      tpu.vector_store %arg5[%c0_12, %c0_13], %12 {strides = array<i32>} : memref<512x128xf32, #tpu.memory_space<vmem>>, vector<512x128xf32>,
      %cst_14 = arith.constant dense<0.000000e+00> : vector<128xf32>
      %14 = vector.multi_reduction <add>, %12, %cst_14 [0] : vector<512x128xf32> to vector<128xf32>
      %15 = vector.shape_cast %14 : vector<128xf32> to vector<1x128xf32>
      %16 = arith.mulf %12, %12 : vector<512x128xf32>
      %cst_15 = arith.constant dense<0.000000e+00> : vector<128xf32>
      %17 = vector.multi_reduction <add>, %16, %cst_15 [0] : vector<512x128xf32> to vector<128xf32>
      %18 = vector.shape_cast %17 : vector<128xf32> to vector<1x128xf32>
      %19 = tpu.concatenate %15, %18 in 0 : vector<1x128xf32>, vector<1x128xf32> -> vector<2x128xf32>
      %20 = vector.shape_cast %19 : vector<2x128xf32> to vector<1x2x128xf32>
      %c0_16 = arith.constant 0 : index
      %c0_17 = arith.constant 0 : index
      %c0_18 = arith.constant 0 : index
      %21 = vector.load %arg6[%c0_16, %c0_17, %c0_18] : memref<1x2x128xf32, #tpu.memory_space<vmem>>, vector<1x2x128xf32>
      tpu.vector_store %arg6[%c0_16, %c0_17, %c0_18], %20 {strides = array<i32>} : memref<1x2x128xf32, #tpu.memory_space<vmem>>, vector<1x2x128xf32>,
    } else {
    }
    return
  }
  func.func @transform_0(%arg0: i32, %arg1: i32, %arg2: i32) -> (i32, i32) {
    %c0_i32 = arith.constant 0 : i32
    return %arg0, %arg2 : i32, i32
  }
  func.func @transform_1(%arg0: i32, %arg1: i32, %arg2: i32) -> (i32, i32) {
    %c0_i32 = arith.constant 0 : i32
    return %arg2, %arg1 : i32, i32
  }
  func.func @transform_2(%arg0: i32, %arg1: i32, %arg2: i32) -> (i32, i32) {
    %c0_i32 = arith.constant 0 : i32
    return %arg0, %arg1 : i32, i32
  }
  func.func @transform_3(%arg0: i32, %arg1: i32, %arg2: i32) -> (i32, i32, i32) {
    %c0_i32 = arith.constant 0 : i32
    %c0_i32_0 = arith.constant 0 : i32
    return %arg0, %c0_i32, %arg1 : i32, i32, i32
  }
}

module attributes {stable_mosaic.version = 11 : i64} {
  func.func @_mm_tanh_kernel(%arg0: i32, %arg1: i32, %arg2: i32, %arg3: memref<512x32xbf16, #tpu.memory_space<vmem>>, %arg4: memref<32x128xbf16, #tpu.memory_space<vmem>>, %arg5: memref<512x128xf32, #tpu.memory_space<vmem>>, %arg6: memref<512x128xf32, #tpu.memory_space<vmem>>) attributes {dimension_semantics = [#tpu.dimension_semantics<parallel>, #tpu.dimension_semantics<parallel>, #tpu.dimension_semantics<arbitrary>], iteration_bounds = array<i64: 4, 1, 1>, scalar_prefetch = 0 : i64, scratch_operands = 1 : i64, tpu.core_type = #tpu.core_type<tc>, window_params = [{transform_indices = @transform_0, window_bounds = array<i64: 512, 32>}, {transform_indices = @transform_1, window_bounds = array<i64: 32, 128>}, {transform_indices = @transform_2, window_bounds = array<i64: 512, 128>}]} {
    %c0_i32 = arith.constant 0 : i32
    %0 = arith.cmpi eq, %arg2, %c0_i32 : i32
    %1 = arith.extui %0 : i1 to i32
    %c0_i32_0 = arith.constant 0 : i32
    %2 = arith.cmpi ne, %1, %c0_i32_0 : i32
    scf.if %2 {
      %cst_10 = arith.constant 0.000000e+00 : f32
      %12 = vector.broadcast %cst_10 : f32 to vector<512x128xf32>
      %c0_11 = arith.constant 0 : index
      %c0_12 = arith.constant 0 : index
      %13 = vector.load %arg6[%c0_11, %c0_12] : memref<512x128xf32, #tpu.memory_space<vmem>>, vector<512x128xf32>
      tpu.vector_store %arg6[%c0_11, %c0_12], %12 {strides = array<i32>} : memref<512x128xf32, #tpu.memory_space<vmem>>, vector<512x128xf32>,
    } else {
    }
    %c0 = arith.constant 0 : index
    %c0_1 = arith.constant 0 : index
    %3 = vector.load %arg6[%c0, %c0_1] : memref<512x128xf32, #tpu.memory_space<vmem>>, vector<512x128xf32>
    %c0_2 = arith.constant 0 : index
    %c0_3 = arith.constant 0 : index
    %4 = vector.load %arg3[%c0_2, %c0_3] : memref<512x32xbf16, #tpu.memory_space<vmem>>, vector<512x32xbf16>
    %c0_4 = arith.constant 0 : index
    %c0_5 = arith.constant 0 : index
    %5 = vector.load %arg4[%c0_4, %c0_5] : memref<32x128xbf16, #tpu.memory_space<vmem>>, vector<32x128xbf16>
    %cst = arith.constant dense<0.000000e+00> : vector<512x128xf32>
    %6 = tpu.matmul %4, %5, %cst {dimension_numbers = #tpu.dot_dimension_numbers<[1], [0], [0], [1], [0, 0, 1, 1], [], []>} : vector<512x32xbf16>, vector<32x128xbf16>, vector<512x128xf32> -> vector<512x128xf32>
    %7 = arith.addf %3, %6 : vector<512x128xf32>
    %c0_6 = arith.constant 0 : index
    %c0_7 = arith.constant 0 : index
    %8 = vector.load %arg6[%c0_6, %c0_7] : memref<512x128xf32, #tpu.memory_space<vmem>>, vector<512x128xf32>
    tpu.vector_store %arg6[%c0_6, %c0_7], %7 {strides = array<i32>} : memref<512x128xf32, #tpu.memory_space<vmem>>, vector<512x128xf32>,
    %c0_i32_8 = arith.constant 0 : i32
    %9 = arith.cmpi eq, %arg2, %c0_i32_8 : i32
    %10 = arith.extui %9 : i1 to i32
    %c0_i32_9 = arith.constant 0 : i32
    %11 = arith.cmpi ne, %10, %c0_i32_9 : i32
    scf.if %11 {
      %c0_10 = arith.constant 0 : index
      %c0_11 = arith.constant 0 : index
      %12 = vector.load %arg6[%c0_10, %c0_11] : memref<512x128xf32, #tpu.memory_space<vmem>>, vector<512x128xf32>
      %13 = math.tanh %12 : vector<512x128xf32>
      %c0_12 = arith.constant 0 : index
      %c0_13 = arith.constant 0 : index
      %14 = vector.load %arg5[%c0_12, %c0_13] : memref<512x128xf32, #tpu.memory_space<vmem>>, vector<512x128xf32>
      tpu.vector_store %arg5[%c0_12, %c0_13], %13 {strides = array<i32>} : memref<512x128xf32, #tpu.memory_space<vmem>>, vector<512x128xf32>,
    } else {
    }
    return
  }
  func.func @transform_0(%arg0: i32, %arg1: i32, %arg2: i32) -> (i32, i32) {
    %c0_i32 = arith.constant 0 : i32
    return %arg0, %arg2 : i32, i32
  }
  func.func @transform_1(%arg0: i32, %arg1: i32, %arg2: i32) -> (i32, i32) {
    %c0_i32 = arith.constant 0 : i32
    return %arg2, %arg1 : i32, i32
  }
  func.func @transform_2(%arg0: i32, %arg1: i32, %arg2: i32) -> (i32, i32) {
    %c0_i32 = arith.constant 0 : i32
    return %arg0, %arg1 : i32, i32
  }
}

</mosaic_0001>

<bundles_post_ra>
// kernel: generator_forward.31
= control target key start
LH: loop header
LB: loop body
LE: loop exit
PB: predicated region body
PF: predicated region fallthrough
CT: control target
= control target key end

     0   :  { %s896_s0 = inlined_call_operand.vmem [shape: f32[512,128], index: 0, kind: input, shape index: {}]   ;;  %s897_s1 = inlined_call_operand.vmem [shape: f32[1,128], index: 1, kind: input, shape index: {}]   ;;  %s898_s2 = inlined_call_operand.vmem [shape: f32[1,128], index: 2, kind: input, shape index: {}]   ;;  %s899_s3 = inlined_call_operand.vmem [shape: f32[512,128], index: 3, kind: output, shape index: {}]  }
   0x1   :  { %v14_v0 = vld [vmem:[%s896_s0] sm:$0xff]  ;;  %v15_v4 = vld [vmem:[%s896_s0 + $0x8] sm:$0xff]  ;;  %v16_v5 = vld [vmem:[%s896_s0 + $0x10] sm:$0xff] }
   0x2   :  { %v380_v1 = vld [vmem:[%s897_s1] ss:$0 sm:$0xff]  ;;  %v17_v6 = vld [vmem:[%s896_s0 + $0x18] sm:$0xff]  ;;  %v19_v11 = vld [vmem:[%s896_s0 + $0x28] sm:$0xff] }
   0x3   :  { %v385_v2 = vld [vmem:[%s898_s2] ss:$0 sm:$0xff]  ;;  %v85_v3 = vmul.f32 %v380_v1, %v14_v0  ;;  %v86_v7 = vmul.f32 %v380_v1, %v15_v4  ;;  %v87_v8 = vmul.f32 %v380_v1, %v16_v5  ;;  %v88_v9 = vmul.f32 %v380_v1, %v17_v6  ;;  %v20_v12 = vld [vmem:[%s896_s0 + $0x30] sm:$0xff]  ;;  %v21_v17 = vld [vmem:[%s896_s0 + $0x38] sm:$0xff] }
   0x4   :  { %v18_v10 = vld [vmem:[%s896_s0 + $0x20] sm:$0xff]  ;;  %v90_v15 = vmul.f32 %v380_v1, %v19_v11  ;;  %v91_v16 = vmul.f32 %v380_v1, %v20_v12  ;;  %v92_v21 = vmul.f32 %v380_v1, %v21_v17  ;;  %v23_v27 = vld [vmem:[%s896_s0 + $0x48] sm:$0xff]  ;;  %v24_v28 = vld [vmem:[%s896_s0 + $0x50] sm:$0xff] }
   0x5   :  { %v156_v13 = vadd.f32 %v385_v2, %v85_v3  ;;  %v89_v14 = vmul.f32 %v380_v1, %v18_v10  ;;  %v157_v18 = vadd.f32 %v385_v2, %v86_v7  ;;  %v158_v19 = vadd.f32 %v385_v2, %v87_v8  ;;  %v22_v22 = vld [vmem:[%s896_s0 + $0x40] sm:$0xff]  ;;  %v25_v29 = vld [vmem:[%s896_s0 + $0x58] sm:$0xff]  ;;  %v27_v35 = vld [vmem:[%s896_s0 + $0x68] sm:$0xff] }
   0x6   :  { %v159_v20 = vadd.f32 %v385_v2, %v88_v9  ;;  %v161_v25 = vadd.f32 %v385_v2, %v90_v15  ;;  %v162_v26 = vadd.f32 %v385_v2, %v91_v16  ;;  %v163_v33 = vadd.f32 %v385_v2, %v92_v21  ;;  %v26_v34 = vld [vmem:[%s896_s0 + $0x60] sm:$0xff]  ;;  %v28_v36 = vld [vmem:[%s896_s0 + $0x70] sm:$0xff]  ;;  %v29_v41 = vld [vmem:[%s896_s0 + $0x78] sm:$0xff] }
   0x7   :  { %v220_v23 = vmax.f32 %v156_v13, 0.0  ;;  %v160_v24 = vadd.f32 %v385_v2, %v89_v14  ;;  %v221_v30 = vmax.f32 %v157_v18, 0.0  ;;  %v222_v31 = vmax.f32 %v158_v19, 0.0  ;;  %v30_v54 = vld [vmem:[%s896_s0 + $0x80] sm:$0xff]  ;;  %v31_v59 = vld [vmem:[%s896_s0 + $0x88] sm:$0xff]  ;;  %v32_v60 = vld [vmem:[%s896_s0 + $0x90] sm:$0xff] }
   0x8   :  { %v223_v32 = vmax.f32 %v159_v20, 0.0  ;;  %v225_v38 = vmax.f32 %v161_v25, 0.0  ;;  %v226_v39 = vmax.f32 %v162_v26, 0.0  ;;  %v93_v40 = vmul.f32 %v380_v1, %v22_v22  ;;  %v33_v61 = vld [vmem:[%s896_s0 + $0x98] sm:$0xff]  ;;  %v34_v4 = vld [vmem:[%s896_s0 + $0xa0] sm:$0xff]  ;;  %v35_v5 = vld [vmem:[%s896_s0 + $0xa8] sm:$0xff] }
   0x9   :  { %284 = vst [vmem:[%s899_s3] sm:$0xff] %v220_v23  ;;  %v224_v37 = vmax.f32 %v160_v24, 0.0  ;;  %285 = vst [vmem:[%s899_s3 + $0x8] sm:$0xff] %v221_v30  ;;  %v227_v42 = vmax.f32 %v163_v33, 0.0  ;;  %v94_v43 = vmul.f32 %v380_v1, %v23_v27  ;;  %v95_v44 = vmul.f32 %v380_v1, %v24_v28  ;;  %v36_v6 = vld [vmem:[%s896_s0 + $0xb0] sm:$0xff]  ;;  %v37_v11 = vld [vmem:[%s896_s0 + $0xb8] sm:$0xff] }
   0xa   :  { %286 = vst [vmem:[%s899_s3 + $0x10] sm:$0xff] %v222_v31  ;;  %287 = vst [vmem:[%s899_s3 + $0x18] sm:$0xff] %v223_v32  ;;  %v96_v45 = vmul.f32 %v380_v1, %v25_v29  ;;  %v164_v46 = vadd.f32 %v385_v2, %v93_v40  ;;  %v97_v47 = vmul.f32 %v380_v1, %v26_v34  ;;  %v38_v24 = vld [vmem:[%s896_s0 + $0xc0] sm:$0xff]  ;;  %v39_v29 = vld [vmem:[%s896_s0 + $0xc8] sm:$0xff] }
   0xb   :  { %288 = vst [vmem:[%s899_s3 + $0x20] sm:$0xff] %v224_v37  ;;  %289 = vst [vmem:[%s899_s3 + $0x28] sm:$0xff] %v225_v38  ;;  %v98_v48 = vmul.f32 %v380_v1, %v27_v35  ;;  %v99_v49 = vmul.f32 %v380_v1, %v28_v36  ;;  %v165_v50 = vadd.f32 %v385_v2, %v94_v43  ;;  %v40_v30 = vld [vmem:[%s896_s0 + $0xd0] sm:$0xff]  ;;  %v41_v31 = vld [vmem:[%s896_s0 + $0xd8] sm:$0xff] }
   0xc   :  { %290 = vst [vmem:[%s899_s3 + $0x30] sm:$0xff] %v226_v39  ;;  %291 = vst [vmem:[%s899_s3 + $0x38] sm:$0xff] %v227_v42  ;;  %v166_v51 = vadd.f32 %v385_v2, %v95_v44  ;;  %v167_v52 = vadd.f32 %v385_v2, %v96_v45  ;;  %v100_v53 = vmul.f32 %v380_v1, %v29_v41  ;;  %v228_v55 = vmax.f32 %v164_v46, 0.0  ;;  %v42_v36 = vld [vmem:[%s896_s0 + $0xe0] sm:$0xff]  ;;  %v43_v37 = vld [vmem:[%s896_s0 + $0xe8] sm:$0xff] }
   0xd   :  { %v168_v56 = vadd.f32 %v385_v2, %v97_v47  ;;  %v169_v57 = vadd.f32 %v385_v2, %v98_v48  ;;  %v170_v58 = vadd.f32 %v385_v2, %v99_v49  ;;  %v229_v62 = vmax.f32 %v165_v50, 0.0  ;;  %v44_v38 = vld [vmem:[%s896_s0 + $0xf0] sm:$0xff]  ;;  %v45_v43 = vld [vmem:[%s896_s0 + $0xf8] sm:$0xff] }
   0xe   :  { %v230_v63 = vmax.f32 %v166_v51, 0.0  ;;  %v231_v0 = vmax.f32 %v167_v52, 0.0  ;;  %v171_v3 = vadd.f32 %v385_v2, %v100_v53  ;;  %292 = vst [vmem:[%s899_s3 + $0x40] sm:$0xff] %v228_v55  ;;  %v101_v10 = vmul.f32 %v380_v1, %v30_v54 }
   0xf   :  { %v232_v7 = vmax.f32 %v168_v56, 0.0  ;;  %v233_v8 = vmax.f32 %v169_v57, 0.0  ;;  %v234_v9 = vmax.f32 %v170_v58, 0.0  ;;  %293 = vst [vmem:[%s899_s3 + $0x48] sm:$0xff] %v229_v62  ;;  %v102_v13 = vmul.f32 %v380_v1, %v31_v59  ;;  %v46_v56 = vld [vmem:[%s896_s0 + $0x100] sm:$0xff]  ;;  %v48_v62 = vld [vmem:[%s896_s0 + $0x110] sm:$0xff] }
  0x10   :  { %294 = vst [vmem:[%s899_s3 + $0x50] sm:$0xff] %v230_v63  ;;  %295 = vst [vmem:[%s899_s3 + $0x58] sm:$0xff] %v231_v0  ;;  %v235_v12 = vmax.f32 %v171_v3, 0.0  ;;  %v103_v14 = vmul.f32 %v380_v1, %v32_v60  ;;  %v104_v15 = vmul.f32 %v380_v1, %v33_v61  ;;  %v172_v16 = vadd.f32 %v385_v2, %v101_v10  ;;  %v47_v61 = vld [vmem:[%s896_s0 + $0x108] sm:$0xff]  ;;  %v49_v63 = vld [vmem:[%s896_s0 + $0x118] sm:$0xff] }
  0x11   :  { %296 = vst [vmem:[%s899_s3 + $0x60] sm:$0xff] %v232_v7  ;;  %297 = vst [vmem:[%s899_s3 + $0x68] sm:$0xff] %v233_v8  ;;  %v105_v17 = vmul.f32 %v380_v1, %v34_v4  ;;  %v106_v18 = vmul.f32 %v380_v1, %v35_v5  ;;  %v107_v19 = vmul.f32 %v380_v1, %v36_v6  ;;  %v50_v6 = vld [vmem:[%s896_s0 + $0x120] sm:$0xff]  ;;  %v51_v7 = vld [vmem:[%s896_s0 + $0x128] sm:$0xff] }
  0x12   :  { %298 = vst [vmem:[%s899_s3 + $0x70] sm:$0xff] %v234_v9  ;;  %299 = vst [vmem:[%s899_s3 + $0x78] sm:$0xff] %v235_v12  ;;  %v173_v20 = vadd.f32 %v385_v2, %v102_v13  ;;  %v174_v21 = vadd.f32 %v385_v2, %v103_v14  ;;  %v175_v22 = vadd.f32 %v385_v2, %v104_v15  ;;  %v236_v25 = vmax.f32 %v172_v16, 0.0  ;;  %v52_v8 = vld [vmem:[%s896_s0 + $0x130] sm:$0xff]  ;;  %v53_v13 = vld [vmem:[%s896_s0 + $0x138] sm:$0xff] }
  0x13   :  { %v108_v23 = vmul.f32 %v380_v1, %v37_v11  ;;  %v176_v26 = vadd.f32 %v385_v2, %v105_v17  ;;  %v177_v27 = vadd.f32 %v385_v2, %v106_v18  ;;  %v178_v28 = vadd.f32 %v385_v2, %v107_v19 }
  0x14   :  { %v237_v32 = vmax.f32 %v173_v20, 0.0  ;;  %v238_v33 = vmax.f32 %v174_v21, 0.0  ;;  %v239_v34 = vmax.f32 %v175_v22, 0.0  ;;  %300 = vst [vmem:[%s899_s3 + $0x80] sm:$0xff] %v236_v25  ;;  %v109_v42 = vmul.f32 %v380_v1, %v38_v24 }
  0x15   :  { %v179_v35 = vadd.f32 %v385_v2, %v108_v23  ;;  %v240_v39 = vmax.f32 %v176_v26, 0.0  ;;  %v241_v40 = vmax.f32 %v177_v27, 0.0  ;;  %v242_v41 = vmax.f32 %v178_v28, 0.0  ;;  %v54_v26 = vld [vmem:[%s896_s0 + $0x140] sm:$0xff] }
  0x16   :  { %301 = vst [vmem:[%s899_s3 + $0x88] sm:$0xff] %v237_v32  ;;  %302 = vst [vmem:[%s899_s3 + $0x90] sm:$0xff] %v238_v33  ;;  %v110_v45 = vmul.f32 %v380_v1, %v39_v29  ;;  %v111_v46 = vmul.f32 %v380_v1, %v40_v30  ;;  %v112_v47 = vmul.f32 %v380_v1, %v41_v31  ;;  %v55_v31 = vld [vmem:[%s896_s0 + $0x148] sm:$0xff]  ;;  %v56_v32 = vld [vmem:[%s896_s0 + $0x150] sm:$0xff] }
  0x17   :  { %303 = vst [vmem:[%s899_s3 + $0x98] sm:$0xff] %v239_v34  ;;  %v243_v44 = vmax.f32 %v179_v35, 0.0  ;;  %304 = vst [vmem:[%s899_s3 + $0xa0] sm:$0xff] %v240_v39  ;;  %v180_v48 = vadd.f32 %v385_v2, %v109_v42  ;;  %v113_v49 = vmul.f32 %v380_v1, %v42_v36  ;;  %v114_v50 = vmul.f32 %v380_v1, %v43_v37  ;;  %v57_v33 = vld [vmem:[%s896_s0 + $0x158] sm:$0xff]  ;;  %v59_v39 = vld [vmem:[%s896_s0 + $0x168] sm:$0xff] }
  0x18   :  { %305 = vst [vmem:[%s899_s3 + $0xa8] sm:$0xff] %v241_v40  ;;  %306 = vst [vmem:[%s899_s3 + $0xb0] sm:$0xff] %v242_v41  ;;  %v115_v51 = vmul.f32 %v380_v1, %v44_v38  ;;  %v181_v52 = vadd.f32 %v385_v2, %v110_v45  ;;  %v182_v53 = vadd.f32 %v385_v2, %v111_v46  ;;  %v58_v38 = vld [vmem:[%s896_s0 + $0x160] sm:$0xff]  ;;  %v60_v40 = vld [vmem:[%s896_s0 + $0x170] sm:$0xff] }
  0x19   :  { %307 = vst [vmem:[%s899_s3 + $0xb8] sm:$0xff] %v243_v44  ;;  %v183_v54 = vadd.f32 %v385_v2, %v112_v47  ;;  %v116_v55 = vmul.f32 %v380_v1, %v45_v43  ;;  %v244_v57 = vmax.f32 %v180_v48, 0.0  ;;  %v184_v58 = vadd.f32 %v385_v2, %v113_v49  ;;  %v61_v45 = vld [vmem:[%s896_s0 + $0x178] sm:$0xff] }
  0x1a   :  { %v185_v59 = vadd.f32 %v385_v2, %v114_v50  ;;  %v186_v60 = vadd.f32 %v385_v2, %v115_v51  ;;  %v245_v0 = vmax.f32 %v181_v52, 0.0  ;;  %v246_v3 = vmax.f32 %v182_v53, 0.0 }
  0x1b   :  { %v247_v4 = vmax.f32 %v183_v54, 0.0  ;;  %v187_v5 = vadd.f32 %v385_v2, %v116_v55  ;;  %308 = vst [vmem:[%s899_s3 + $0xc0] sm:$0xff] %v244_v57  ;;  %v248_v9 = vmax.f32 %v184_v58, 0.0  ;;  %v117_v12 = vmul.f32 %v380_v1, %v46_v56  ;;  %v62_v58 = vld [vmem:[%s896_s0 + $0x180] sm:$0xff] }
  0x1c   :  { %v249_v10 = vmax.f32 %v185_v59, 0.0  ;;  %v250_v11 = vmax.f32 %v186_v60, 0.0  ;;  %309 = vst [vmem:[%s899_s3 + $0xc8] sm:$0xff] %v245_v0  ;;  %310 = vst [vmem:[%s899_s3 + $0xd0] sm:$0xff] %v246_v3  ;;  %v118_v15 = vmul.f32 %v380_v1, %v47_v61  ;;  %v119_v16 = vmul.f32 %v380_v1, %v48_v62  ;;  %v64_v0 = vld [vmem:[%s896_s0 + $0x190] sm:$0xff]  ;;  %v65_v3 = vld [vmem:[%s896_s0 + $0x198] sm:$0xff] }
  0x1d   :  { %311 = vst [vmem:[%s899_s3 + $0xd8] sm:$0xff] %v247_v4  ;;  %v251_v14 = vmax.f32 %v187_v5, 0.0  ;;  %v120_v17 = vmul.f32 %v380_v1, %v49_v63  ;;  %312 = vst [vmem:[%s899_s3 + $0xe0] sm:$0xff] %v248_v9  ;;  %v188_v18 = vadd.f32 %v385_v2, %v117_v12  ;;  %v121_v19 = vmul.f32 %v380_v1, %v50_v6  ;;  %v63_v63 = vld [vmem:[%s896_s0 + $0x188] sm:$0xff] }
  0x1e   :  { %313 = vst [vmem:[%s899_s3 + $0xe8] sm:$0xff] %v249_v10  ;;  %314 = vst [vmem:[%s899_s3 + $0xf0] sm:$0xff] %v250_v11  ;;  %v122_v20 = vmul.f32 %v380_v1, %v51_v7  ;;  %v123_v21 = vmul.f32 %v380_v1, %v52_v8  ;;  %v189_v22 = vadd.f32 %v385_v2, %v118_v15  ;;  %v66_v8 = vld [vmem:[%s896_s0 + $0x1a0] sm:$0xff]  ;;  %v67_v9 = vld [vmem:[%s896_s0 + $0x1a8] sm:$0xff] }
  0x1f   :  { %315 = vst [vmem:[%s899_s3 + $0xf8] sm:$0xff] %v251_v14  ;;  %v190_v23 = vadd.f32 %v385_v2, %v119_v16  ;;  %v191_v24 = vadd.f32 %v385_v2, %v120_v17  ;;  %v124_v25 = vmul.f32 %v380_v1, %v53_v13  ;;  %v252_v27 = vmax.f32 %v188_v18, 0.0  ;;  %v68_v10 = vld [vmem:[%s896_s0 + $0x1b0] sm:$0xff]  ;;  %v69_v15 = vld [vmem:[%s896_s0 + $0x1b8] sm:$0xff] }
  0x20   :  { %v192_v28 = vadd.f32 %v385_v2, %v121_v19  ;;  %v193_v29 = vadd.f32 %v385_v2, %v122_v20  ;;  %v194_v30 = vadd.f32 %v385_v2, %v123_v21  ;;  %v253_v34 = vmax.f32 %v189_v22, 0.0 }
  0x21   :  { %v254_v35 = vmax.f32 %v190_v23, 0.0  ;;  %v255_v36 = vmax.f32 %v191_v24, 0.0  ;;  %v195_v37 = vadd.f32 %v385_v2, %v124_v25  ;;  %316 = vst [vmem:[%s899_s3 + $0x100] sm:$0xff] %v252_v27  ;;  %v125_v44 = vmul.f32 %v380_v1, %v54_v26 }
  0x22   :  { %v256_v41 = vmax.f32 %v192_v28, 0.0  ;;  %v257_v42 = vmax.f32 %v193_v29, 0.0  ;;  %v258_v43 = vmax.f32 %v194_v30, 0.0  ;;  %317 = vst [vmem:[%s899_s3 + $0x108] sm:$0xff] %v253_v34  ;;  %v126_v47 = vmul.f32 %v380_v1, %v55_v31  ;;  %v70_v28 = vld [vmem:[%s896_s0 + $0x1c0] sm:$0xff]  ;;  %v72_v34 = vld [vmem:[%s896_s0 + $0x1d0] sm:$0xff] }
  0x23   :  { %318 = vst [vmem:[%s899_s3 + $0x110] sm:$0xff] %v254_v35  ;;  %319 = vst [vmem:[%s899_s3 + $0x118] sm:$0xff] %v255_v36  ;;  %v259_v46 = vmax.f32 %v195_v37, 0.0  ;;  %v127_v48 = vmul.f32 %v380_v1, %v56_v32  ;;  %v128_v49 = vmul.f32 %v380_v1, %v57_v33  ;;  %v196_v50 = vadd.f32 %v385_v2, %v125_v44  ;;  %v71_v33 = vld [vmem:[%s896_s0 + $0x1c8] sm:$0xff]  ;;  %v73_v35 = vld [vmem:[%s896_s0 + $0x1d8] sm:$0xff] }
  0x24   :  { %320 = vst [vmem:[%s899_s3 + $0x120] sm:$0xff] %v256_v41  ;;  %321 = vst [vmem:[%s899_s3 + $0x128] sm:$0xff] %v257_v42  ;;  %v129_v51 = vmul.f32 %v380_v1, %v58_v38  ;;  %v130_v52 = vmul.f32 %v380_v1, %v59_v39  ;;  %v131_v53 = vmul.f32 %v380_v1, %v60_v40  ;;  %v74_v40 = vld [vmem:[%s896_s0 + $0x1e0] sm:$0xff]  ;;  %v75_v41 = vld [vmem:[%s896_s0 + $0x1e8] sm:$0xff] }
  0x25   :  { %322 = vst [vmem:[%s899_s3 + $0x130] sm:$0xff] %v258_v43  ;;  %323 = vst [vmem:[%s899_s3 + $0x138] sm:$0xff] %v259_v46  ;;  %v197_v54 = vadd.f32 %v385_v2, %v126_v47  ;;  %v198_v55 = vadd.f32 %v385_v2, %v127_v48  ;;  %v199_v56 = vadd.f32 %v385_v2, %v128_v49  ;;  %v260_v59 = vmax.f32 %v196_v50, 0.0  ;;  %v76_v42 = vld [vmem:[%s896_s0 + $0x1f0] sm:$0xff]  ;;  %v77_v47 = vld [vmem:[%s896_s0 + $0x1f8] sm:$0xff] }
  0x26   :  { %v132_v57 = vmul.f32 %v380_v1, %v61_v45  ;;  %v200_v60 = vadd.f32 %v385_v2, %v129_v51  ;;  %v201_v61 = vadd.f32 %v385_v2, %v130_v52  ;;  %v202_v62 = vadd.f32 %v385_v2, %v131_v53 }
  0x27   :  { %v261_v4 = vmax.f32 %v197_v54, 0.0  ;;  %v262_v5 = vmax.f32 %v198_v55, 0.0  ;;  %v263_v6 = vmax.f32 %v199_v56, 0.0  ;;  %324 = vst [vmem:[%s899_s3 + $0x140] sm:$0xff] %v260_v59  ;;  %v133_v14 = vmul.f32 %v380_v1, %v62_v58 }
  0x28   :  { %v203_v7 = vadd.f32 %v385_v2, %v132_v57  ;;  %v264_v11 = vmax.f32 %v200_v60, 0.0  ;;  %v265_v12 = vmax.f32 %v201_v61, 0.0  ;;  %v266_v13 = vmax.f32 %v202_v62, 0.0 }
  0x29   :  { %325 = vst [vmem:[%s899_s3 + $0x148] sm:$0xff] %v261_v4  ;;  %326 = vst [vmem:[%s899_s3 + $0x150] sm:$0xff] %v262_v5  ;;  %v134_v17 = vmul.f32 %v380_v1, %v63_v63  ;;  %v135_v18 = vmul.f32 %v380_v1, %v64_v0  ;;  %v136_v19 = vmul.f32 %v380_v1, %v65_v3 }
  0x2a   :  { %327 = vst [vmem:[%s899_s3 + $0x158] sm:$0xff] %v263_v6  ;;  %v267_v16 = vmax.f32 %v203_v7, 0.0  ;;  %328 = vst [vmem:[%s899_s3 + $0x160] sm:$0xff] %v264_v11  ;;  %v204_v20 = vadd.f32 %v385_v2, %v133_v14  ;;  %v137_v21 = vmul.f32 %v380_v1, %v66_v8  ;;  %v138_v22 = vmul.f32 %v380_v1, %v67_v9 }
  0x2b   :  { %329 = vst [vmem:[%s899_s3 + $0x168] sm:$0xff] %v265_v12  ;;  %330 = vst [vmem:[%s899_s3 + $0x170] sm:$0xff] %v266_v13  ;;  %v139_v23 = vmul.f32 %v380_v1, %v68_v10  ;;  %v205_v24 = vadd.f32 %v385_v2, %v134_v17  ;;  %v206_v25 = vadd.f32 %v385_v2, %v135_v18 }
  0x2c   :  { %331 = vst [vmem:[%s899_s3 + $0x178] sm:$0xff] %v267_v16  ;;  %v207_v26 = vadd.f32 %v385_v2, %v136_v19  ;;  %v140_v27 = vmul.f32 %v380_v1, %v69_v15  ;;  %v268_v29 = vmax.f32 %v204_v20, 0.0  ;;  %v208_v30 = vadd.f32 %v385_v2, %v137_v21 }
  0x2d   :  { %v209_v31 = vadd.f32 %v385_v2, %v138_v22  ;;  %v210_v32 = vadd.f32 %v385_v2, %v139_v23  ;;  %v269_v36 = vmax.f32 %v205_v24, 0.0  ;;  %v270_v37 = vmax.f32 %v206_v25, 0.0 }
  0x2e   :  { %v271_v38 = vmax.f32 %v207_v26, 0.0  ;;  %v211_v39 = vadd.f32 %v385_v2, %v140_v27  ;;  %332 = vst [vmem:[%s899_s3 + $0x180] sm:$0xff] %v268_v29  ;;  %v272_v43 = vmax.f32 %v208_v30, 0.0  ;;  %v141_v46 = vmul.f32 %v380_v1, %v70_v28 }
  0x2f   :  { %v273_v44 = vmax.f32 %v209_v31, 0.0  ;;  %v274_v45 = vmax.f32 %v210_v32, 0.0  ;;  %333 = vst [vmem:[%s899_s3 + $0x188] sm:$0xff] %v269_v36  ;;  %334 = vst [vmem:[%s899_s3 + $0x190] sm:$0xff] %v270_v37  ;;  %v142_v49 = vmul.f32 %v380_v1, %v71_v33  ;;  %v143_v50 = vmul.f32 %v380_v1, %v72_v34 }
  0x30   :  { %335 = vst [vmem:[%s899_s3 + $0x198] sm:$0xff] %v271_v38  ;;  %v275_v48 = vmax.f32 %v211_v39, 0.0  ;;  %v144_v51 = vmul.f32 %v380_v1, %v73_v35  ;;  %336 = vst [vmem:[%s899_s3 + $0x1a0] sm:$0xff] %v272_v43  ;;  %v212_v52 = vadd.f32 %v385_v2, %v141_v46  ;;  %v145_v53 = vmul.f32 %v380_v1, %v74_v40 }
  0x31   :  { %337 = vst [vmem:[%s899_s3 + $0x1a8] sm:$0xff] %v273_v44  ;;  %338 = vst [vmem:[%s899_s3 + $0x1b0] sm:$0xff] %v274_v45  ;;  %v146_v54 = vmul.f32 %v380_v1, %v75_v41  ;;  %v147_v55 = vmul.f32 %v380_v1, %v76_v42  ;;  %v213_v56 = vadd.f32 %v385_v2, %v142_v49 }
  0x32   :  { %339 = vst [vmem:[%s899_s3 + $0x1b8] sm:$0xff] %v275_v48  ;;  %v214_v57 = vadd.f32 %v385_v2, %v143_v50  ;;  %v215_v58 = vadd.f32 %v385_v2, %v144_v51  ;;  %v148_v59 = vmul.f32 %v380_v1, %v77_v47  ;;  %v276_v60 = vmax.f32 %v212_v52, 0.0 }
  0x33   :  { %v216_v61 = vadd.f32 %v385_v2, %v145_v53  ;;  %v217_v62 = vadd.f32 %v385_v2, %v146_v54  ;;  %v218_v63 = vadd.f32 %v385_v2, %v147_v55  ;;  %v277_v0 = vmax.f32 %v213_v56, 0.0 }
  0x34   :  { %v278_v3 = vmax.f32 %v214_v57, 0.0  ;;  %v279_v4 = vmax.f32 %v215_v58, 0.0  ;;  %v219_v5 = vadd.f32 %v385_v2, %v148_v59  ;;  %340 = vst [vmem:[%s899_s3 + $0x1c0] sm:$0xff] %v276_v60 }
  0x35   :  { %v280_v6 = vmax.f32 %v216_v61, 0.0  ;;  %v281_v7 = vmax.f32 %v217_v62, 0.0  ;;  %v282_v8 = vmax.f32 %v218_v63, 0.0  ;;  %341 = vst [vmem:[%s899_s3 + $0x1c8] sm:$0xff] %v277_v0 }
  0x36   :  { %342 = vst [vmem:[%s899_s3 + $0x1d0] sm:$0xff] %v278_v3  ;;  %343 = vst [vmem:[%s899_s3 + $0x1d8] sm:$0xff] %v279_v4  ;;  %v283_v1 = vmax.f32 %v219_v5, 0.0 }
  0x37   :  { %344 = vst [vmem:[%s899_s3 + $0x1e0] sm:$0xff] %v280_v6  ;;  %345 = vst [vmem:[%s899_s3 + $0x1e8] sm:$0xff] %v281_v7 }
  0x38   :  { %346 = vst [vmem:[%s899_s3 + $0x1f0] sm:$0xff] %v282_v8  ;;  %347 = vst [vmem:[%s899_s3 + $0x1f8] sm:$0xff] %v283_v1 }

// kernel: generator_forward.30
= control target key start
LH: loop header
LB: loop body
LE: loop exit
PB: predicated region body
PF: predicated region fallthrough
CT: control target
= control target key end

     0   :  { %v1644_v0 = vmov 0   ;;  %vm1408_vm0 = vcmask 1040384   ;;  %s2456_s1 = inlined_call_operand.vmem [shape: bf16[256,128], index: 1, kind: input, shape index: {}]   ;;  %s2457_s0 = inlined_call_operand.vmem [shape: bf16[512,256], index: 0, kind: input, shape index: {}]   ;;  %s2458_s2 = inlined_call_operand.vmem [shape: f32[512,128], index: 2, kind: output, shape index: {0}]   ;;  %s2459_s3 = inlined_call_operand.vmem [shape: f32[1,2,128], index: 3, kind: output, shape index: {1}]  }
   0x1   :  { %658 = vmatprep.subr.bf16.mxu0 %v1644_v0  ;;  %v1532_v1 = vld [vmem:[%s2456_s1 + $0x38] sm:$0xff]   ;;  %1499 = vmatprep.subr.bf16.mxu1 %v1644_v0  ;;  %v1533_v2 = vld [vmem:[%s2456_s1 + $0x30] sm:$0xff]   ;;  %v1534_v3 = vld [vmem:[%s2456_s1 + $0x28] sm:$0xff]  }
   0x2   :  { %659 = vmatpush1.bf16.msra.mxu0 %v1532_v1  ;;  %1515 = vmatpush1.bf16.msra.mxu1 %v1532_v1  ;;  %v1535_v4 = vld [vmem:[%s2456_s1 + $0x20] sm:$0xff]   ;;  %v1536_v5 = vld [vmem:[%s2456_s1 + $0x18] sm:$0xff]   ;;  %v1537_v7 = vld [vmem:[%s2456_s1 + $0x10] sm:$0xff]  }
   0x3   :  { %660 = vmatprep.subr.bf16.mxu0 %v1644_v0  ;;  %1500 = vmatprep.subr.bf16.mxu1 %v1644_v0  ;;  %v1550_v6 = vld [vmem:[%s2457_s0 + $0x4] ss:$8 sps:$4 sm:$0xff]   ;;  %v1540_v11 = vld [vmem:[%s2456_s1 + $0x78] sm:$0xff]   ;;  %v1541_v12 = vld [vmem:[%s2456_s1 + $0x70] sm:$0xff]  }
   0x4   :  { %690 = vmatprep.mubr.bf16.mxu0 %v1550_v6  ;;  %v1538_v8 = vld [vmem:[%s2456_s1 + $0x8] sm:$0xff]   ;;  %v1539_v9 = vld [vmem:[%s2456_s1] sm:$0xff]   ;;  %v1544_v15 = vld [vmem:[%s2456_s1 + $0x58] sm:$0xff]  }
   0x5   :  { %v1574_v10 = vld [vmem:[%s2457_s0 + $0x104] ss:$8 sps:$4 sm:$0xff]   ;;  %v1545_v16 = vld [vmem:[%s2456_s1 + $0x50] sm:$0xff]   ;;  %v1548_v19 = vld [vmem:[%s2457_s0] ss:$8 sps:$4 sm:$0xff]  }
   0x6   :  { %661 = vmatpush1.bf16.msra.mxu0 %v1533_v2  ;;  %1516 = vmatpush1.bf16.msra.mxu1 %v1533_v2  ;;  %v1542_v13 = vld [vmem:[%s2456_s1 + $0x68] sm:$0xff]   ;;  %v1543_v14 = vld [vmem:[%s2456_s1 + $0x60] sm:$0xff]   ;;  %v1551_v21 = vld [vmem:[%s2457_s0 + $0x14] ss:$8 sps:$4 sm:$0xff]  }
   0x7   :  { %662 = vmatprep.subr.bf16.mxu0 %v1644_v0  ;;  %1501 = vmatprep.subr.bf16.mxu1 %v1644_v0  ;;  %v1546_v17 = vld [vmem:[%s2456_s1 + $0x48] sm:$0xff]   ;;  %v1547_v18 = vld [vmem:[%s2456_s1 + $0x40] sm:$0xff]   ;;  %v1578_v22 = vld [vmem:[%s2457_s0 + $0x114] ss:$8 sps:$4 sm:$0xff]  }
   0x8   :  { %818 = vmatprep.mubr.bf16.mxu1 %v1574_v10  ;;  %v1572_v20 = vld [vmem:[%s2457_s0 + $0x100] ss:$8 sps:$4 sm:$0xff]   ;;  %v1553_v23 = vld [vmem:[%s2457_s0 + $0x10] ss:$8 sps:$4 sm:$0xff]   ;;  %v1554_v25 = vld [vmem:[%s2457_s0 + $0x24] ss:$8 sps:$4 sm:$0xff]  }
   0x9   :  { %v1580_v24 = vld [vmem:[%s2457_s0 + $0x110] ss:$8 sps:$4 sm:$0xff]   ;;  %v1584_v26 = vld [vmem:[%s2457_s0 + $0x124] ss:$8 sps:$4 sm:$0xff]   ;;  %v1556_v27 = vld [vmem:[%s2457_s0 + $0x20] ss:$8 sps:$4 sm:$0xff]  }
   0xa   :  { %663 = vmatpush1.bf16.msra.mxu0 %v1534_v3  ;;  %1517 = vmatpush1.bf16.msra.mxu1 %v1534_v3  ;;  %v1586_v28 = vld [vmem:[%s2457_s0 + $0x120] ss:$8 sps:$4 sm:$0xff]   ;;  %v1557_v29 = vld [vmem:[%s2457_s0 + $0x34] ss:$8 sps:$4 sm:$0xff]   ;;  %v1559_v31 = vld [vmem:[%s2457_s0 + $0x30] ss:$8 sps:$4 sm:$0xff]  }
   0xb   :  { %664 = vmatprep.subr.bf16.mxu0 %v1644_v0  ;;  %1502 = vmatprep.subr.bf16.mxu1 %v1644_v0  ;;  %v1590_v30 = vld [vmem:[%s2457_s0 + $0x134] ss:$8 sps:$4 sm:$0xff]   ;;  %v1592_v32 = vld [vmem:[%s2457_s0 + $0x130] ss:$8 sps:$4 sm:$0xff]   ;;  %v1560_v33 = vld [vmem:[%s2457_s0 + $0x44] ss:$8 sps:$4 sm:$0xff]  }
   0xc   :  { %v1596_v34 = vld [vmem:[%s2457_s0 + $0x144] ss:$8 sps:$4 sm:$0xff]   ;;  %v1562_v35 = vld [vmem:[%s2457_s0 + $0x40] ss:$8 sps:$4 sm:$0xff]   ;;  %v1563_v37 = vld [vmem:[%s2457_s0 + $0x54] ss:$8 sps:$4 sm:$0xff]  }
   0xd   :  { %v1598_v36 = vld [vmem:[%s2457_s0 + $0x140] ss:$8 sps:$4 sm:$0xff]   ;;  %v1602_v38 = vld [vmem:[%s2457_s0 + $0x154] ss:$8 sps:$4 sm:$0xff]   ;;  %v1565_v39 = vld [vmem:[%s2457_s0 + $0x50] ss:$8 sps:$4 sm:$0xff]  }
   0xe   :  { %665 = vmatpush1.bf16.msra.mxu0 %v1535_v4  ;;  %1518 = vmatpush1.bf16.msra.mxu1 %v1535_v4  ;;  %v1604_v40 = vld [vmem:[%s2457_s0 + $0x150] ss:$8 sps:$4 sm:$0xff]   ;;  %v1566_v41 = vld [vmem:[%s2457_s0 + $0x64] ss:$8 sps:$4 sm:$0xff]   ;;  %v1568_v43 = vld [vmem:[%s2457_s0 + $0x60] ss:$8 sps:$4 sm:$0xff]  }
   0xf   :  { %666 = vmatprep.subr.bf16.mxu0 %v1644_v0  ;;  %1503 = vmatprep.subr.bf16.mxu1 %v1644_v0  ;;  %v1608_v42 = vld [vmem:[%s2457_s0 + $0x164] ss:$8 sps:$4 sm:$0xff]   ;;  %v1610_v44 = vld [vmem:[%s2457_s0 + $0x160] ss:$8 sps:$4 sm:$0xff]   ;;  %v1569_v45 = vld [vmem:[%s2457_s0 + $0x74] ss:$8 sps:$4 sm:$0xff]  }
  0x10   :  { %v1614_v46 = vld [vmem:[%s2457_s0 + $0x174] ss:$8 sps:$4 sm:$0xff]   ;;  %v1571_v47 = vld [vmem:[%s2457_s0 + $0x70] ss:$8 sps:$4 sm:$0xff]   ;;  %v1575_v49 = vld [vmem:[%s2457_s0 + $0x84] ss:$8 sps:$4 sm:$0xff]  }
  0x11   :  { %v1616_v48 = vld [vmem:[%s2457_s0 + $0x170] ss:$8 sps:$4 sm:$0xff]   ;;  %v1620_v50 = vld [vmem:[%s2457_s0 + $0x184] ss:$8 sps:$4 sm:$0xff]   ;;  %v1577_v51 = vld [vmem:[%s2457_s0 + $0x80] ss:$8 sps:$4 sm:$0xff]  }
  0x12   :  { %667 = vmatpush1.bf16.msra.mxu0 %v1536_v5  ;;  %1519 = vmatpush1.bf16.msra.mxu1 %v1536_v5  ;;  %v1622_v52 = vld [vmem:[%s2457_s0 + $0x180] ss:$8 sps:$4 sm:$0xff]   ;;  %v1581_v53 = vld [vmem:[%s2457_s0 + $0x94] ss:$8 sps:$4 sm:$0xff]   ;;  %v1583_v55 = vld [vmem:[%s2457_s0 + $0x90] ss:$8 sps:$4 sm:$0xff]  }
  0x13   :  { %668 = vmatprep.subr.bf16.mxu0 %v1644_v0  ;;  %1504 = vmatprep.subr.bf16.mxu1 %v1644_v0  ;;  %v1623_v54 = vld [vmem:[%s2457_s0 + $0x194] ss:$8 sps:$4 sm:$0xff]   ;;  %v1625_v56 = vld [vmem:[%s2457_s0 + $0x190] ss:$8 sps:$4 sm:$0xff]   ;;  %v1587_v57 = vld [vmem:[%s2457_s0 + $0xa4] ss:$8 sps:$4 sm:$0xff]  }
  0x14   :  { %v1626_v58 = vld [vmem:[%s2457_s0 + $0x1a4] ss:$8 sps:$4 sm:$0xff]   ;;  %v1589_v59 = vld [vmem:[%s2457_s0 + $0xa0] ss:$8 sps:$4 sm:$0xff]   ;;  %v1593_v61 = vld [vmem:[%s2457_s0 + $0xb4] ss:$8 sps:$4 sm:$0xff]  }
  0x15   :  { %v1628_v60 = vld [vmem:[%s2457_s0 + $0x1a0] ss:$8 sps:$4 sm:$0xff]   ;;  %v1629_v62 = vld [vmem:[%s2457_s0 + $0x1b4] ss:$8 sps:$4 sm:$0xff]   ;;  %v1595_v63 = vld [vmem:[%s2457_s0 + $0xb0] ss:$8 sps:$4 sm:$0xff]  }
  0x16   :  { %669 = vmatpush1.bf16.msra.mxu0 %v1537_v7  ;;  %1520 = vmatpush1.bf16.msra.mxu1 %v1537_v7  ;;  %v1599_v1 = vld [vmem:[%s2457_s0 + $0xc4] ss:$8 sps:$4 sm:$0xff]   ;;  %v1601_v3 = vld [vmem:[%s2457_s0 + $0xc0] ss:$8 sps:$4 sm:$0xff]   ;;  %v1605_v5 = vld [vmem:[%s2457_s0 + $0xd4] ss:$8 sps:$4 sm:$0xff]  }
  0x17   :  { %670 = vmatprep.subr.bf16.mxu0 %v1644_v0  ;;  %1505 = vmatprep.subr.bf16.mxu1 %v1644_v0  ;;  %v1632_v2 = vld [vmem:[%s2457_s0 + $0x1c4] ss:$8 sps:$4 sm:$0xff]   ;;  %v1634_v4 = vld [vmem:[%s2457_s0 + $0x1c0] ss:$8 sps:$4 sm:$0xff]   ;;  %v1635_v6 = vld [vmem:[%s2457_s0 + $0x1d4] ss:$8 sps:$4 sm:$0xff]  }
  0x18   :  { %v1607_v7 = vld [vmem:[%s2457_s0 + $0xd0] ss:$8 sps:$4 sm:$0xff]   ;;  %v1638_v10 = vld [vmem:[%s2457_s0 + $0x1e4] ss:$8 sps:$4 sm:$0xff]  }
  0x1a   :  { %671 = vmatpush1.bf16.msra.mxu0 %v1538_v8  ;;  %1521 = vmatpush1.bf16.msra.mxu1 %v1538_v8  ;;  %v1637_v8 = vld [vmem:[%s2457_s0 + $0x1d0] ss:$8 sps:$4 sm:$0xff]  }
  0x1b   :  { %672 = vmatprep.subr.bf16.mxu0 %v1644_v0  ;;  %1506 = vmatprep.subr.bf16.mxu1 %v1644_v0 }
  0x1e   :  { %673 = vmatpush1.bf16.msra.mxu0 %v1539_v9  ;;  %1522 = vmatpush1.bf16.msra.mxu1 %v1539_v9  ;;  %v1611_v9 = vld [vmem:[%s2457_s0 + $0xe4] ss:$8 sps:$4 sm:$0xff]  }
  0x1f   :  { %674 = vmatprep.subr.bf16.mxu0 %v1644_v0  ;;  %1507 = vmatprep.subr.bf16.mxu1 %v1644_v0 }
  0x22   :  { %675 = vmatpush2.bf16.msra.mxu0 %v1540_v11  ;;  %1523 = vmatpush2.bf16.msra.mxu1 %v1540_v11  ;;  %v1613_v11 = vld [vmem:[%s2457_s0 + $0xe0] ss:$8 sps:$4 sm:$0xff]  }
  0x23   :  { %676 = vmatprep.subr.bf16.mxu0 %v1644_v0  ;;  %1508 = vmatprep.subr.bf16.mxu1 %v1644_v0 }
  0x26   :  { %677 = vmatpush2.bf16.msra.mxu0 %v1541_v12  ;;  %1524 = vmatpush2.bf16.msra.mxu1 %v1541_v12  ;;  %v1640_v12 = vld [vmem:[%s2457_s0 + $0x1e0] ss:$8 sps:$4 sm:$0xff]  }
  0x27   :  { %678 = vmatprep.subr.bf16.mxu0 %v1644_v0  ;;  %1509 = vmatprep.subr.bf16.mxu1 %v1644_v0 }
  0x2a   :  { %679 = vmatpush2.bf16.msra.mxu0 %v1542_v13  ;;  %1525 = vmatpush2.bf16.msra.mxu1 %v1542_v13  ;;  %v1617_v13 = vld [vmem:[%s2457_s0 + $0xf4] ss:$8 sps:$4 sm:$0xff]  }
  0x2b   :  { %680 = vmatprep.subr.bf16.mxu0 %v1644_v0  ;;  %1510 = vmatprep.subr.bf16.mxu1 %v1644_v0 }
  0x2e   :  { %681 = vmatpush2.bf16.msra.mxu0 %v1543_v14  ;;  %1526 = vmatpush2.bf16.msra.mxu1 %v1543_v14  ;;  %v1641_v14 = vld [vmem:[%s2457_s0 + $0x1f4] ss:$8 sps:$4 sm:$0xff]  }
  0x2f   :  { %682 = vmatprep.subr.bf16.mxu0 %v1644_v0  ;;  %1511 = vmatprep.subr.bf16.mxu1 %v1644_v0 }
  0x32   :  { %683 = vmatpush2.bf16.msra.mxu0 %v1544_v15  ;;  %1527 = vmatpush2.bf16.msra.mxu1 %v1544_v15  ;;  %v1619_v15 = vld [vmem:[%s2457_s0 + $0xf0] ss:$8 sps:$4 sm:$0xff]  }
  0x33   :  { %684 = vmatprep.subr.bf16.mxu0 %v1644_v0  ;;  %1512 = vmatprep.subr.bf16.mxu1 %v1644_v0 }
  0x36   :  { %685 = vmatpush2.bf16.msra.mxu0 %v1545_v16  ;;  %1528 = vmatpush2.bf16.msra.mxu1 %v1545_v16  ;;  %v1643_v16 = vld [vmem:[%s2457_s0 + $0x1f0] ss:$8 sps:$4 sm:$0xff]  }
  0x37   :  { %686 = vmatprep.subr.bf16.mxu0 %v1644_v0  ;;  %1513 = vmatprep.subr.bf16.mxu1 %v1644_v0 }
  0x3a   :  { %687 = vmatpush2.bf16.msra.mxu0 %v1546_v17  ;;  %1529 = vmatpush2.bf16.msra.mxu1 %v1546_v17 }
  0x3b   :  { %688 = vmatprep.subr.bf16.mxu0 %v1644_v0  ;;  %1514 = vmatprep.subr.bf16.mxu1 %v1644_v0  ;;  %v1631_v0 = vld [vmem:[%s2457_s0 + $0x1b0] ss:$8 sps:$4 sm:$0xff]  }
  0x3e   :  { %689 = vmatpush2.bf16.msra.mxu0 %v1547_v18  ;;  %1530 = vmatpush2.bf16.msra.mxu1 %v1547_v18 }
  0x41   :  { %691 = vmatmul.mubr.bf16.vlgmr.msra.gmra.mxu0 %v1548_v19  ;;  %819 = vmatmul.mubr.bf16.vlgmr.msra.gmra.mxu1 %v1572_v20 }
  0x42   :  { %698 = vmatprep.mubr.bf16.mxu0 %v1551_v21  ;;  %826 = vmatprep.mubr.bf16.mxu1 %v1578_v22 }
  0x49   :  { %699 = vmatmul.mubr.bf16.gmra.mxu0 %v1553_v23  ;;  %827 = vmatmul.mubr.bf16.gmra.mxu1 %v1580_v24 }
  0x4a   :  { %706 = vmatprep.mubr.bf16.mxu0 %v1554_v25  ;;  %834 = vmatprep.mubr.bf16.mxu1 %v1584_v26 }
  0x51   :  { %707 = vmatmul.mubr.bf16.gmra.mxu0 %v1556_v27  ;;  %835 = vmatmul.mubr.bf16.gmra.mxu1 %v1586_v28 }
  0x52   :  { %714 = vmatprep.mubr.bf16.mxu0 %v1557_v29  ;;  %842 = vmatprep.mubr.bf16.mxu1 %v1590_v30 }
  0x59   :  { %715 = vmatmul.mubr.bf16.gmra.mxu0 %v1559_v31  ;;  %843 = vmatmul.mubr.bf16.gmra.mxu1 %v1592_v32 }
  0x5a   :  { %722 = vmatprep.mubr.bf16.mxu0 %v1560_v33  ;;  %850 = vmatprep.mubr.bf16.mxu1 %v1596_v34 }
  0x61   :  { %723 = vmatmul.mubr.bf16.gmra.mxu0 %v1562_v35  ;;  %851 = vmatmul.mubr.bf16.gmra.mxu1 %v1598_v36 }
  0x62   :  { %730 = vmatprep.mubr.bf16.mxu0 %v1563_v37  ;;  %858 = vmatprep.mubr.bf16.mxu1 %v1602_v38 }
  0x69   :  { %731 = vmatmul.mubr.bf16.gmra.mxu0 %v1565_v39  ;;  %859 = vmatmul.mubr.bf16.gmra.mxu1 %v1604_v40 }
  0x6a   :  { %738 = vmatprep.mubr.bf16.mxu0 %v1566_v41  ;;  %866 = vmatprep.mubr.bf16.mxu1 %v1608_v42 }
  0x71   :  { %739 = vmatmul.mubr.bf16.gmra.mxu0 %v1568_v43  ;;  %867 = vmatmul.mubr.bf16.gmra.mxu1 %v1610_v44 }
  0x72   :  { %746 = vmatprep.mubr.bf16.mxu0 %v1569_v45  ;;  %874 = vmatprep.mubr.bf16.mxu1 %v1614_v46 }
  0x79   :  { %747 = vmatmul.mubr.bf16.gmra.mxu0 %v1571_v47  ;;  %875 = vmatmul.mubr.bf16.gmra.mxu1 %v1616_v48 }
  0x7a   :  { %754 = vmatprep.mubr.bf16.mxu0 %v1575_v49  ;;  %882 = vmatprep.mubr.bf16.mxu1 %v1620_v50 }
  0x81   :  { %755 = vmatmul.mubr.bf16.gmra.mxu0 %v1577_v51  ;;  %883 = vmatmul.mubr.bf16.gmra.mxu1 %v1622_v52 }
  0x82   :  { %762 = vmatprep.mubr.bf16.mxu0 %v1581_v53  ;;  %890 = vmatprep.mubr.bf16.mxu1 %v1623_v54 }
  0x89   :  { %763 = vmatmul.mubr.bf16.gmra.mxu0 %v1583_v55  ;;  %891 = vmatmul.mubr.bf16.gmra.mxu1 %v1625_v56 }
  0x8a   :  { %770 = vmatprep.mubr.bf16.mxu0 %v1587_v57  ;;  %898 = vmatprep.mubr.bf16.mxu1 %v1626_v58 }
  0x91   :  { %771 = vmatmul.mubr.bf16.gmra.mxu0 %v1589_v59  ;;  %899 = vmatmul.mubr.bf16.gmra.mxu1 %v1628_v60 }
  0x92   :  { %778 = vmatprep.mubr.bf16.mxu0 %v1593_v61  ;;  %906 = vmatprep.mubr.bf16.mxu1 %v1629_v62 }
  0x99   :  { %779 = vmatmul.mubr.bf16.gmra.mxu0 %v1595_v63  ;;  %907 = vmatmul.mubr.bf16.gmra.mxu1 %v1631_v0 }
  0x9a   :  { %786 = vmatprep.mubr.bf16.mxu0 %v1599_v1  ;;  %914 = vmatprep.mubr.bf16.mxu1 %v1632_v2 }
  0xa1   :  { %787 = vmatmul.mubr.bf16.gmra.mxu0 %v1601_v3  ;;  %915 = vmatmul.mubr.bf16.gmra.mxu1 %v1634_v4 }
  0xa2   :  { %794 = vmatprep.mubr.bf16.mxu0 %v1605_v5  ;;  %922 = vmatprep.mubr.bf16.mxu1 %v1635_v6 }
  0xa9   :  { %795 = vmatmul.mubr.bf16.gmra.mxu0 %v1607_v7  ;;  %923 = vmatmul.mubr.bf16.gmra.mxu1 %v1637_v8 }
  0xaa   :  { %802 = vmatprep.mubr.bf16.mxu0 %v1611_v9  ;;  %930 = vmatprep.mubr.bf16.mxu1 %v1638_v10 }
  0xb1   :  { %803 = vmatmul.mubr.bf16.gmra.mxu0 %v1613_v11  ;;  %931 = vmatmul.mubr.bf16.gmra.mxu1 %v1640_v12 }
  0xb2   :  { %810 = vmatprep.mubr.bf16.mxu0 %v1617_v13  ;;  %938 = vmatprep.mubr.bf16.mxu1 %v1641_v14 }
  0xb9   :  { %811 = vmatmul.mubr.bf16.gmra.mxu0 %v1619_v15  ;;  %939 = vmatmul.mubr.bf16.gmra.mxu1 %v1643_v16 }
 0x101   :  { %v1937_v17 = vpop.f32.mrf.mxu0  ;;  %v1939_v18 = vpop.f32.mrf.mxu1 }
 0x102   :  { %1142 = vst [vmem:[%s2458_s2] sm:$0xff] %v1937_v17  ;;  %1174 = vst [vmem:[%s2458_s2 + $0x100] sm:$0xff] %v1939_v18 }
 0x103   :  { %v694_v19 = vpop.f32.mrf.mxu0  ;;  %v822_v20 = vpop.f32.mrf.mxu1 }
 0x105   :  { %v1949_v21 = vpop.f32.mrf.mxu0  ;;  %v1951_v22 = vpop.f32.mrf.mxu1 }
 0x106   :  { %1143 = vst [vmem:[%s2458_s2 + $0x8] sm:$0xff] %v1949_v21  ;;  %1175 = vst [vmem:[%s2458_s2 + $0x108] sm:$0xff] %v1951_v22  ;;  %v1276_v19 = vmul.f32 %v1949_v21, %v1949_v21 }
 0x107   :  { %v697_v23 = vpop.f32.mrf.mxu0  ;;  %v825_v24 = vpop.f32.mrf.mxu1 }
 0x108   :  { %v1275_v24 = vmul.f32 %v1937_v17, %v1937_v17 }
 0x109   :  { %v1961_v25 = vpop.f32.mrf.mxu0  ;;  %v1963_v26 = vpop.f32.mrf.mxu1 }
 0x10a   :  { %1144 = vst [vmem:[%s2458_s2 + $0x10] sm:$0xff] %v1961_v25  ;;  %1176 = vst [vmem:[%s2458_s2 + $0x110] sm:$0xff] %v1963_v26 }
 0x10b   :  { %v702_v27 = vpop.f32.mrf.mxu0  ;;  %v830_v28 = vpop.f32.mrf.mxu1 }
 0x10c   :  { %v1206_v27 = vadd.f32 %v1949_v21, %v1937_v17  ;;  %v1277_v28 = vmul.f32 %v1961_v25, %v1961_v25 }
 0x10d   :  { %v1973_v29 = vpop.f32.mrf.mxu0  ;;  %v1975_v30 = vpop.f32.mrf.mxu1 }
 0x10e   :  { %1145 = vst [vmem:[%s2458_s2 + $0x18] sm:$0xff] %v1973_v29  ;;  %1177 = vst [vmem:[%s2458_s2 + $0x118] sm:$0xff] %v1975_v30  ;;  %v1278_v17 = vmul.f32 %v1973_v29, %v1973_v29 }
 0x10f   :  { %v705_v31 = vpop.f32.mrf.mxu0  ;;  %v833_v32 = vpop.f32.mrf.mxu1 }
 0x111   :  { %v1985_v33 = vpop.f32.mrf.mxu0  ;;  %v1987_v34 = vpop.f32.mrf.mxu1 }
 0x112   :  { %1146 = vst [vmem:[%s2458_s2 + $0x20] sm:$0xff] %v1985_v33  ;;  %1178 = vst [vmem:[%s2458_s2 + $0x120] sm:$0xff] %v1987_v34 }
 0x113   :  { %v710_v35 = vpop.f32.mrf.mxu0  ;;  %v838_v36 = vpop.f32.mrf.mxu1 }
 0x114   :  { %v1339_v35 = vadd.f32 %v1276_v19, %v1275_v24  ;;  %v1207_v36 = vadd.f32 %v1206_v27, %v1961_v25 }
 0x115   :  { %v1997_v37 = vpop.f32.mrf.mxu0  ;;  %v1999_v38 = vpop.f32.mrf.mxu1 }
 0x116   :  { %1147 = vst [vmem:[%s2458_s2 + $0x28] sm:$0xff] %v1997_v37  ;;  %1179 = vst [vmem:[%s2458_s2 + $0x128] sm:$0xff] %v1999_v38 }
 0x117   :  { %v713_v39 = vpop.f32.mrf.mxu0  ;;  %v841_v40 = vpop.f32.mrf.mxu1 }
 0x118   :  { %v1340_v40 = vadd.f32 %v1339_v35, %v1277_v28 }
 0x119   :  { %v2009_v41 = vpop.f32.mrf.mxu0  ;;  %v2011_v42 = vpop.f32.mrf.mxu1 }
 0x11a   :  { %1148 = vst [vmem:[%s2458_s2 + $0x30] sm:$0xff] %v2009_v41  ;;  %1180 = vst [vmem:[%s2458_s2 + $0x130] sm:$0xff] %v2011_v42 }
 0x11b   :  { %v718_v43 = vpop.f32.mrf.mxu0  ;;  %v846_v44 = vpop.f32.mrf.mxu1 }
 0x11c   :  { %v1208_v43 = vadd.f32 %v1207_v36, %v1973_v29  ;;  %v1279_v44 = vmul.f32 %v1985_v33, %v1985_v33  ;;  %v1280_v29 = vmul.f32 %v1997_v37, %v1997_v37 }
 0x11d   :  { %v2021_v45 = vpop.f32.mrf.mxu0  ;;  %v2023_v46 = vpop.f32.mrf.mxu1 }
 0x11e   :  { %1149 = vst [vmem:[%s2458_s2 + $0x38] sm:$0xff] %v2021_v45  ;;  %1181 = vst [vmem:[%s2458_s2 + $0x138] sm:$0xff] %v2023_v46 }
 0x11f   :  { %v721_v47 = vpop.f32.mrf.mxu0  ;;  %v849_v48 = vpop.f32.mrf.mxu1 }
 0x120   :  { %v1341_v48 = vadd.f32 %v1340_v40, %v1278_v17 }
 0x121   :  { %v2033_v49 = vpop.f32.mrf.mxu0  ;;  %v2035_v50 = vpop.f32.mrf.mxu1 }
 0x122   :  { %1150 = vst [vmem:[%s2458_s2 + $0x40] sm:$0xff] %v2033_v49  ;;  %1182 = vst [vmem:[%s2458_s2 + $0x140] sm:$0xff] %v2035_v50 }
 0x123   :  { %v726_v51 = vpop.f32.mrf.mxu0  ;;  %v854_v52 = vpop.f32.mrf.mxu1 }
 0x124   :  { %v1209_v51 = vadd.f32 %v1208_v43, %v1985_v33 }
 0x125   :  { %v2045_v53 = vpop.f32.mrf.mxu0  ;;  %v2047_v54 = vpop.f32.mrf.mxu1 }
 0x126   :  { %1151 = vst [vmem:[%s2458_s2 + $0x48] sm:$0xff] %v2045_v53  ;;  %1183 = vst [vmem:[%s2458_s2 + $0x148] sm:$0xff] %v2047_v54 }
 0x127   :  { %v729_v55 = vpop.f32.mrf.mxu0  ;;  %v857_v56 = vpop.f32.mrf.mxu1 }
 0x128   :  { %v1342_v56 = vadd.f32 %v1341_v48, %v1279_v44 }
 0x129   :  { %v2057_v57 = vpop.f32.mrf.mxu0  ;;  %v2059_v58 = vpop.f32.mrf.mxu1 }
 0x12a   :  { %1152 = vst [vmem:[%s2458_s2 + $0x50] sm:$0xff] %v2057_v57  ;;  %1184 = vst [vmem:[%s2458_s2 + $0x150] sm:$0xff] %v2059_v58 }
 0x12b   :  { %v734_v59 = vpop.f32.mrf.mxu0  ;;  %v862_v60 = vpop.f32.mrf.mxu1 }
 0x12c   :  { %v1210_v59 = vadd.f32 %v1209_v51, %v1997_v37  ;;  %v1281_v60 = vmul.f32 %v2009_v41, %v2009_v41  ;;  %v1282_v37 = vmul.f32 %v2021_v45, %v2021_v45 }
 0x12d   :  { %v2069_v61 = vpop.f32.mrf.mxu0  ;;  %v2071_v62 = vpop.f32.mrf.mxu1 }
 0x12e   :  { %1153 = vst [vmem:[%s2458_s2 + $0x58] sm:$0xff] %v2069_v61  ;;  %1185 = vst [vmem:[%s2458_s2 + $0x158] sm:$0xff] %v2071_v62 }
 0x12f   :  { %v737_v63 = vpop.f32.mrf.mxu0  ;;  %v865_v0 = vpop.f32.mrf.mxu1 }
 0x130   :  { %v1343_v0 = vadd.f32 %v1342_v56, %v1280_v29 }
 0x131   :  { %v2081_v1 = vpop.f32.mrf.mxu0  ;;  %v2083_v2 = vpop.f32.mrf.mxu1 }
 0x132   :  { %1154 = vst [vmem:[%s2458_s2 + $0x60] sm:$0xff] %v2081_v1  ;;  %1186 = vst [vmem:[%s2458_s2 + $0x160] sm:$0xff] %v2083_v2 }
 0x133   :  { %v742_v3 = vpop.f32.mrf.mxu0  ;;  %v870_v4 = vpop.f32.mrf.mxu1 }
 0x134   :  { %v1211_v3 = vadd.f32 %v1210_v59, %v2009_v41 }
 0x135   :  { %v2093_v5 = vpop.f32.mrf.mxu0  ;;  %v2095_v6 = vpop.f32.mrf.mxu1 }
 0x136   :  { %1155 = vst [vmem:[%s2458_s2 + $0x68] sm:$0xff] %v2093_v5  ;;  %1187 = vst [vmem:[%s2458_s2 + $0x168] sm:$0xff] %v2095_v6 }
 0x137   :  { %v745_v7 = vpop.f32.mrf.mxu0  ;;  %v873_v8 = vpop.f32.mrf.mxu1 }
 0x138   :  { %v1344_v8 = vadd.f32 %v1343_v0, %v1281_v60 }
 0x139   :  { %v2105_v9 = vpop.f32.mrf.mxu0  ;;  %v2107_v10 = vpop.f32.mrf.mxu1 }
 0x13a   :  { %1156 = vst [vmem:[%s2458_s2 + $0x70] sm:$0xff] %v2105_v9  ;;  %1188 = vst [vmem:[%s2458_s2 + $0x170] sm:$0xff] %v2107_v10 }
 0x13b   :  { %v750_v11 = vpop.f32.mrf.mxu0  ;;  %v878_v12 = vpop.f32.mrf.mxu1 }
 0x13c   :  { %v1212_v11 = vadd.f32 %v1211_v3, %v2021_v45  ;;  %v1283_v12 = vmul.f32 %v2033_v49, %v2033_v49  ;;  %v1284_v45 = vmul.f32 %v2045_v53, %v2045_v53 }
 0x13d   :  { %v2117_v13 = vpop.f32.mrf.mxu0  ;;  %v2119_v14 = vpop.f32.mrf.mxu1 }
 0x13e   :  { %1157 = vst [vmem:[%s2458_s2 + $0x78] sm:$0xff] %v2117_v13  ;;  %1189 = vst [vmem:[%s2458_s2 + $0x178] sm:$0xff] %v2119_v14  ;;  %v1213_v19 = vadd.f32 %v1212_v11, %v2033_v49 }
 0x13f   :  { %v753_v15 = vpop.f32.mrf.mxu0  ;;  %v881_v16 = vpop.f32.mrf.mxu1 }
 0x140   :  { %v1345_v16 = vadd.f32 %v1344_v8, %v1282_v37 }
 0x141   :  { %v2131_v20 = vpop.f32.mrf.mxu0  ;;  %v2133_v23 = vpop.f32.mrf.mxu1 }
 0x142   :  { %1158 = vst [vmem:[%s2458_s2 + $0x80] sm:$0xff] %v2131_v20  ;;  %1190 = vst [vmem:[%s2458_s2 + $0x180] sm:$0xff] %v2133_v23  ;;  %v1346_v28 = vadd.f32 %v1345_v16, %v1283_v12 }
 0x143   :  { %v758_v31 = vpop.f32.mrf.mxu0  ;;  %v886_v32 = vpop.f32.mrf.mxu1 }
 0x144   :  { %v1214_v31 = vadd.f32 %v1213_v19, %v2045_v53  ;;  %v1285_v32 = vmul.f32 %v2057_v57, %v2057_v57  ;;  %v1347_v36 = vadd.f32 %v1346_v28, %v1284_v45  ;;  %v1286_v53 = vmul.f32 %v2069_v61, %v2069_v61 }
 0x145   :  { %v2152_v21 = vpop.f32.mrf.mxu0  ;;  %v2154_v39 = vpop.f32.mrf.mxu1 }
 0x146   :  { %1159 = vst [vmem:[%s2458_s2 + $0x88] sm:$0xff] %v2152_v21  ;;  %1191 = vst [vmem:[%s2458_s2 + $0x188] sm:$0xff] %v2154_v39  ;;  %v1215_v17 = vadd.f32 %v1214_v31, %v2057_v57  ;;  %v1348_v44 = vadd.f32 %v1347_v36, %v1285_v32 }
 0x147   :  { %v761_v25 = vpop.f32.mrf.mxu0  ;;  %v889_v47 = vpop.f32.mrf.mxu1 }
 0x148   :  { %v1216_v25 = vadd.f32 %v1215_v17, %v2069_v61  ;;  %v1287_v47 = vmul.f32 %v2081_v1, %v2081_v1  ;;  %v1349_v51 = vadd.f32 %v1348_v44, %v1286_v53  ;;  %v1288_v61 = vmul.f32 %v2093_v5, %v2093_v5 }
 0x149   :  { %v2170_v52 = vpop.f32.mrf.mxu0  ;;  %v2172_v55 = vpop.f32.mrf.mxu1 }
 0x14a   :  { %1160 = vst [vmem:[%s2458_s2 + $0x90] sm:$0xff] %v2170_v52  ;;  %1192 = vst [vmem:[%s2458_s2 + $0x190] sm:$0xff] %v2172_v55  ;;  %v1217_v29 = vadd.f32 %v1216_v25, %v2081_v1  ;;  %v1350_v60 = vadd.f32 %v1349_v51, %v1287_v47 }
 0x14b   :  { %v766_v33 = vpop.f32.mrf.mxu0  ;;  %v894_v63 = vpop.f32.mrf.mxu1 }
 0x14c   :  { %v1218_v33 = vadd.f32 %v1217_v29, %v2093_v5  ;;  %v1289_v63 = vmul.f32 %v2105_v9, %v2105_v9  ;;  %v1351_v3 = vadd.f32 %v1350_v60, %v1288_v61  ;;  %v1290_v5 = vmul.f32 %v2117_v13, %v2117_v13 }
 0x14d   :  { %v2188_v4 = vpop.f32.mrf.mxu0  ;;  %v2190_v7 = vpop.f32.mrf.mxu1 }
 0x14e   :  { %1161 = vst [vmem:[%s2458_s2 + $0x98] sm:$0xff] %v2188_v4  ;;  %1193 = vst [vmem:[%s2458_s2 + $0x198] sm:$0xff] %v2190_v7  ;;  %v1219_v37 = vadd.f32 %v1218_v33, %v2105_v9  ;;  %v1352_v12 = vadd.f32 %v1351_v3, %v1289_v63 }
 0x14f   :  { %v769_v41 = vpop.f32.mrf.mxu0  ;;  %v897_v15 = vpop.f32.mrf.mxu1 }
 0x150   :  { %v1220_v41 = vadd.f32 %v1219_v37, %v2117_v13  ;;  %v1291_v15 = vmul.f32 %v2131_v20, %v2131_v20  ;;  %v1353_v19 = vadd.f32 %v1352_v12, %v1290_v5  ;;  %v1292_v13 = vmul.f32 %v2152_v21, %v2152_v21 }
 0x151   :  { %v2206_v24 = vpop.f32.mrf.mxu0  ;;  %v2208_v27 = vpop.f32.mrf.mxu1 }
 0x152   :  { %1162 = vst [vmem:[%s2458_s2 + $0xa0] sm:$0xff] %v2206_v24  ;;  %1194 = vst [vmem:[%s2458_s2 + $0x1a0] sm:$0xff] %v2208_v27  ;;  %v1221_v45 = vadd.f32 %v1220_v41, %v2131_v20  ;;  %v1354_v32 = vadd.f32 %v1353_v19, %v1291_v15 }
 0x153   :  { %v774_v49 = vpop.f32.mrf.mxu0  ;;  %v902_v35 = vpop.f32.mrf.mxu1 }
 0x154   :  { %v1222_v49 = vadd.f32 %v1221_v45, %v2152_v21  ;;  %v1293_v35 = vmul.f32 %v2170_v52, %v2170_v52  ;;  %v1355_v17 = vadd.f32 %v1354_v32, %v1292_v13  ;;  %v1294_v21 = vmul.f32 %v2188_v4, %v2188_v4 }
 0x155   :  { %v2224_v40 = vpop.f32.mrf.mxu0  ;;  %v2226_v43 = vpop.f32.mrf.mxu1 }
 0x156   :  { %1163 = vst [vmem:[%s2458_s2 + $0xa8] sm:$0xff] %v2224_v40  ;;  %1195 = vst [vmem:[%s2458_s2 + $0x1a8] sm:$0xff] %v2226_v43  ;;  %v1223_v53 = vadd.f32 %v1222_v49, %v2170_v52  ;;  %v1356_v47 = vadd.f32 %v1355_v17, %v1293_v35 }
 0x157   :  { %v777_v57 = vpop.f32.mrf.mxu0  ;;  %v905_v48 = vpop.f32.mrf.mxu1 }
 0x158   :  { %v1224_v57 = vadd.f32 %v1223_v53, %v2188_v4  ;;  %v1295_v48 = vmul.f32 %v2206_v24, %v2206_v24  ;;  %v1357_v29 = vadd.f32 %v1356_v47, %v1294_v21  ;;  %v1296_v4 = vmul.f32 %v2224_v40, %v2224_v40 }
 0x159   :  { %v780_v56 = vpop.f32.mrf.mxu0  ;;  %v2242_v59 = vpop.f32.mrf.mxu1 }
 0x15a   :  { %1164 = vst [vmem:[%s2458_s2 + $0xb0] sm:$0xff] %v780_v56  ;;  %1196 = vst [vmem:[%s2458_s2 + $0x1b0] sm:$0xff] %v2242_v59  ;;  %v1225_v61 = vadd.f32 %v1224_v57, %v2206_v24  ;;  %v1358_v63 = vadd.f32 %v1357_v29, %v1295_v48 }
 0x15b   :  { %v782_v1 = vpop.f32.mrf.mxu0  ;;  %v910_v0 = vpop.f32.mrf.mxu1 }
 0x15c   :  { %v1226_v1 = vadd.f32 %v1225_v61, %v2224_v40  ;;  %v1297_v0 = vmul.f32 %v780_v56, %v780_v56  ;;  %v1359_v37 = vadd.f32 %v1358_v63, %v1296_v4 }
 0x15d   :  { %v783_v8 = vpop.f32.mrf.mxu0  ;;  %v2257_v11 = vpop.f32.mrf.mxu1 }
 0x15e   :  { %1165 = vst [vmem:[%s2458_s2 + $0xb8] sm:$0xff] %v783_v8  ;;  %1197 = vst [vmem:[%s2458_s2 + $0x1b8] sm:$0xff] %v2257_v11  ;;  %v1227_v5 = vadd.f32 %v1226_v1, %v780_v56  ;;  %v1298_v12 = vmul.f32 %v783_v8, %v783_v8 }
 0x15f   :  { %v785_v9 = vpop.f32.mrf.mxu0  ;;  %v913_v16 = vpop.f32.mrf.mxu1 }
 0x160   :  { %v1360_v9 = vadd.f32 %v1359_v37, %v1297_v0  ;;  %v1228_v40 = vadd.f32 %v1227_v5, %v783_v8 }
 0x161   :  { %v788_v28 = vpop.f32.mrf.mxu0  ;;  %v2272_v31 = vpop.f32.mrf.mxu1 }
 0x162   :  { %1166 = vst [vmem:[%s2458_s2 + $0xc0] sm:$0xff] %v788_v28  ;;  %1198 = vst [vmem:[%s2458_s2 + $0x1c0] sm:$0xff] %v2272_v31  ;;  %v1299_v16 = vmul.f32 %v788_v28, %v788_v28  ;;  %v1361_v13 = vadd.f32 %v1360_v9, %v1298_v12  ;;  %v1229_v56 = vadd.f32 %v1228_v40, %v788_v28 }
 0x163   :  { %v790_v20 = vpop.f32.mrf.mxu0  ;;  %v918_v36 = vpop.f32.mrf.mxu1 }
 0x164   :  { %v1362_v20 = vadd.f32 %v1361_v13, %v1299_v16 }
 0x165   :  { %v791_v44 = vpop.f32.mrf.mxu0  ;;  %v2287_v25 = vpop.f32.mrf.mxu1 }
 0x166   :  { %1167 = vst [vmem:[%s2458_s2 + $0xc8] sm:$0xff] %v791_v44  ;;  %1199 = vst [vmem:[%s2458_s2 + $0x1c8] sm:$0xff] %v2287_v25  ;;  %v1300_v32 = vmul.f32 %v791_v44, %v791_v44  ;;  %v1230_v8 = vadd.f32 %v1229_v56, %v791_v44 }
 0x167   :  { %v793_v52 = vpop.f32.mrf.mxu0  ;;  %v921_v51 = vpop.f32.mrf.mxu1 }
 0x168   :  { %v1363_v21 = vadd.f32 %v1362_v20, %v1300_v32 }
 0x169   :  { %v796_v60 = vpop.f32.mrf.mxu0  ;;  %v2302_v33 = vpop.f32.mrf.mxu1 }
 0x16a   :  { %1168 = vst [vmem:[%s2458_s2 + $0xd0] sm:$0xff] %v796_v60  ;;  %1200 = vst [vmem:[%s2458_s2 + $0x1d0] sm:$0xff] %v2302_v33  ;;  %v1301_v36 = vmul.f32 %v796_v60, %v796_v60  ;;  %v1231_v28 = vadd.f32 %v1230_v8, %v796_v60 }
 0x16b   :  { %v798_v24 = vpop.f32.mrf.mxu0  ;;  %v926_v3 = vpop.f32.mrf.mxu1 }
 0x16c   :  { %v1364_v52 = vadd.f32 %v1363_v21, %v1301_v36  ;;  %v1308_v36 = vmul.f32 %v1951_v22, %v1951_v22  ;;  %v1309_v21 = vmul.f32 %v1963_v26, %v1963_v26 }
 0x16d   :  { %v799_v41 = vpop.f32.mrf.mxu0  ;;  %v2312_v15 = vpop.f32.mrf.mxu1 }
 0x16e   :  { %1169 = vst [vmem:[%s2458_s2 + $0xd8] sm:$0xff] %v799_v41  ;;  %1201 = vst [vmem:[%s2458_s2 + $0x1d8] sm:$0xff] %v2312_v15  ;;  %v1302_v47 = vmul.f32 %v799_v41, %v799_v41  ;;  %v1232_v44 = vadd.f32 %v1231_v28, %v799_v41 }
 0x16f   :  { %v801_v19 = vpop.f32.mrf.mxu0  ;;  %v929_v45 = vpop.f32.mrf.mxu1 }
 0x170   :  { %v1365_v4 = vadd.f32 %v1364_v52, %v1302_v47 }
 0x171   :  { %v804_v49 = vpop.f32.mrf.mxu0  ;;  %v2321_v35 = vpop.f32.mrf.mxu1 }
 0x172   :  { %1170 = vst [vmem:[%s2458_s2 + $0xe0] sm:$0xff] %v804_v49  ;;  %1202 = vst [vmem:[%s2458_s2 + $0x1e0] sm:$0xff] %v2321_v35  ;;  %v1303_v51 = vmul.f32 %v804_v49, %v804_v49  ;;  %v1233_v60 = vadd.f32 %v1232_v44, %v804_v49  ;;  %v1307_v49 = vmul.f32 %v1939_v18, %v1939_v18 }
 0x173   :  { %v806_v17 = vpop.f32.mrf.mxu0  ;;  %v934_v53 = vpop.f32.mrf.mxu1 }
 0x174   :  { %v1366_v24 = vadd.f32 %v1365_v4, %v1303_v51 }
 0x175   :  { %v807_v57 = vpop.f32.mrf.mxu0  ;;  %v2330_v48 = vpop.f32.mrf.mxu1 }
 0x176   :  { %1171 = vst [vmem:[%s2458_s2 + $0xe8] sm:$0xff] %v807_v57  ;;  %1203 = vst [vmem:[%s2458_s2 + $0x1e8] sm:$0xff] %v2330_v48  ;;  %v1304_v63 = vmul.f32 %v807_v57, %v807_v57  ;;  %v1234_v3 = vadd.f32 %v1233_v60, %v807_v57  ;;  %v1310_v57 = vmul.f32 %v1975_v30, %v1975_v30 }
 0x177   :  { %v809_v29 = vpop.f32.mrf.mxu0  ;;  %v937_v61 = vpop.f32.mrf.mxu1 }
 0x178   :  { %v1367_v41 = vadd.f32 %v1366_v24, %v1304_v63 }
 0x179   :  { %v812_v1 = vpop.f32.mrf.mxu0  ;;  %v2339_v0 = vpop.f32.mrf.mxu1 }
 0x17a   :  { %1172 = vst [vmem:[%s2458_s2 + $0xf0] sm:$0xff] %v812_v1  ;;  %v1305_v37 = vmul.f32 %v812_v1, %v812_v1  ;;  %1204 = vst [vmem:[%s2458_s2 + $0x1f0] sm:$0xff] %v2339_v0  ;;  %v1235_v9 = vadd.f32 %v1234_v3, %v812_v1 }
 0x17b   :  { %v814_v5 = vpop.f32.mrf.mxu0  ;;  %v942_v12 = vpop.f32.mrf.mxu1 }
 0x17c   :  { %v1368_v19 = vadd.f32 %v1367_v41, %v1305_v37 }
 0x17d   :  { %v815_v40 = vpop.f32.mrf.mxu0  ;;  %v2348_v16 = vpop.f32.mrf.mxu1 }
 0x17e   :  { %1173 = vst [vmem:[%s2458_s2 + $0xf8] sm:$0xff] %v815_v40  ;;  %v1236_v45 = vadd.f32 %v1235_v9, %v815_v40  ;;  %v1306_v13 = vmul.f32 %v815_v40, %v815_v40  ;;  %1205 = vst [vmem:[%s2458_s2 + $0x1f8] sm:$0xff] %v2348_v16 }
 0x17f   :  { %v817_v56 = vpop.f32.mrf.mxu0  ;;  %v945_v32 = vpop.f32.mrf.mxu1 }
 0x180   :  { %v1237_v20 = vadd.f32 %v1236_v45, %v1939_v18  ;;  %v1369_v8 = vadd.f32 %v1368_v19, %v1306_v13  ;;  %v1311_v18 = vmul.f32 %v1987_v34, %v1987_v34 }
 0x182   :  { %v1238_v17 = vadd.f32 %v1237_v20, %v1951_v22  ;;  %v1370_v53 = vadd.f32 %v1369_v8, %v1307_v49  ;;  %v1312_v22 = vmul.f32 %v1999_v38, %v1999_v38 }
 0x184   :  { %v1239_v28 = vadd.f32 %v1238_v17, %v1963_v26  ;;  %v1371_v47 = vadd.f32 %v1370_v53, %v1308_v36  ;;  %v1313_v26 = vmul.f32 %v2011_v42, %v2011_v42 }
 0x186   :  { %v1240_v52 = vadd.f32 %v1239_v28, %v1975_v30  ;;  %v1372_v44 = vadd.f32 %v1371_v47, %v1309_v21  ;;  %v1314_v30 = vmul.f32 %v2023_v46, %v2023_v46  ;;  %v1324_v21 = vmul.f32 %v2154_v39, %v2154_v39 }
 0x188   :  { %v1241_v51 = vadd.f32 %v1240_v52, %v1987_v34  ;;  %v1373_v29 = vadd.f32 %v1372_v44, %v1310_v57  ;;  %v1315_v34 = vmul.f32 %v2035_v50, %v2035_v50  ;;  %v1325_v57 = vmul.f32 %v2172_v55, %v2172_v55 }
 0x189   :  { %v1326_v44 = vmul.f32 %v2190_v7, %v2190_v7 }
 0x18a   :  { %v1242_v61 = vadd.f32 %v1241_v51, %v1999_v38  ;;  %v1374_v4 = vadd.f32 %v1373_v29, %v1311_v18  ;;  %v1316_v38 = vmul.f32 %v2047_v54, %v2047_v54  ;;  %v1327_v51 = vmul.f32 %v2208_v27, %v2208_v27 }
 0x18c   :  { %v1243_v60 = vadd.f32 %v1242_v61, %v2011_v42  ;;  %v1375_v63 = vadd.f32 %v1374_v4, %v1312_v22  ;;  %v1317_v42 = vmul.f32 %v2059_v58, %v2059_v58  ;;  %v1328_v22 = vmul.f32 %v2226_v43, %v2226_v43 }
 0x18d   :  { %v1329_v4 = vmul.f32 %v2242_v59, %v2242_v59 }
 0x18e   :  { %v1244_v1 = vadd.f32 %v1243_v60, %v2023_v46  ;;  %v1376_v24 = vadd.f32 %v1375_v63, %v1313_v26  ;;  %v1318_v46 = vmul.f32 %v2071_v62, %v2071_v62  ;;  %v1330_v60 = vmul.f32 %v2257_v11, %v2257_v11 }
 0x190   :  { %v1377_v3 = vadd.f32 %v1376_v24, %v1314_v30  ;;  %v1245_v37 = vadd.f32 %v1244_v1, %v2035_v50  ;;  %v1319_v50 = vmul.f32 %v2083_v2, %v2083_v2  ;;  %v1331_v30 = vmul.f32 %v2272_v31, %v2272_v31 }
 0x191   :  { %v1332_v24 = vmul.f32 %v2287_v25, %v2287_v25 }
 0x192   :  { %v1246_v5 = vadd.f32 %v1245_v37, %v2047_v54  ;;  %v1378_v12 = vadd.f32 %v1377_v3, %v1315_v34  ;;  %v1320_v54 = vmul.f32 %v2095_v6, %v2095_v6  ;;  %v1333_v3 = vmul.f32 %v2302_v33, %v2302_v33 }
 0x194   :  { %v1247_v41 = vadd.f32 %v1246_v5, %v2059_v58  ;;  %v1379_v9 = vadd.f32 %v1378_v12, %v1316_v38  ;;  %v1321_v58 = vmul.f32 %v2107_v10, %v2107_v10  ;;  %v1334_v38 = vmul.f32 %v2312_v15, %v2312_v15 }
 0x195   :  { %v1335_v12 = vmul.f32 %v2321_v35, %v2321_v35 }
 0x196   :  { %v1248_v40 = vadd.f32 %v1247_v41, %v2071_v62  ;;  %v1380_v19 = vadd.f32 %v1379_v9, %v1317_v42  ;;  %v1322_v62 = vmul.f32 %v2119_v14, %v2119_v14  ;;  %v1336_v41 = vmul.f32 %v2330_v48, %v2330_v48 }
 0x198   :  { %v1249_v45 = vadd.f32 %v1248_v40, %v2083_v2  ;;  %v1381_v13 = vadd.f32 %v1380_v19, %v1318_v46  ;;  %v1323_v2 = vmul.f32 %v2133_v23, %v2133_v23  ;;  %v1337_v46 = vmul.f32 %v2339_v0, %v2339_v0 }
 0x199   :  { %v1338_v19 = vmul.f32 %v2348_v16, %v2348_v16 }
 0x19a   :  { %v1250_v56 = vadd.f32 %v1249_v45, %v2095_v6  ;;  %v1382_v32 = vadd.f32 %v1381_v13, %v1319_v50 }
 0x19c   :  { %v1251_v49 = vadd.f32 %v1250_v56, %v2107_v10  ;;  %v1383_v20 = vadd.f32 %v1382_v32, %v1320_v54 }
 0x19e   :  { %v1252_v8 = vadd.f32 %v1251_v49, %v2119_v14  ;;  %v1384_v36 = vadd.f32 %v1383_v20, %v1321_v58 }
 0x1a0   :  { %v1253_v17 = vadd.f32 %v1252_v8, %v2133_v23  ;;  %v1385_v53 = vadd.f32 %v1384_v36, %v1322_v62 }
 0x1a2   :  { %v1254_v6 = vadd.f32 %v1253_v17, %v2154_v39  ;;  %v1386_v28 = vadd.f32 %v1385_v53, %v1323_v2 }
 0x1a4   :  { %v1387_v10 = vadd.f32 %v1386_v28, %v1324_v21  ;;  %v1255_v47 = vadd.f32 %v1254_v6, %v2172_v55 }
 0x1a6   :  { %v1388_v14 = vadd.f32 %v1387_v10, %v1325_v57  ;;  %v1256_v52 = vadd.f32 %v1255_v47, %v2190_v7 }
 0x1a8   :  { %v1389_v23 = vadd.f32 %v1388_v14, %v1326_v44  ;;  %v1257_v18 = vadd.f32 %v1256_v52, %v2208_v27 }
 0x1aa   :  { %v1390_v39 = vadd.f32 %v1389_v23, %v1327_v51  ;;  %v1258_v29 = vadd.f32 %v1257_v18, %v2226_v43 }
 0x1ac   :  { %v1391_v61 = vadd.f32 %v1390_v39, %v1328_v22  ;;  %v1259_v55 = vadd.f32 %v1258_v29, %v2242_v59 }
 0x1ae   :  { %v1392_v26 = vadd.f32 %v1391_v61, %v1329_v4  ;;  %v1260_v7 = vadd.f32 %v1259_v55, %v2257_v11 }
 0x1b0   :  { %v1393_v63 = vadd.f32 %v1392_v26, %v1330_v60  ;;  %v1261_v27 = vadd.f32 %v1260_v7, %v2272_v31 }
 0x1b2   :  { %v1394_v1 = vadd.f32 %v1393_v63, %v1331_v30  ;;  %v1262_v43 = vadd.f32 %v1261_v27, %v2287_v25 }
 0x1b4   :  { %v1395_v34 = vadd.f32 %v1394_v1, %v1332_v24  ;;  %v1263_v59 = vadd.f32 %v1262_v43, %v2302_v33 }
 0x1b6   :  { %v1396_v37 = vadd.f32 %v1395_v34, %v1333_v3  ;;  %v1264_v11 = vadd.f32 %v1263_v59, %v2312_v15 }
 0x1b8   :  { %v1397_v5 = vadd.f32 %v1396_v37, %v1334_v38  ;;  %v1265_v31 = vadd.f32 %v1264_v11, %v2321_v35 }
 0x1ba   :  { %v1398_v42 = vadd.f32 %v1397_v5, %v1335_v12  ;;  %v1266_v25 = vadd.f32 %v1265_v31, %v2330_v48 }
 0x1bc   :  { %v1399_v9 = vadd.f32 %v1398_v42, %v1336_v41  ;;  %v1267_v33 = vadd.f32 %v1266_v25, %v2339_v0 }
 0x1be   :  { %v1400_v40 = vadd.f32 %v1399_v9, %v1337_v46  ;;  %v1268_v15 = vadd.f32 %v1267_v33, %v2348_v16 }
 0x1c0   :  { %v1269_v50 = vrot.slane %v1268_v15, 4  ;;  %v1401_v35 = vadd.f32 %v1400_v40, %v1338_v19 }
 0x1c2   :  { %v1270_v45 = vadd.f32 %v1269_v50, %v1268_v15  ;;  %v1402_v13 = vrot.slane %v1401_v35, 4 }
 0x1c4   :  { %v1271_v54 = vrot.slane %v1270_v45, 2  ;;  %v1403_v56 = vadd.f32 %v1402_v13, %v1401_v35 }
 0x1c6   :  { %v1272_v32 = vadd.f32 %v1271_v54, %v1270_v45  ;;  %v1404_v48 = vrot.slane %v1403_v56, 2 }
 0x1c8   :  { %v1273_v58 = vrot.slane %v1272_v32, 1  ;;  %v1405_v49 = vadd.f32 %v1404_v48, %v1403_v56 }
 0x1ca   :  { %v1406_v20 = vrot.slane %v1405_v49, 1  ;;  %v1274_v62 = vadd.f32 %v1273_v58, %v1272_v32 }
 0x1cc   :  { %v1407_v0 = vadd.f32 %v1406_v20, %v1405_v49 }
 0x1ce   :  { %v1409_v8 = vsel %vm1408_vm0, %v1274_v62, %v1407_v0 }
 0x1cf   :  { %1410 = vst [vmem:[%s2459_s3] sm:$0x3] %v1409_v8 }

// kernel: generator_forward.40
= control target key start
LH: loop header
LB: loop body
LE: loop exit
PB: predicated region body
PF: predicated region fallthrough
CT: control target
= control target key end

     0   :  { %vm1216_vm0 = vcmask 1040384   ;;  %s1970_s1 = inlined_call_operand.vmem [shape: bf16[128,128], index: 1, kind: input, shape index: {}]   ;;  %s1971_s0 = inlined_call_operand.vmem [shape: bf16[512,128], index: 0, kind: input, shape index: {}]   ;;  %s1972_s2 = inlined_call_operand.vmem [shape: f32[512,128], index: 2, kind: output, shape index: {0}]   ;;  %s1973_s3 = inlined_call_operand.vmem [shape: f32[1,2,128], index: 3, kind: output, shape index: {1}]  }
   0x1   :  { %v1403_v0 = vld [vmem:[%s1970_s1 + $0x38] sm:$0xff]   ;;  %v1404_v1 = vld [vmem:[%s1970_s1 + $0x30] sm:$0xff]   ;;  %v1405_v2 = vld [vmem:[%s1970_s1 + $0x28] sm:$0xff]  }
   0x2   :  { %1307 = vmatprep.subr.bf16.mxu0 %v1403_v0  ;;  %1387 = vmatprep.subr.bf16.mxu1 %v1403_v0  ;;  %v1406_v3 = vld [vmem:[%s1970_s1 + $0x20] sm:$0xff]   ;;  %v1407_v5 = vld [vmem:[%s1970_s1 + $0x18] sm:$0xff]   ;;  %v1408_v6 = vld [vmem:[%s1970_s1 + $0x10] sm:$0xff]  }
   0x3   :  { %1308 = vmatpush3.bf16.msra.mxu0 %v1403_v0  ;;  %1395 = vmatpush3.bf16.msra.mxu1 %v1403_v0  ;;  %v1411_v4 = vld [vmem:[%s1971_s0] sm:$0xff]   ;;  %v1409_v7 = vld [vmem:[%s1970_s1 + $0x8] sm:$0xff]   ;;  %v1413_v11 = vld [vmem:[%s1971_s0 + $0x10] sm:$0xff]  }
   0x4   :  { %1309 = vmatprep.subr.bf16.mxu0 %v1404_v1  ;;  %1388 = vmatprep.subr.bf16.mxu1 %v1404_v1  ;;  %v1410_v8 = vld [vmem:[%s1970_s1] sm:$0xff]   ;;  %v1412_v10 = vld [vmem:[%s1971_s0 + $0x8] sm:$0xff]   ;;  %v1429_v13 = vld [vmem:[%s1971_s0 + $0x90] sm:$0xff]  }
   0x5   :  { %1323 = vmatprep.mubr.bf16.mxu0 %v1411_v4  ;;  %v1427_v9 = vld [vmem:[%s1971_s0 + $0x80] sm:$0xff]   ;;  %v1428_v12 = vld [vmem:[%s1971_s0 + $0x88] sm:$0xff]   ;;  %v1414_v14 = vld [vmem:[%s1971_s0 + $0x18] sm:$0xff]  }
   0x6   :  { %1355 = vmatprep.mubr.bf16.mxu1 %v1427_v9  ;;  %v1415_v15 = vld [vmem:[%s1971_s0 + $0x20] sm:$0xff]   ;;  %v1430_v16 = vld [vmem:[%s1971_s0 + $0x98] sm:$0xff]   ;;  %v1416_v18 = vld [vmem:[%s1971_s0 + $0x28] sm:$0xff]  }
   0x7   :  { %1310 = vmatpush3.bf16.msra.mxu0 %v1404_v1  ;;  %1396 = vmatpush3.bf16.msra.mxu1 %v1404_v1  ;;  %v1431_v17 = vld [vmem:[%s1971_s0 + $0xa0] sm:$0xff]   ;;  %v1432_v19 = vld [vmem:[%s1971_s0 + $0xa8] sm:$0xff]   ;;  %v1417_v20 = vld [vmem:[%s1971_s0 + $0x30] sm:$0xff]  }
   0x8   :  { %1311 = vmatprep.subr.bf16.mxu0 %v1405_v2  ;;  %1389 = vmatprep.subr.bf16.mxu1 %v1405_v2  ;;  %v1433_v21 = vld [vmem:[%s1971_s0 + $0xb0] sm:$0xff]   ;;  %v1418_v22 = vld [vmem:[%s1971_s0 + $0x38] sm:$0xff]   ;;  %v1419_v24 = vld [vmem:[%s1971_s0 + $0x40] sm:$0xff]  }
   0x9   :  { %v1434_v23 = vld [vmem:[%s1971_s0 + $0xb8] sm:$0xff]   ;;  %v1435_v25 = vld [vmem:[%s1971_s0 + $0xc0] sm:$0xff]   ;;  %v1420_v26 = vld [vmem:[%s1971_s0 + $0x48] sm:$0xff]  }
   0xa   :  { %v1436_v27 = vld [vmem:[%s1971_s0 + $0xc8] sm:$0xff]   ;;  %v1421_v28 = vld [vmem:[%s1971_s0 + $0x50] sm:$0xff]   ;;  %v1422_v30 = vld [vmem:[%s1971_s0 + $0x58] sm:$0xff]  }
   0xb   :  { %1312 = vmatpush3.bf16.msra.mxu0 %v1405_v2  ;;  %1397 = vmatpush3.bf16.msra.mxu1 %v1405_v2  ;;  %v1437_v29 = vld [vmem:[%s1971_s0 + $0xd0] sm:$0xff]   ;;  %v1438_v31 = vld [vmem:[%s1971_s0 + $0xd8] sm:$0xff]   ;;  %v1423_v32 = vld [vmem:[%s1971_s0 + $0x60] sm:$0xff]  }
   0xc   :  { %1313 = vmatprep.subr.bf16.mxu0 %v1406_v3  ;;  %1390 = vmatprep.subr.bf16.mxu1 %v1406_v3  ;;  %v1439_v33 = vld [vmem:[%s1971_s0 + $0xe0] sm:$0xff]   ;;  %v1424_v34 = vld [vmem:[%s1971_s0 + $0x68] sm:$0xff]   ;;  %v1425_v36 = vld [vmem:[%s1971_s0 + $0x70] sm:$0xff]  }
   0xd   :  { %v1440_v35 = vld [vmem:[%s1971_s0 + $0xe8] sm:$0xff]   ;;  %v1441_v37 = vld [vmem:[%s1971_s0 + $0xf0] sm:$0xff]   ;;  %v1426_v38 = vld [vmem:[%s1971_s0 + $0x78] sm:$0xff]  }
   0xe   :  { %v1442_v39 = vld [vmem:[%s1971_s0 + $0xf8] sm:$0xff]  }
   0xf   :  { %1314 = vmatpush3.bf16.msra.mxu0 %v1406_v3  ;;  %1398 = vmatpush3.bf16.msra.mxu1 %v1406_v3 }
  0x10   :  { %1315 = vmatprep.subr.bf16.mxu0 %v1407_v5  ;;  %1391 = vmatprep.subr.bf16.mxu1 %v1407_v5 }
  0x13   :  { %1316 = vmatpush3.bf16.msra.mxu0 %v1407_v5  ;;  %1399 = vmatpush3.bf16.msra.mxu1 %v1407_v5 }
  0x14   :  { %1317 = vmatprep.subr.bf16.mxu0 %v1408_v6  ;;  %1392 = vmatprep.subr.bf16.mxu1 %v1408_v6 }
  0x17   :  { %1318 = vmatpush3.bf16.msra.mxu0 %v1408_v6  ;;  %1400 = vmatpush3.bf16.msra.mxu1 %v1408_v6 }
  0x18   :  { %1319 = vmatprep.subr.bf16.mxu0 %v1409_v7  ;;  %1393 = vmatprep.subr.bf16.mxu1 %v1409_v7 }
  0x1b   :  { %1320 = vmatpush3.bf16.msra.mxu0 %v1409_v7  ;;  %1401 = vmatpush3.bf16.msra.mxu1 %v1409_v7 }
  0x1c   :  { %1321 = vmatprep.subr.bf16.mxu0 %v1410_v8  ;;  %1394 = vmatprep.subr.bf16.mxu1 %v1410_v8 }
  0x1f   :  { %1322 = vmatpush3.bf16.msra.mxu0 %v1410_v8  ;;  %1402 = vmatpush3.bf16.msra.mxu1 %v1410_v8 }
  0x22   :  { %1324 = vmatmul.mubr.bf16.vlgmr.msra.gmra.mxu0 %v1412_v10  ;;  %1356 = vmatmul.mubr.bf16.vlgmr.msra.gmra.mxu1 %v1428_v12 }
  0x23   :  { %1327 = vmatprep.mubr.bf16.mxu0 %v1413_v11  ;;  %1359 = vmatprep.mubr.bf16.mxu1 %v1429_v13 }
  0x2a   :  { %1328 = vmatmul.mubr.bf16.gmra.mxu0 %v1414_v14  ;;  %1360 = vmatmul.mubr.bf16.gmra.mxu1 %v1430_v16 }
  0x2b   :  { %1331 = vmatprep.mubr.bf16.mxu0 %v1415_v15  ;;  %1363 = vmatprep.mubr.bf16.mxu1 %v1431_v17 }
  0x32   :  { %1332 = vmatmul.mubr.bf16.gmra.mxu0 %v1416_v18  ;;  %1364 = vmatmul.mubr.bf16.gmra.mxu1 %v1432_v19 }
  0x33   :  { %1335 = vmatprep.mubr.bf16.mxu0 %v1417_v20  ;;  %1367 = vmatprep.mubr.bf16.mxu1 %v1433_v21 }
  0x3a   :  { %1336 = vmatmul.mubr.bf16.gmra.mxu0 %v1418_v22  ;;  %1368 = vmatmul.mubr.bf16.gmra.mxu1 %v1434_v23 }
  0x3b   :  { %1339 = vmatprep.mubr.bf16.mxu0 %v1419_v24  ;;  %1371 = vmatprep.mubr.bf16.mxu1 %v1435_v25 }
  0x42   :  { %1340 = vmatmul.mubr.bf16.gmra.mxu0 %v1420_v26  ;;  %1372 = vmatmul.mubr.bf16.gmra.mxu1 %v1436_v27 }
  0x43   :  { %1343 = vmatprep.mubr.bf16.mxu0 %v1421_v28  ;;  %1375 = vmatprep.mubr.bf16.mxu1 %v1437_v29 }
  0x4a   :  { %1344 = vmatmul.mubr.bf16.gmra.mxu0 %v1422_v30  ;;  %1376 = vmatmul.mubr.bf16.gmra.mxu1 %v1438_v31 }
  0x4b   :  { %1347 = vmatprep.mubr.bf16.mxu0 %v1423_v32  ;;  %1379 = vmatprep.mubr.bf16.mxu1 %v1439_v33 }
  0x52   :  { %1348 = vmatmul.mubr.bf16.gmra.mxu0 %v1424_v34  ;;  %1380 = vmatmul.mubr.bf16.gmra.mxu1 %v1440_v35 }
  0x53   :  { %1351 = vmatprep.mubr.bf16.mxu0 %v1425_v36  ;;  %1383 = vmatprep.mubr.bf16.mxu1 %v1441_v37 }
  0x5a   :  { %1352 = vmatmul.mubr.bf16.gmra.mxu0 %v1426_v38  ;;  %1384 = vmatmul.mubr.bf16.gmra.mxu1 %v1442_v39 }
  0xe2   :  { %v1325_v40 = vpop.f32.mrf.mxu0  ;;  %v1583_v41 = vpop.f32.mrf.mxu1 }
  0xe3   :  { %952 = vst [vmem:[%s1972_s2 + $0x10] sm:$0xff] %v1325_v40  ;;  %984 = vst [vmem:[%s1972_s2 + $0x110] sm:$0xff] %v1583_v41  ;;  %v1085_v53 = vmul.f32 %v1325_v40, %v1325_v40 }
  0xe4   :  { %v500_v42 = vpop.f32.mrf.mxu0  ;;  %v1592_v43 = vpop.f32.mrf.mxu1 }
  0xe5   :  { %950 = vst [vmem:[%s1972_s2] sm:$0xff] %v500_v42  ;;  %982 = vst [vmem:[%s1972_s2 + $0x100] sm:$0xff] %v1592_v43  ;;  %v1083_v48 = vmul.f32 %v500_v42, %v500_v42 }
  0xe6   :  { %v1326_v44 = vpop.f32.mrf.mxu0  ;;  %v1601_v45 = vpop.f32.mrf.mxu1 }
  0xe7   :  { %953 = vst [vmem:[%s1972_s2 + $0x18] sm:$0xff] %v1326_v44  ;;  %985 = vst [vmem:[%s1972_s2 + $0x118] sm:$0xff] %v1601_v45  ;;  %v1086_v58 = vmul.f32 %v1326_v44, %v1326_v44 }
  0xe8   :  { %v503_v46 = vpop.f32.mrf.mxu0  ;;  %v1610_v47 = vpop.f32.mrf.mxu1 }
  0xe9   :  { %951 = vst [vmem:[%s1972_s2 + $0x8] sm:$0xff] %v503_v46  ;;  %v1014_v49 = vadd.f32 %v503_v46, %v500_v42  ;;  %v1084_v50 = vmul.f32 %v503_v46, %v503_v46  ;;  %983 = vst [vmem:[%s1972_s2 + $0x108] sm:$0xff] %v1610_v47 }
  0xea   :  { %v1329_v51 = vpop.f32.mrf.mxu0  ;;  %v1619_v52 = vpop.f32.mrf.mxu1 }
  0xeb   :  { %v1015_v54 = vadd.f32 %v1325_v40, %v1014_v49  ;;  %v1147_v55 = vadd.f32 %v1084_v50, %v1083_v48  ;;  %956 = vst [vmem:[%s1972_s2 + $0x30] sm:$0xff] %v1329_v51  ;;  %988 = vst [vmem:[%s1972_s2 + $0x130] sm:$0xff] %v1619_v52  ;;  %v1089_v9 = vmul.f32 %v1329_v51, %v1329_v51 }
  0xec   :  { %v516_v56 = vpop.f32.mrf.mxu0  ;;  %v1628_v57 = vpop.f32.mrf.mxu1 }
  0xed   :  { %v1148_v59 = vadd.f32 %v1147_v55, %v1085_v53  ;;  %954 = vst [vmem:[%s1972_s2 + $0x20] sm:$0xff] %v516_v56  ;;  %v1016_v60 = vadd.f32 %v1326_v44, %v1015_v54  ;;  %986 = vst [vmem:[%s1972_s2 + $0x120] sm:$0xff] %v1628_v57  ;;  %v1087_v0 = vmul.f32 %v516_v56, %v516_v56 }
  0xee   :  { %v1330_v61 = vpop.f32.mrf.mxu0  ;;  %v1637_v62 = vpop.f32.mrf.mxu1 }
  0xef   :  { %v1017_v63 = vadd.f32 %v1016_v60, %v516_v56  ;;  %v1149_v1 = vadd.f32 %v1148_v59, %v1086_v58  ;;  %957 = vst [vmem:[%s1972_s2 + $0x38] sm:$0xff] %v1330_v61  ;;  %989 = vst [vmem:[%s1972_s2 + $0x138] sm:$0xff] %v1637_v62  ;;  %v1090_v14 = vmul.f32 %v1330_v61, %v1330_v61 }
  0xf0   :  { %v519_v2 = vpop.f32.mrf.mxu0  ;;  %v1646_v3 = vpop.f32.mrf.mxu1 }
  0xf1   :  { %v1150_v4 = vadd.f32 %v1149_v1, %v1087_v0  ;;  %955 = vst [vmem:[%s1972_s2 + $0x28] sm:$0xff] %v519_v2  ;;  %v1018_v5 = vadd.f32 %v1017_v63, %v519_v2  ;;  %v1088_v6 = vmul.f32 %v519_v2, %v519_v2  ;;  %987 = vst [vmem:[%s1972_s2 + $0x128] sm:$0xff] %v1646_v3 }
  0xf2   :  { %v1333_v7 = vpop.f32.mrf.mxu0  ;;  %v1655_v8 = vpop.f32.mrf.mxu1 }
  0xf3   :  { %v1019_v10 = vadd.f32 %v1329_v51, %v1018_v5  ;;  %v1151_v11 = vadd.f32 %v1150_v4, %v1088_v6  ;;  %960 = vst [vmem:[%s1972_s2 + $0x50] sm:$0xff] %v1333_v7  ;;  %992 = vst [vmem:[%s1972_s2 + $0x150] sm:$0xff] %v1655_v8  ;;  %v1093_v29 = vmul.f32 %v1333_v7, %v1333_v7 }
  0xf4   :  { %v532_v12 = vpop.f32.mrf.mxu0  ;;  %v1664_v13 = vpop.f32.mrf.mxu1 }
  0xf5   :  { %v1152_v15 = vadd.f32 %v1151_v11, %v1089_v9  ;;  %958 = vst [vmem:[%s1972_s2 + $0x40] sm:$0xff] %v532_v12  ;;  %v1020_v16 = vadd.f32 %v1330_v61, %v1019_v10  ;;  %990 = vst [vmem:[%s1972_s2 + $0x140] sm:$0xff] %v1664_v13  ;;  %v1091_v20 = vmul.f32 %v532_v12, %v532_v12 }
  0xf6   :  { %v1334_v17 = vpop.f32.mrf.mxu0  ;;  %v1673_v18 = vpop.f32.mrf.mxu1 }
  0xf7   :  { %v1021_v19 = vadd.f32 %v1020_v16, %v532_v12  ;;  %v1153_v21 = vadd.f32 %v1152_v15, %v1090_v14  ;;  %961 = vst [vmem:[%s1972_s2 + $0x58] sm:$0xff] %v1334_v17  ;;  %993 = vst [vmem:[%s1972_s2 + $0x158] sm:$0xff] %v1673_v18  ;;  %v1094_v34 = vmul.f32 %v1334_v17, %v1334_v17 }
  0xf8   :  { %v535_v22 = vpop.f32.mrf.mxu0  ;;  %v1682_v23 = vpop.f32.mrf.mxu1 }
  0xf9   :  { %v1154_v24 = vadd.f32 %v1153_v21, %v1091_v20  ;;  %959 = vst [vmem:[%s1972_s2 + $0x48] sm:$0xff] %v535_v22  ;;  %v1022_v25 = vadd.f32 %v1021_v19, %v535_v22  ;;  %v1092_v26 = vmul.f32 %v535_v22, %v535_v22  ;;  %991 = vst [vmem:[%s1972_s2 + $0x148] sm:$0xff] %v1682_v23 }
  0xfa   :  { %v1337_v27 = vpop.f32.mrf.mxu0  ;;  %v1691_v28 = vpop.f32.mrf.mxu1 }
  0xfb   :  { %v1023_v30 = vadd.f32 %v1333_v7, %v1022_v25  ;;  %v1155_v31 = vadd.f32 %v1154_v24, %v1092_v26  ;;  %964 = vst [vmem:[%s1972_s2 + $0x70] sm:$0xff] %v1337_v27  ;;  %996 = vst [vmem:[%s1972_s2 + $0x170] sm:$0xff] %v1691_v28  ;;  %v1097_v54 = vmul.f32 %v1337_v27, %v1337_v27 }
  0xfc   :  { %v548_v32 = vpop.f32.mrf.mxu0  ;;  %v1700_v33 = vpop.f32.mrf.mxu1 }
  0xfd   :  { %v1156_v35 = vadd.f32 %v1155_v31, %v1093_v29  ;;  %962 = vst [vmem:[%s1972_s2 + $0x60] sm:$0xff] %v548_v32  ;;  %v1024_v36 = vadd.f32 %v1334_v17, %v1023_v30  ;;  %994 = vst [vmem:[%s1972_s2 + $0x160] sm:$0xff] %v1700_v33  ;;  %v1095_v40 = vmul.f32 %v548_v32, %v548_v32 }
  0xfe   :  { %v1338_v37 = vpop.f32.mrf.mxu0  ;;  %v1709_v38 = vpop.f32.mrf.mxu1 }
  0xff   :  { %v1025_v39 = vadd.f32 %v1024_v36, %v548_v32  ;;  %v1157_v42 = vadd.f32 %v1156_v35, %v1094_v34  ;;  %965 = vst [vmem:[%s1972_s2 + $0x78] sm:$0xff] %v1338_v37  ;;  %997 = vst [vmem:[%s1972_s2 + $0x178] sm:$0xff] %v1709_v38  ;;  %v1098_v60 = vmul.f32 %v1338_v37, %v1338_v37 }
 0x100   :  { %v551_v44 = vpop.f32.mrf.mxu0  ;;  %v1718_v46 = vpop.f32.mrf.mxu1 }
 0x101   :  { %v1158_v48 = vadd.f32 %v1157_v42, %v1095_v40  ;;  %963 = vst [vmem:[%s1972_s2 + $0x68] sm:$0xff] %v551_v44  ;;  %v1026_v49 = vadd.f32 %v1025_v39, %v551_v44  ;;  %v1096_v50 = vmul.f32 %v551_v44, %v551_v44  ;;  %995 = vst [vmem:[%s1972_s2 + $0x168] sm:$0xff] %v1718_v46 }
 0x102   :  { %v1341_v51 = vpop.f32.mrf.mxu0  ;;  %v1727_v53 = vpop.f32.mrf.mxu1 }
 0x103   :  { %v1027_v55 = vadd.f32 %v1337_v27, %v1026_v49  ;;  %v1159_v56 = vadd.f32 %v1158_v48, %v1096_v50  ;;  %968 = vst [vmem:[%s1972_s2 + $0x90] sm:$0xff] %v1341_v51  ;;  %1000 = vst [vmem:[%s1972_s2 + $0x190] sm:$0xff] %v1727_v53  ;;  %v1101_v15 = vmul.f32 %v1341_v51, %v1341_v51 }
 0x104   :  { %v564_v58 = vpop.f32.mrf.mxu0  ;;  %v1736_v59 = vpop.f32.mrf.mxu1 }
 0x105   :  { %v1160_v61 = vadd.f32 %v1159_v56, %v1097_v54  ;;  %966 = vst [vmem:[%s1972_s2 + $0x80] sm:$0xff] %v564_v58  ;;  %v1028_v63 = vadd.f32 %v1338_v37, %v1027_v55  ;;  %998 = vst [vmem:[%s1972_s2 + $0x180] sm:$0xff] %v1736_v59  ;;  %v1099_v4 = vmul.f32 %v564_v58, %v564_v58 }
 0x106   :  { %v1342_v0 = vpop.f32.mrf.mxu0  ;;  %v1745_v1 = vpop.f32.mrf.mxu1 }
 0x107   :  { %v1029_v2 = vadd.f32 %v1028_v63, %v564_v58  ;;  %v1161_v5 = vadd.f32 %v1160_v61, %v1098_v60  ;;  %969 = vst [vmem:[%s1972_s2 + $0x98] sm:$0xff] %v1342_v0  ;;  %1001 = vst [vmem:[%s1972_s2 + $0x198] sm:$0xff] %v1745_v1  ;;  %v1102_v21 = vmul.f32 %v1342_v0, %v1342_v0 }
 0x108   :  { %v567_v6 = vpop.f32.mrf.mxu0  ;;  %v1754_v7 = vpop.f32.mrf.mxu1 }
 0x109   :  { %v1162_v9 = vadd.f32 %v1161_v5, %v1099_v4  ;;  %967 = vst [vmem:[%s1972_s2 + $0x88] sm:$0xff] %v567_v6  ;;  %v1030_v10 = vadd.f32 %v1029_v2, %v567_v6  ;;  %v1100_v11 = vmul.f32 %v567_v6, %v567_v6  ;;  %999 = vst [vmem:[%s1972_s2 + $0x188] sm:$0xff] %v1754_v7 }
 0x10a   :  { %v1345_v12 = vpop.f32.mrf.mxu0  ;;  %v1763_v14 = vpop.f32.mrf.mxu1 }
 0x10b   :  { %v1031_v16 = vadd.f32 %v1341_v51, %v1030_v10  ;;  %v1163_v17 = vadd.f32 %v1162_v9, %v1100_v11  ;;  %972 = vst [vmem:[%s1972_s2 + $0xb0] sm:$0xff] %v1345_v12  ;;  %1004 = vst [vmem:[%s1972_s2 + $0x1b0] sm:$0xff] %v1763_v14  ;;  %v1105_v40 = vmul.f32 %v1345_v12, %v1345_v12 }
 0x10c   :  { %v580_v19 = vpop.f32.mrf.mxu0  ;;  %v1772_v20 = vpop.f32.mrf.mxu1 }
 0x10d   :  { %v1164_v22 = vadd.f32 %v1163_v17, %v1101_v15  ;;  %970 = vst [vmem:[%s1972_s2 + $0xa0] sm:$0xff] %v580_v19  ;;  %v1032_v24 = vadd.f32 %v1342_v0, %v1031_v16  ;;  %1002 = vst [vmem:[%s1972_s2 + $0x1a0] sm:$0xff] %v1772_v20  ;;  %v1103_v29 = vmul.f32 %v580_v19, %v580_v19 }
 0x10e   :  { %v1346_v25 = vpop.f32.mrf.mxu0  ;;  %v1781_v26 = vpop.f32.mrf.mxu1 }
 0x10f   :  { %v1033_v27 = vadd.f32 %v1032_v24, %v580_v19  ;;  %v1165_v30 = vadd.f32 %v1164_v22, %v1102_v21  ;;  %973 = vst [vmem:[%s1972_s2 + $0xb8] sm:$0xff] %v1346_v25  ;;  %1005 = vst [vmem:[%s1972_s2 + $0x1b8] sm:$0xff] %v1781_v26  ;;  %v1106_v50 = vmul.f32 %v1346_v25, %v1346_v25 }
 0x110   :  { %v583_v31 = vpop.f32.mrf.mxu0  ;;  %v1790_v32 = vpop.f32.mrf.mxu1 }
 0x111   :  { %v1166_v34 = vadd.f32 %v1165_v30, %v1103_v29  ;;  %971 = vst [vmem:[%s1972_s2 + $0xa8] sm:$0xff] %v583_v31  ;;  %v1034_v35 = vadd.f32 %v1033_v27, %v583_v31  ;;  %v1104_v36 = vmul.f32 %v583_v31, %v583_v31  ;;  %1003 = vst [vmem:[%s1972_s2 + $0x1a8] sm:$0xff] %v1790_v32 }
 0x112   :  { %v1349_v37 = vpop.f32.mrf.mxu0  ;;  %v1799_v39 = vpop.f32.mrf.mxu1 }
 0x113   :  { %v1035_v42 = vadd.f32 %v1345_v12, %v1034_v35  ;;  %v1167_v44 = vadd.f32 %v1166_v34, %v1104_v36  ;;  %976 = vst [vmem:[%s1972_s2 + $0xd0] sm:$0xff] %v1349_v37  ;;  %1008 = vst [vmem:[%s1972_s2 + $0x1d0] sm:$0xff] %v1799_v39  ;;  %v1109_v10 = vmul.f32 %v1349_v37, %v1349_v37 }
 0x114   :  { %v596_v48 = vpop.f32.mrf.mxu0  ;;  %v1808_v49 = vpop.f32.mrf.mxu1 }
 0x115   :  { %v1168_v51 = vadd.f32 %v1167_v44, %v1105_v40  ;;  %974 = vst [vmem:[%s1972_s2 + $0xc0] sm:$0xff] %v596_v48  ;;  %v1036_v54 = vadd.f32 %v1346_v25, %v1035_v42  ;;  %1006 = vst [vmem:[%s1972_s2 + $0x1c0] sm:$0xff] %v1808_v49  ;;  %v1107_v60 = vmul.f32 %v596_v48, %v596_v48 }
 0x116   :  { %v1350_v55 = vpop.f32.mrf.mxu0  ;;  %v1817_v56 = vpop.f32.mrf.mxu1 }
 0x117   :  { %v1037_v58 = vadd.f32 %v1036_v54, %v596_v48  ;;  %v1169_v61 = vadd.f32 %v1168_v51, %v1106_v50  ;;  %977 = vst [vmem:[%s1972_s2 + $0xd8] sm:$0xff] %v1350_v55  ;;  %1009 = vst [vmem:[%s1972_s2 + $0x1d8] sm:$0xff] %v1817_v56  ;;  %v1110_v17 = vmul.f32 %v1350_v55, %v1350_v55 }
 0x118   :  { %v599_v63 = vpop.f32.mrf.mxu0  ;;  %v1826_v0 = vpop.f32.mrf.mxu1  ;;  %v1115_v51 = vmul.f32 %v1592_v43, %v1592_v43 }
 0x119   :  { %v1170_v2 = vadd.f32 %v1169_v61, %v1107_v60  ;;  %975 = vst [vmem:[%s1972_s2 + $0xc8] sm:$0xff] %v599_v63  ;;  %v1038_v4 = vadd.f32 %v1037_v58, %v599_v63  ;;  %v1108_v5 = vmul.f32 %v599_v63, %v599_v63  ;;  %1007 = vst [vmem:[%s1972_s2 + $0x1c8] sm:$0xff] %v1826_v0 }
 0x11a   :  { %v1353_v6 = vpop.f32.mrf.mxu0  ;;  %v1835_v9 = vpop.f32.mrf.mxu1  ;;  %v1116_v60 = vmul.f32 %v1610_v47, %v1610_v47  ;;  %v1117_v63 = vmul.f32 %v1583_v41, %v1583_v41 }
 0x11b   :  { %v1039_v11 = vadd.f32 %v1349_v37, %v1038_v4  ;;  %v1171_v12 = vadd.f32 %v1170_v2, %v1108_v5  ;;  %980 = vst [vmem:[%s1972_s2 + $0xf0] sm:$0xff] %v1353_v6  ;;  %1012 = vst [vmem:[%s1972_s2 + $0x1f0] sm:$0xff] %v1835_v9  ;;  %v1113_v37 = vmul.f32 %v1353_v6, %v1353_v6 }
 0x11c   :  { %v612_v15 = vpop.f32.mrf.mxu0  ;;  %v1844_v16 = vpop.f32.mrf.mxu1  ;;  %v1118_v5 = vmul.f32 %v1601_v45, %v1601_v45 }
 0x11d   :  { %v1172_v19 = vadd.f32 %v1171_v12, %v1109_v10  ;;  %978 = vst [vmem:[%s1972_s2 + $0xe0] sm:$0xff] %v612_v15  ;;  %v1040_v21 = vadd.f32 %v1350_v55, %v1039_v11  ;;  %1010 = vst [vmem:[%s1972_s2 + $0x1e0] sm:$0xff] %v1844_v16  ;;  %v1111_v27 = vmul.f32 %v612_v15, %v612_v15 }
 0x11e   :  { %v1354_v22 = vpop.f32.mrf.mxu0  ;;  %v1853_v24 = vpop.f32.mrf.mxu1  ;;  %v1119_v11 = vmul.f32 %v1628_v57, %v1628_v57 }
 0x11f   :  { %v1041_v25 = vadd.f32 %v1040_v21, %v612_v15  ;;  %v1173_v29 = vadd.f32 %v1172_v19, %v1110_v17  ;;  %981 = vst [vmem:[%s1972_s2 + $0xf8] sm:$0xff] %v1354_v22  ;;  %1013 = vst [vmem:[%s1972_s2 + $0x1f8] sm:$0xff] %v1853_v24  ;;  %v1114_v44 = vmul.f32 %v1354_v22, %v1354_v22 }
 0x120   :  { %v615_v30 = vpop.f32.mrf.mxu0  ;;  %v1862_v31 = vpop.f32.mrf.mxu1  ;;  %v1120_v17 = vmul.f32 %v1646_v3, %v1646_v3 }
 0x121   :  { %v1174_v34 = vadd.f32 %v1173_v29, %v1111_v27  ;;  %979 = vst [vmem:[%s1972_s2 + $0xe8] sm:$0xff] %v615_v30  ;;  %v1042_v35 = vadd.f32 %v1041_v25, %v615_v30  ;;  %v1112_v36 = vmul.f32 %v615_v30, %v615_v30  ;;  %1011 = vst [vmem:[%s1972_s2 + $0x1e8] sm:$0xff] %v1862_v31 }
 0x122   :  { %v1123_v27 = vmul.f32 %v1664_v13, %v1664_v13 }
 0x123   :  { %v1043_v40 = vadd.f32 %v1353_v6, %v1042_v35  ;;  %v1175_v42 = vadd.f32 %v1174_v34, %v1112_v36  ;;  %v1124_v34 = vmul.f32 %v1682_v23, %v1682_v23 }
 0x125   :  { %v1044_v48 = vadd.f32 %v1354_v22, %v1043_v40  ;;  %v1176_v50 = vadd.f32 %v1175_v42, %v1113_v37  ;;  %v1127_v42 = vmul.f32 %v1700_v33, %v1700_v33 }
 0x127   :  { %v1177_v54 = vadd.f32 %v1176_v50, %v1114_v44  ;;  %v1045_v55 = vadd.f32 %v1044_v48, %v1592_v43  ;;  %v1128_v50 = vmul.f32 %v1718_v46, %v1718_v46 }
 0x129   :  { %v1046_v58 = vadd.f32 %v1045_v55, %v1610_v47  ;;  %v1178_v61 = vadd.f32 %v1177_v54, %v1115_v51 }
 0x12b   :  { %v1047_v2 = vadd.f32 %v1583_v41, %v1046_v58  ;;  %v1179_v4 = vadd.f32 %v1178_v61, %v1116_v60  ;;  %v1121_v41 = vmul.f32 %v1619_v52, %v1619_v52  ;;  %v1131_v60 = vmul.f32 %v1736_v59, %v1736_v59 }
 0x12d   :  { %v1180_v6 = vadd.f32 %v1179_v4, %v1117_v63  ;;  %v1048_v10 = vadd.f32 %v1601_v45, %v1047_v2  ;;  %v1122_v45 = vmul.f32 %v1637_v62, %v1637_v62  ;;  %v1132_v2 = vmul.f32 %v1754_v7, %v1754_v7 }
 0x12f   :  { %v1049_v43 = vadd.f32 %v1048_v10, %v1628_v57  ;;  %v1181_v12 = vadd.f32 %v1180_v6, %v1118_v5 }
 0x131   :  { %v1182_v47 = vadd.f32 %v1181_v12, %v1119_v11  ;;  %v1050_v15 = vadd.f32 %v1049_v43, %v1646_v3  ;;  %v1135_v43 = vmul.f32 %v1772_v20, %v1772_v20 }
 0x133   :  { %v1051_v19 = vadd.f32 %v1619_v52, %v1050_v15  ;;  %v1183_v21 = vadd.f32 %v1182_v47, %v1120_v17  ;;  %v1125_v52 = vmul.f32 %v1655_v8, %v1655_v8  ;;  %v1136_v47 = vmul.f32 %v1790_v32, %v1790_v32 }
 0x135   :  { %v1184_v22 = vadd.f32 %v1183_v21, %v1121_v41  ;;  %v1052_v25 = vadd.f32 %v1637_v62, %v1051_v19  ;;  %v1126_v62 = vmul.f32 %v1673_v18, %v1673_v18  ;;  %v1139_v21 = vmul.f32 %v1808_v49, %v1808_v49 }
 0x137   :  { %v1053_v57 = vadd.f32 %v1052_v25, %v1664_v13  ;;  %v1185_v29 = vadd.f32 %v1184_v22, %v1122_v45  ;;  %v1140_v25 = vmul.f32 %v1826_v0, %v1826_v0 }
 0x139   :  { %v1186_v30 = vadd.f32 %v1185_v29, %v1123_v27  ;;  %v1054_v3 = vadd.f32 %v1053_v57, %v1682_v23 }
 0x13b   :  { %v1055_v35 = vadd.f32 %v1655_v8, %v1054_v3  ;;  %v1187_v36 = vadd.f32 %v1186_v30, %v1124_v34  ;;  %v1129_v8 = vmul.f32 %v1691_v28, %v1691_v28  ;;  %v1143_v3 = vmul.f32 %v1844_v16, %v1844_v16 }
 0x13d   :  { %v1188_v37 = vadd.f32 %v1187_v36, %v1125_v52  ;;  %v1056_v40 = vadd.f32 %v1673_v18, %v1055_v35  ;;  %v1130_v18 = vmul.f32 %v1709_v38, %v1709_v38  ;;  %v1144_v35 = vmul.f32 %v1862_v31, %v1862_v31 }
 0x13f   :  { %v1057_v13 = vadd.f32 %v1056_v40, %v1700_v33  ;;  %v1189_v44 = vadd.f32 %v1188_v37, %v1126_v62 }
 0x141   :  { %v1190_v48 = vadd.f32 %v1189_v44, %v1127_v42  ;;  %v1058_v23 = vadd.f32 %v1057_v13, %v1718_v46 }
 0x143   :  { %v1059_v51 = vadd.f32 %v1691_v28, %v1058_v23  ;;  %v1191_v54 = vadd.f32 %v1190_v48, %v1128_v50  ;;  %v1133_v28 = vmul.f32 %v1727_v53, %v1727_v53 }
 0x145   :  { %v1192_v55 = vadd.f32 %v1191_v54, %v1129_v8  ;;  %v1060_v58 = vadd.f32 %v1709_v38, %v1059_v51  ;;  %v1134_v38 = vmul.f32 %v1745_v1, %v1745_v1 }
 0x147   :  { %v1061_v33 = vadd.f32 %v1060_v58, %v1736_v59  ;;  %v1193_v61 = vadd.f32 %v1192_v55, %v1130_v18 }
 0x149   :  { %v1194_v63 = vadd.f32 %v1193_v61, %v1131_v60  ;;  %v1062_v46 = vadd.f32 %v1061_v33, %v1754_v7 }
 0x14b   :  { %v1063_v4 = vadd.f32 %v1727_v53, %v1062_v46  ;;  %v1195_v5 = vadd.f32 %v1194_v63, %v1132_v2  ;;  %v1137_v53 = vmul.f32 %v1763_v14, %v1763_v14 }
 0x14d   :  { %v1196_v6 = vadd.f32 %v1195_v5, %v1133_v28  ;;  %v1064_v10 = vadd.f32 %v1745_v1, %v1063_v4  ;;  %v1138_v1 = vmul.f32 %v1781_v26, %v1781_v26 }
 0x14f   :  { %v1065_v59 = vadd.f32 %v1064_v10, %v1772_v20  ;;  %v1197_v11 = vadd.f32 %v1196_v6, %v1134_v38 }
 0x151   :  { %v1198_v12 = vadd.f32 %v1197_v11, %v1135_v43  ;;  %v1066_v7 = vadd.f32 %v1065_v59, %v1790_v32 }
 0x153   :  { %v1067_v15 = vadd.f32 %v1763_v14, %v1066_v7  ;;  %v1199_v17 = vadd.f32 %v1198_v12, %v1136_v47  ;;  %v1141_v14 = vmul.f32 %v1799_v39, %v1799_v39 }
 0x155   :  { %v1200_v41 = vadd.f32 %v1199_v17, %v1137_v53  ;;  %v1068_v19 = vadd.f32 %v1781_v26, %v1067_v15  ;;  %v1142_v26 = vmul.f32 %v1817_v56, %v1817_v56 }
 0x157   :  { %v1069_v20 = vadd.f32 %v1068_v19, %v1808_v49  ;;  %v1201_v45 = vadd.f32 %v1200_v41, %v1138_v1 }
 0x159   :  { %v1202_v22 = vadd.f32 %v1201_v45, %v1139_v21  ;;  %v1070_v32 = vadd.f32 %v1069_v20, %v1826_v0 }
 0x15b   :  { %v1071_v57 = vadd.f32 %v1799_v39, %v1070_v32  ;;  %v1203_v27 = vadd.f32 %v1202_v22, %v1140_v25  ;;  %v1145_v39 = vmul.f32 %v1835_v9, %v1835_v9 }
 0x15d   :  { %v1204_v29 = vadd.f32 %v1203_v27, %v1141_v14  ;;  %v1072_v30 = vadd.f32 %v1817_v56, %v1071_v57  ;;  %v1146_v56 = vmul.f32 %v1853_v24, %v1853_v24 }
 0x15f   :  { %v1073_v49 = vadd.f32 %v1072_v30, %v1844_v16  ;;  %v1205_v34 = vadd.f32 %v1204_v29, %v1142_v26 }
 0x161   :  { %v1206_v52 = vadd.f32 %v1205_v34, %v1143_v3  ;;  %v1074_v0 = vadd.f32 %v1073_v49, %v1862_v31 }
 0x163   :  { %v1075_v36 = vadd.f32 %v1835_v9, %v1074_v0  ;;  %v1207_v62 = vadd.f32 %v1206_v52, %v1144_v35 }
 0x165   :  { %v1076_v37 = vadd.f32 %v1853_v24, %v1075_v36  ;;  %v1208_v40 = vadd.f32 %v1207_v62, %v1145_v39 }
 0x167   :  { %v1077_v16 = vrot.slane %v1076_v37, 4  ;;  %v1209_v13 = vadd.f32 %v1208_v40, %v1146_v56 }
 0x169   :  { %v1078_v42 = vadd.f32 %v1077_v16, %v1076_v37  ;;  %v1210_v44 = vrot.slane %v1209_v13, 4 }
 0x16b   :  { %v1079_v48 = vrot.slane %v1078_v42, 2  ;;  %v1211_v23 = vadd.f32 %v1210_v44, %v1209_v13 }
 0x16d   :  { %v1080_v50 = vadd.f32 %v1079_v48, %v1078_v42  ;;  %v1212_v31 = vrot.slane %v1211_v23, 2 }
 0x16f   :  { %v1081_v8 = vrot.slane %v1080_v50, 1  ;;  %v1213_v51 = vadd.f32 %v1212_v31, %v1211_v23 }
 0x171   :  { %v1214_v54 = vrot.slane %v1213_v51, 1  ;;  %v1082_v9 = vadd.f32 %v1081_v8, %v1080_v50 }
 0x173   :  { %v1215_v18 = vadd.f32 %v1214_v54, %v1213_v51 }
 0x175   :  { %v1217_v55 = vsel %vm1216_vm0, %v1082_v9, %v1215_v18 }
 0x176   :  { %1218 = vst [vmem:[%s1973_s3] sm:$0x3] %v1217_v55 }

// kernel: generator_forward.48
= control target key start
LH: loop header
LB: loop body
LE: loop exit
PB: predicated region body
PF: predicated region fallthrough
CT: control target
= control target key end

     0   :  { %vm402_vm0 = vcmask 523264   ;;  %vm1249_vm1 = vcmask 1040384   ;;  %s2027_s1 = inlined_call_operand.vmem [shape: bf16[64,128], index: 1, kind: input, shape index: {}]   ;;  %s2028_s0 = inlined_call_operand.vmem [shape: bf16[512,64], index: 0, kind: input, shape index: {}]   ;;  %s2029_s2 = inlined_call_operand.vmem [shape: f32[512,128], index: 2, kind: output, shape index: {0}]   ;;  %s2030_s3 = inlined_call_operand.vmem [shape: f32[1,2,128], index: 3, kind: output, shape index: {1}]  }
   0x1   :  { %v1444_v0 = vld [vmem:[%s2027_s1 + $0x18] sm:$0xff]   ;;  %v1445_v1 = vld [vmem:[%s2027_s1 + $0x10] sm:$0xff]   ;;  %v1446_v2 = vld [vmem:[%s2027_s1 + $0x8] sm:$0xff]  }
   0x2   :  { %1364 = vmatprep.subr.bf16.mxu0 %v1444_v0  ;;  %1436 = vmatprep.subr.bf16.mxu1 %v1444_v0  ;;  %v1448_v3 = vld [vmem:[%s2028_s0] sm:$0xff]   ;;  %v1449_v5 = vld [vmem:[%s2028_s0 + $0x8] sm:$0xff]   ;;  %v1450_v6 = vld [vmem:[%s2028_s0 + $0x10] sm:$0xff]  }
   0x3   :  { %1365 = vmatpush3.bf16.msra.mxu0 %v1444_v0  ;;  %1440 = vmatpush3.bf16.msra.mxu1 %v1444_v0  ;;  %v1447_v4 = vld [vmem:[%s2027_s1] sm:$0xff]   ;;  %v1451_v7 = vld [vmem:[%s2028_s0 + $0x18] sm:$0xff]   ;;  %v1465_v9 = vld [vmem:[%s2028_s0 + $0x88] sm:$0xff]  }
   0x4   :  { %1366 = vmatprep.subr.bf16.mxu0 %v1445_v1  ;;  %1437 = vmatprep.subr.bf16.mxu1 %v1445_v1  ;;  %v1464_v8 = vld [vmem:[%s2028_s0 + $0x80] sm:$0xff]   ;;  %v1466_v10 = vld [vmem:[%s2028_s0 + $0x90] sm:$0xff]   ;;  %v1467_v12 = vld [vmem:[%s2028_s0 + $0x98] sm:$0xff]  }
   0x5   :  { %1372 = vmatprep.mubr.msk.bf16.mxu0 %vm402_vm0, %v1448_v3  ;;  %1404 = vmatprep.mubr.msk.bf16.mxu1 %vm402_vm0, %v1464_v8  ;;  %v1452_v11 = vld [vmem:[%s2028_s0 + $0x20] sm:$0xff]   ;;  %v1453_v14 = vld [vmem:[%s2028_s0 + $0x28] sm:$0xff]   ;;  %v1454_v15 = vld [vmem:[%s2028_s0 + $0x30] sm:$0xff]  }
   0x6   :  { %v1468_v13 = vld [vmem:[%s2028_s0 + $0xa0] sm:$0xff]   ;;  %v1469_v16 = vld [vmem:[%s2028_s0 + $0xa8] sm:$0xff]   ;;  %v1470_v17 = vld [vmem:[%s2028_s0 + $0xb0] sm:$0xff]  }
   0x7   :  { %1367 = vmatpush3.bf16.msra.mxu0 %v1445_v1  ;;  %1441 = vmatpush3.bf16.msra.mxu1 %v1445_v1  ;;  %v1455_v18 = vld [vmem:[%s2028_s0 + $0x38] sm:$0xff]   ;;  %v1456_v19 = vld [vmem:[%s2028_s0 + $0x40] sm:$0xff]   ;;  %v1457_v22 = vld [vmem:[%s2028_s0 + $0x48] sm:$0xff]  }
   0x8   :  { %1368 = vmatprep.subr.bf16.mxu0 %v1446_v2  ;;  %1438 = vmatprep.subr.bf16.mxu1 %v1446_v2  ;;  %v1471_v20 = vld [vmem:[%s2028_s0 + $0xb8] sm:$0xff]   ;;  %v1472_v21 = vld [vmem:[%s2028_s0 + $0xc0] sm:$0xff]   ;;  %v1458_v23 = vld [vmem:[%s2028_s0 + $0x50] sm:$0xff]  }
   0x9   :  { %v1473_v24 = vld [vmem:[%s2028_s0 + $0xc8] sm:$0xff]   ;;  %v1474_v25 = vld [vmem:[%s2028_s0 + $0xd0] sm:$0xff]   ;;  %v1459_v26 = vld [vmem:[%s2028_s0 + $0x58] sm:$0xff]  }
   0xa   :  { %v1460_v27 = vld [vmem:[%s2028_s0 + $0x60] sm:$0xff]   ;;  %v1475_v28 = vld [vmem:[%s2028_s0 + $0xd8] sm:$0xff]   ;;  %v1461_v30 = vld [vmem:[%s2028_s0 + $0x68] sm:$0xff]  }
   0xb   :  { %1369 = vmatpush3.bf16.msra.mxu0 %v1446_v2  ;;  %1442 = vmatpush3.bf16.msra.mxu1 %v1446_v2  ;;  %v1476_v29 = vld [vmem:[%s2028_s0 + $0xe0] sm:$0xff]   ;;  %v1462_v31 = vld [vmem:[%s2028_s0 + $0x70] sm:$0xff]   ;;  %v1477_v32 = vld [vmem:[%s2028_s0 + $0xe8] sm:$0xff]  }
   0xc   :  { %1370 = vmatprep.subr.bf16.mxu0 %v1447_v4  ;;  %1439 = vmatprep.subr.bf16.mxu1 %v1447_v4  ;;  %v1478_v33 = vld [vmem:[%s2028_s0 + $0xf0] sm:$0xff]   ;;  %v1463_v34 = vld [vmem:[%s2028_s0 + $0x78] sm:$0xff]  }
   0xd   :  { %v1479_v35 = vld [vmem:[%s2028_s0 + $0xf8] sm:$0xff]  }
   0xf   :  { %1371 = vmatpush3.bf16.msra.mxu0 %v1447_v4  ;;  %1443 = vmatpush3.bf16.msra.mxu1 %v1447_v4 }
  0x12   :  { %1373 = vmatmul.mubr.msk.bf16.vlgmr.msra.gmra.mxu0 %vm402_vm0, %v1449_v5  ;;  %1405 = vmatmul.mubr.msk.bf16.vlgmr.msra.gmra.mxu1 %vm402_vm0, %v1465_v9 }
  0x13   :  { %1376 = vmatprep.mubr.msk.bf16.mxu0 %vm402_vm0, %v1450_v6  ;;  %1408 = vmatprep.mubr.msk.bf16.mxu1 %vm402_vm0, %v1466_v10 }
  0x1a   :  { %1377 = vmatmul.mubr.msk.bf16.gmra.mxu0 %vm402_vm0, %v1451_v7  ;;  %1409 = vmatmul.mubr.msk.bf16.gmra.mxu1 %vm402_vm0, %v1467_v12 }
  0x1b   :  { %1380 = vmatprep.mubr.msk.bf16.mxu0 %vm402_vm0, %v1452_v11  ;;  %1412 = vmatprep.mubr.msk.bf16.mxu1 %vm402_vm0, %v1468_v13 }
  0x22   :  { %1381 = vmatmul.mubr.msk.bf16.gmra.mxu0 %vm402_vm0, %v1453_v14  ;;  %1413 = vmatmul.mubr.msk.bf16.gmra.mxu1 %vm402_vm0, %v1469_v16 }
  0x23   :  { %1384 = vmatprep.mubr.msk.bf16.mxu0 %vm402_vm0, %v1454_v15  ;;  %1416 = vmatprep.mubr.msk.bf16.mxu1 %vm402_vm0, %v1470_v17 }
  0x2a   :  { %1385 = vmatmul.mubr.msk.bf16.gmra.mxu0 %vm402_vm0, %v1455_v18  ;;  %1417 = vmatmul.mubr.msk.bf16.gmra.mxu1 %vm402_vm0, %v1471_v20 }
  0x2b   :  { %1388 = vmatprep.mubr.msk.bf16.mxu0 %vm402_vm0, %v1456_v19  ;;  %1420 = vmatprep.mubr.msk.bf16.mxu1 %vm402_vm0, %v1472_v21 }
  0x32   :  { %1389 = vmatmul.mubr.msk.bf16.gmra.mxu0 %vm402_vm0, %v1457_v22  ;;  %1421 = vmatmul.mubr.msk.bf16.gmra.mxu1 %vm402_vm0, %v1473_v24 }
  0x33   :  { %1392 = vmatprep.mubr.msk.bf16.mxu0 %vm402_vm0, %v1458_v23  ;;  %1424 = vmatprep.mubr.msk.bf16.mxu1 %vm402_vm0, %v1474_v25 }
  0x3a   :  { %1393 = vmatmul.mubr.msk.bf16.gmra.mxu0 %vm402_vm0, %v1459_v26  ;;  %1425 = vmatmul.mubr.msk.bf16.gmra.mxu1 %vm402_vm0, %v1475_v28 }
  0x3b   :  { %1396 = vmatprep.mubr.msk.bf16.mxu0 %vm402_vm0, %v1460_v27  ;;  %1428 = vmatprep.mubr.msk.bf16.mxu1 %vm402_vm0, %v1476_v29 }
  0x42   :  { %1397 = vmatmul.mubr.msk.bf16.gmra.mxu0 %vm402_vm0, %v1461_v30  ;;  %1429 = vmatmul.mubr.msk.bf16.gmra.mxu1 %vm402_vm0, %v1477_v32 }
  0x43   :  { %1400 = vmatprep.mubr.msk.bf16.mxu0 %vm402_vm0, %v1462_v31  ;;  %1432 = vmatprep.mubr.msk.bf16.mxu1 %vm402_vm0, %v1478_v33 }
  0x4a   :  { %1401 = vmatmul.mubr.msk.bf16.gmra.mxu0 %vm402_vm0, %v1463_v34  ;;  %1433 = vmatmul.mubr.msk.bf16.gmra.mxu1 %vm402_vm0, %v1479_v35 }
  0xd2   :  { %v1374_v36 = vpop.f32.mrf.mxu0  ;;  %v1649_v39 = vpop.f32.mrf.mxu1 }
  0xd3   :  { %985 = vst [vmem:[%s2029_s2 + $0x10] sm:$0xff] %v1374_v36  ;;  %1017 = vst [vmem:[%s2029_s2 + $0x110] sm:$0xff] %v1649_v39  ;;  %v1118_v46 = vmul.f32 %v1374_v36, %v1374_v36 }
  0xd4   :  { %v533_v37 = vpop.f32.mrf.mxu0  ;;  %v1658_v44 = vpop.f32.mrf.mxu1 }
  0xd5   :  { %983 = vst [vmem:[%s2029_s2] sm:$0xff] %v533_v37  ;;  %v1116_v41 = vmul.f32 %v533_v37, %v533_v37  ;;  %1015 = vst [vmem:[%s2029_s2 + $0x100] sm:$0xff] %v1658_v44 }
  0xd6   :  { %v1375_v38 = vpop.f32.mrf.mxu0  ;;  %v1667_v49 = vpop.f32.mrf.mxu1 }
  0xd7   :  { %986 = vst [vmem:[%s2029_s2 + $0x18] sm:$0xff] %v1375_v38  ;;  %1018 = vst [vmem:[%s2029_s2 + $0x118] sm:$0xff] %v1667_v49  ;;  %v1119_v51 = vmul.f32 %v1375_v38, %v1375_v38 }
  0xd8   :  { %v536_v40 = vpop.f32.mrf.mxu0  ;;  %v1676_v54 = vpop.f32.mrf.mxu1 }
  0xd9   :  { %984 = vst [vmem:[%s2029_s2 + $0x8] sm:$0xff] %v536_v40  ;;  %v1047_v42 = vadd.f32 %v536_v40, %v533_v37  ;;  %v1117_v43 = vmul.f32 %v536_v40, %v536_v40  ;;  %1016 = vst [vmem:[%s2029_s2 + $0x108] sm:$0xff] %v1676_v54 }
  0xda   :  { %v1378_v45 = vpop.f32.mrf.mxu0  ;;  %v1685_v59 = vpop.f32.mrf.mxu1 }
  0xdb   :  { %v1048_v47 = vadd.f32 %v1374_v36, %v1047_v42  ;;  %v1180_v48 = vadd.f32 %v1117_v43, %v1116_v41  ;;  %989 = vst [vmem:[%s2029_s2 + $0x30] sm:$0xff] %v1378_v45  ;;  %1021 = vst [vmem:[%s2029_s2 + $0x130] sm:$0xff] %v1685_v59  ;;  %v1122_v2 = vmul.f32 %v1378_v45, %v1378_v45 }
  0xdc   :  { %v549_v50 = vpop.f32.mrf.mxu0  ;;  %v1694_v0 = vpop.f32.mrf.mxu1 }
  0xdd   :  { %v1181_v52 = vadd.f32 %v1180_v48, %v1118_v46  ;;  %987 = vst [vmem:[%s2029_s2 + $0x20] sm:$0xff] %v549_v50  ;;  %v1049_v53 = vadd.f32 %v1375_v38, %v1048_v47  ;;  %v1120_v57 = vmul.f32 %v549_v50, %v549_v50  ;;  %1019 = vst [vmem:[%s2029_s2 + $0x120] sm:$0xff] %v1694_v0 }
  0xde   :  { %v1379_v55 = vpop.f32.mrf.mxu0  ;;  %v1703_v5 = vpop.f32.mrf.mxu1 }
  0xdf   :  { %v1050_v56 = vadd.f32 %v1049_v53, %v549_v50  ;;  %v1182_v58 = vadd.f32 %v1181_v52, %v1119_v51  ;;  %990 = vst [vmem:[%s2029_s2 + $0x38] sm:$0xff] %v1379_v55  ;;  %1022 = vst [vmem:[%s2029_s2 + $0x138] sm:$0xff] %v1703_v5  ;;  %v1123_v7 = vmul.f32 %v1379_v55, %v1379_v55 }
  0xe0   :  { %v552_v60 = vpop.f32.mrf.mxu0  ;;  %v1712_v10 = vpop.f32.mrf.mxu1 }
  0xe1   :  { %v1183_v61 = vadd.f32 %v1182_v58, %v1120_v57  ;;  %988 = vst [vmem:[%s2029_s2 + $0x28] sm:$0xff] %v552_v60  ;;  %v1051_v62 = vadd.f32 %v1050_v56, %v552_v60  ;;  %v1121_v63 = vmul.f32 %v552_v60, %v552_v60  ;;  %1020 = vst [vmem:[%s2029_s2 + $0x128] sm:$0xff] %v1712_v10 }
  0xe2   :  { %v1382_v1 = vpop.f32.mrf.mxu0  ;;  %v1721_v15 = vpop.f32.mrf.mxu1 }
  0xe3   :  { %v1052_v3 = vadd.f32 %v1378_v45, %v1051_v62  ;;  %v1184_v4 = vadd.f32 %v1183_v61, %v1121_v63  ;;  %993 = vst [vmem:[%s2029_s2 + $0x50] sm:$0xff] %v1382_v1  ;;  %1025 = vst [vmem:[%s2029_s2 + $0x150] sm:$0xff] %v1721_v15  ;;  %v1126_v22 = vmul.f32 %v1382_v1, %v1382_v1 }
  0xe4   :  { %v565_v6 = vpop.f32.mrf.mxu0  ;;  %v1730_v20 = vpop.f32.mrf.mxu1 }
  0xe5   :  { %v1185_v8 = vadd.f32 %v1184_v4, %v1122_v2  ;;  %991 = vst [vmem:[%s2029_s2 + $0x40] sm:$0xff] %v565_v6  ;;  %v1053_v9 = vadd.f32 %v1379_v55, %v1052_v3  ;;  %v1124_v13 = vmul.f32 %v565_v6, %v565_v6  ;;  %1023 = vst [vmem:[%s2029_s2 + $0x140] sm:$0xff] %v1730_v20 }
  0xe6   :  { %v1383_v11 = vpop.f32.mrf.mxu0  ;;  %v1739_v25 = vpop.f32.mrf.mxu1 }
  0xe7   :  { %v1054_v12 = vadd.f32 %v1053_v9, %v565_v6  ;;  %v1186_v14 = vadd.f32 %v1185_v8, %v1123_v7  ;;  %994 = vst [vmem:[%s2029_s2 + $0x58] sm:$0xff] %v1383_v11  ;;  %1026 = vst [vmem:[%s2029_s2 + $0x158] sm:$0xff] %v1739_v25  ;;  %v1127_v27 = vmul.f32 %v1383_v11, %v1383_v11 }
  0xe8   :  { %v568_v16 = vpop.f32.mrf.mxu0  ;;  %v1748_v30 = vpop.f32.mrf.mxu1 }
  0xe9   :  { %v1187_v17 = vadd.f32 %v1186_v14, %v1124_v13  ;;  %992 = vst [vmem:[%s2029_s2 + $0x48] sm:$0xff] %v568_v16  ;;  %v1055_v18 = vadd.f32 %v1054_v12, %v568_v16  ;;  %v1125_v19 = vmul.f32 %v568_v16, %v568_v16  ;;  %1024 = vst [vmem:[%s2029_s2 + $0x148] sm:$0xff] %v1748_v30 }
  0xea   :  { %v1386_v21 = vpop.f32.mrf.mxu0  ;;  %v1757_v35 = vpop.f32.mrf.mxu1 }
  0xeb   :  { %v1056_v23 = vadd.f32 %v1382_v1, %v1055_v18  ;;  %v1188_v24 = vadd.f32 %v1187_v17, %v1125_v19  ;;  %997 = vst [vmem:[%s2029_s2 + $0x70] sm:$0xff] %v1386_v21  ;;  %1029 = vst [vmem:[%s2029_s2 + $0x170] sm:$0xff] %v1757_v35  ;;  %v1130_v43 = vmul.f32 %v1386_v21, %v1386_v21 }
  0xec   :  { %v581_v26 = vpop.f32.mrf.mxu0  ;;  %v1766_v41 = vpop.f32.mrf.mxu1 }
  0xed   :  { %v1189_v28 = vadd.f32 %v1188_v24, %v1126_v22  ;;  %995 = vst [vmem:[%s2029_s2 + $0x60] sm:$0xff] %v581_v26  ;;  %v1057_v29 = vadd.f32 %v1383_v11, %v1056_v23  ;;  %v1128_v33 = vmul.f32 %v581_v26, %v581_v26  ;;  %1027 = vst [vmem:[%s2029_s2 + $0x160] sm:$0xff] %v1766_v41 }
  0xee   :  { %v1387_v31 = vpop.f32.mrf.mxu0  ;;  %v1775_v47 = vpop.f32.mrf.mxu1 }
  0xef   :  { %v1058_v32 = vadd.f32 %v1057_v29, %v581_v26  ;;  %v1190_v34 = vadd.f32 %v1189_v28, %v1127_v27  ;;  %998 = vst [vmem:[%s2029_s2 + $0x78] sm:$0xff] %v1387_v31  ;;  %1030 = vst [vmem:[%s2029_s2 + $0x178] sm:$0xff] %v1775_v47  ;;  %v1131_v50 = vmul.f32 %v1387_v31, %v1387_v31 }
  0xf0   :  { %v584_v36 = vpop.f32.mrf.mxu0  ;;  %v1784_v53 = vpop.f32.mrf.mxu1 }
  0xf1   :  { %v1191_v37 = vadd.f32 %v1190_v34, %v1128_v33  ;;  %996 = vst [vmem:[%s2029_s2 + $0x68] sm:$0xff] %v584_v36  ;;  %v1059_v38 = vadd.f32 %v1058_v32, %v584_v36  ;;  %v1129_v40 = vmul.f32 %v584_v36, %v584_v36  ;;  %1028 = vst [vmem:[%s2029_s2 + $0x168] sm:$0xff] %v1784_v53 }
  0xf2   :  { %v1390_v42 = vpop.f32.mrf.mxu0  ;;  %v1793_v60 = vpop.f32.mrf.mxu1 }
  0xf3   :  { %v1060_v45 = vadd.f32 %v1386_v21, %v1059_v38  ;;  %v1192_v46 = vadd.f32 %v1191_v37, %v1129_v40  ;;  %1001 = vst [vmem:[%s2029_s2 + $0x90] sm:$0xff] %v1390_v42  ;;  %1033 = vst [vmem:[%s2029_s2 + $0x190] sm:$0xff] %v1793_v60  ;;  %v1134_v4 = vmul.f32 %v1390_v42, %v1390_v42 }
  0xf4   :  { %v597_v48 = vpop.f32.mrf.mxu0  ;;  %v1802_v2 = vpop.f32.mrf.mxu1 }
  0xf5   :  { %v1193_v51 = vadd.f32 %v1192_v46, %v1130_v43  ;;  %999 = vst [vmem:[%s2029_s2 + $0x80] sm:$0xff] %v597_v48  ;;  %v1061_v52 = vadd.f32 %v1387_v31, %v1060_v45  ;;  %v1132_v57 = vmul.f32 %v597_v48, %v597_v48  ;;  %1031 = vst [vmem:[%s2029_s2 + $0x180] sm:$0xff] %v1802_v2 }
  0xf6   :  { %v1391_v55 = vpop.f32.mrf.mxu0  ;;  %v1811_v8 = vpop.f32.mrf.mxu1 }
  0xf7   :  { %v1062_v56 = vadd.f32 %v1061_v52, %v597_v48  ;;  %v1194_v58 = vadd.f32 %v1193_v51, %v1131_v50  ;;  %1002 = vst [vmem:[%s2029_s2 + $0x98] sm:$0xff] %v1391_v55  ;;  %1034 = vst [vmem:[%s2029_s2 + $0x198] sm:$0xff] %v1811_v8  ;;  %v1135_v11 = vmul.f32 %v1391_v55, %v1391_v55 }
  0xf8   :  { %v600_v61 = vpop.f32.mrf.mxu0  ;;  %v1820_v14 = vpop.f32.mrf.mxu1 }
  0xf9   :  { %v1195_v62 = vadd.f32 %v1194_v58, %v1132_v57  ;;  %1000 = vst [vmem:[%s2029_s2 + $0x88] sm:$0xff] %v600_v61  ;;  %v1063_v63 = vadd.f32 %v1062_v56, %v600_v61  ;;  %v1133_v1 = vmul.f32 %v600_v61, %v600_v61  ;;  %1032 = vst [vmem:[%s2029_s2 + $0x188] sm:$0xff] %v1820_v14 }
  0xfa   :  { %v1394_v3 = vpop.f32.mrf.mxu0  ;;  %v1829_v21 = vpop.f32.mrf.mxu1 }
  0xfb   :  { %v1064_v6 = vadd.f32 %v1390_v42, %v1063_v63  ;;  %v1196_v7 = vadd.f32 %v1195_v62, %v1133_v1  ;;  %1005 = vst [vmem:[%s2029_s2 + $0xb0] sm:$0xff] %v1394_v3  ;;  %1037 = vst [vmem:[%s2029_s2 + $0x1b0] sm:$0xff] %v1829_v21  ;;  %v1138_v29 = vmul.f32 %v1394_v3, %v1394_v3 }
  0xfc   :  { %v613_v9 = vpop.f32.mrf.mxu0  ;;  %v1838_v27 = vpop.f32.mrf.mxu1 }
  0xfd   :  { %v1197_v12 = vadd.f32 %v1196_v7, %v1134_v4  ;;  %1003 = vst [vmem:[%s2029_s2 + $0xa0] sm:$0xff] %v613_v9  ;;  %v1065_v13 = vadd.f32 %v1391_v55, %v1064_v6  ;;  %v1136_v18 = vmul.f32 %v613_v9, %v613_v9  ;;  %1035 = vst [vmem:[%s2029_s2 + $0x1a0] sm:$0xff] %v1838_v27 }
  0xfe   :  { %v1395_v16 = vpop.f32.mrf.mxu0  ;;  %v1847_v33 = vpop.f32.mrf.mxu1 }
  0xff   :  { %v1066_v17 = vadd.f32 %v1065_v13, %v613_v9  ;;  %v1198_v19 = vadd.f32 %v1197_v12, %v1135_v11  ;;  %1006 = vst [vmem:[%s2029_s2 + $0xb8] sm:$0xff] %v1395_v16  ;;  %1038 = vst [vmem:[%s2029_s2 + $0x1b8] sm:$0xff] %v1847_v33  ;;  %v1139_v36 = vmul.f32 %v1395_v16, %v1395_v16 }
 0x100   :  { %v616_v22 = vpop.f32.mrf.mxu0  ;;  %v1856_v40 = vpop.f32.mrf.mxu1 }
 0x101   :  { %v1199_v23 = vadd.f32 %v1198_v19, %v1136_v18  ;;  %1004 = vst [vmem:[%s2029_s2 + $0xa8] sm:$0xff] %v616_v22  ;;  %v1067_v24 = vadd.f32 %v1066_v17, %v616_v22  ;;  %v1137_v26 = vmul.f32 %v616_v22, %v616_v22  ;;  %1036 = vst [vmem:[%s2029_s2 + $0x1a8] sm:$0xff] %v1856_v40 }
 0x102   :  { %v1398_v28 = vpop.f32.mrf.mxu0  ;;  %v1865_v48 = vpop.f32.mrf.mxu1 }
 0x103   :  { %v1068_v31 = vadd.f32 %v1394_v3, %v1067_v24  ;;  %v1200_v32 = vadd.f32 %v1199_v23, %v1137_v26  ;;  %1009 = vst [vmem:[%s2029_s2 + $0xd0] sm:$0xff] %v1398_v28  ;;  %1041 = vst [vmem:[%s2029_s2 + $0x1d0] sm:$0xff] %v1865_v48  ;;  %v1142_v58 = vmul.f32 %v1398_v28, %v1398_v28 }
 0x104   :  { %v629_v34 = vpop.f32.mrf.mxu0  ;;  %v1874_v56 = vpop.f32.mrf.mxu1 }
 0x105   :  { %v1201_v37 = vadd.f32 %v1200_v32, %v1138_v29  ;;  %1007 = vst [vmem:[%s2029_s2 + $0xc0] sm:$0xff] %v629_v34  ;;  %v1069_v38 = vadd.f32 %v1395_v16, %v1068_v31  ;;  %v1140_v45 = vmul.f32 %v629_v34, %v629_v34  ;;  %1039 = vst [vmem:[%s2029_s2 + $0x1c0] sm:$0xff] %v1874_v56 }
 0x106   :  { %v1399_v42 = vpop.f32.mrf.mxu0  ;;  %v1883_v63 = vpop.f32.mrf.mxu1 }
 0x107   :  { %v1070_v43 = vadd.f32 %v1069_v38, %v629_v34  ;;  %v1202_v46 = vadd.f32 %v1201_v37, %v1139_v36  ;;  %1010 = vst [vmem:[%s2029_s2 + $0xd8] sm:$0xff] %v1399_v42  ;;  %1042 = vst [vmem:[%s2029_s2 + $0x1d8] sm:$0xff] %v1883_v63  ;;  %v1143_v3 = vmul.f32 %v1399_v42, %v1399_v42 }
 0x108   :  { %v632_v50 = vpop.f32.mrf.mxu0  ;;  %v1892_v7 = vpop.f32.mrf.mxu1  ;;  %v1148_v37 = vmul.f32 %v1658_v44, %v1658_v44 }
 0x109   :  { %v1203_v51 = vadd.f32 %v1202_v46, %v1140_v45  ;;  %1008 = vst [vmem:[%s2029_s2 + $0xc8] sm:$0xff] %v632_v50  ;;  %v1071_v52 = vadd.f32 %v1070_v43, %v632_v50  ;;  %v1141_v55 = vmul.f32 %v632_v50, %v632_v50  ;;  %1040 = vst [vmem:[%s2029_s2 + $0x1c8] sm:$0xff] %v1892_v7 }
 0x10a   :  { %v1402_v57 = vpop.f32.mrf.mxu0  ;;  %v1901_v16 = vpop.f32.mrf.mxu1  ;;  %v1149_v45 = vmul.f32 %v1676_v54, %v1676_v54  ;;  %v1150_v50 = vmul.f32 %v1649_v39, %v1649_v39 }
 0x10b   :  { %v1072_v61 = vadd.f32 %v1398_v28, %v1071_v52  ;;  %v1204_v62 = vadd.f32 %v1203_v51, %v1141_v55  ;;  %1013 = vst [vmem:[%s2029_s2 + $0xf0] sm:$0xff] %v1402_v57  ;;  %1045 = vst [vmem:[%s2029_s2 + $0x1f0] sm:$0xff] %v1901_v16  ;;  %v1146_v24 = vmul.f32 %v1402_v57, %v1402_v57 }
 0x10c   :  { %v645_v1 = vpop.f32.mrf.mxu0  ;;  %v1910_v23 = vpop.f32.mrf.mxu1  ;;  %v1151_v55 = vmul.f32 %v1667_v49, %v1667_v49 }
 0x10d   :  { %v1205_v4 = vadd.f32 %v1204_v62, %v1142_v58  ;;  %1011 = vst [vmem:[%s2029_s2 + $0xe0] sm:$0xff] %v645_v1  ;;  %v1073_v6 = vadd.f32 %v1399_v42, %v1072_v61  ;;  %v1144_v12 = vmul.f32 %v645_v1, %v645_v1  ;;  %1043 = vst [vmem:[%s2029_s2 + $0x1e0] sm:$0xff] %v1910_v23 }
 0x10e   :  { %v1403_v9 = vpop.f32.mrf.mxu0  ;;  %v1916_v29 = vpop.f32.mrf.mxu1  ;;  %v1152_v61 = vmul.f32 %v1694_v0, %v1694_v0 }
 0x10f   :  { %v1074_v11 = vadd.f32 %v1073_v6, %v645_v1  ;;  %v1206_v13 = vadd.f32 %v1205_v4, %v1143_v3  ;;  %1014 = vst [vmem:[%s2029_s2 + $0xf8] sm:$0xff] %v1403_v9  ;;  %1046 = vst [vmem:[%s2029_s2 + $0x1f8] sm:$0xff] %v1916_v29  ;;  %v1147_v31 = vmul.f32 %v1403_v9, %v1403_v9 }
 0x110   :  { %v648_v17 = vpop.f32.mrf.mxu0  ;;  %v1922_v36 = vpop.f32.mrf.mxu1  ;;  %v1153_v3 = vmul.f32 %v1712_v10, %v1712_v10 }
 0x111   :  { %v1207_v18 = vadd.f32 %v1206_v13, %v1144_v12  ;;  %1012 = vst [vmem:[%s2029_s2 + $0xe8] sm:$0xff] %v648_v17  ;;  %v1075_v19 = vadd.f32 %v1074_v11, %v648_v17  ;;  %v1145_v22 = vmul.f32 %v648_v17, %v648_v17  ;;  %1044 = vst [vmem:[%s2029_s2 + $0x1e8] sm:$0xff] %v1922_v36 }
 0x112   :  { %v1156_v12 = vmul.f32 %v1730_v20, %v1730_v20 }
 0x113   :  { %v1076_v26 = vadd.f32 %v1402_v57, %v1075_v19  ;;  %v1208_v28 = vadd.f32 %v1207_v18, %v1145_v22  ;;  %v1157_v18 = vmul.f32 %v1748_v30, %v1748_v30 }
 0x115   :  { %v1077_v32 = vadd.f32 %v1403_v9, %v1076_v26  ;;  %v1209_v34 = vadd.f32 %v1208_v28, %v1146_v24  ;;  %v1160_v28 = vmul.f32 %v1766_v41, %v1766_v41 }
 0x117   :  { %v1210_v38 = vadd.f32 %v1209_v34, %v1147_v31  ;;  %v1078_v42 = vadd.f32 %v1077_v32, %v1658_v44  ;;  %v1161_v34 = vmul.f32 %v1784_v53, %v1784_v53 }
 0x119   :  { %v1079_v43 = vadd.f32 %v1078_v42, %v1676_v54  ;;  %v1211_v46 = vadd.f32 %v1210_v38, %v1148_v37 }
 0x11b   :  { %v1080_v51 = vadd.f32 %v1649_v39, %v1079_v43  ;;  %v1212_v52 = vadd.f32 %v1211_v46, %v1149_v45  ;;  %v1154_v39 = vmul.f32 %v1685_v59, %v1685_v59  ;;  %v1164_v45 = vmul.f32 %v1802_v2, %v1802_v2 }
 0x11d   :  { %v1213_v57 = vadd.f32 %v1212_v52, %v1150_v50  ;;  %v1081_v58 = vadd.f32 %v1667_v49, %v1080_v51  ;;  %v1155_v49 = vmul.f32 %v1703_v5, %v1703_v5  ;;  %v1165_v51 = vmul.f32 %v1820_v14, %v1820_v14 }
 0x11f   :  { %v1082_v44 = vadd.f32 %v1081_v58, %v1694_v0  ;;  %v1214_v62 = vadd.f32 %v1213_v57, %v1151_v55 }
 0x121   :  { %v1215_v54 = vadd.f32 %v1214_v62, %v1152_v61  ;;  %v1083_v1 = vadd.f32 %v1082_v44, %v1712_v10  ;;  %v1168_v44 = vmul.f32 %v1838_v27, %v1838_v27 }
 0x123   :  { %v1084_v4 = vadd.f32 %v1685_v59, %v1083_v1  ;;  %v1216_v6 = vadd.f32 %v1215_v54, %v1153_v3  ;;  %v1158_v59 = vmul.f32 %v1721_v15, %v1721_v15  ;;  %v1169_v54 = vmul.f32 %v1856_v40, %v1856_v40 }
 0x125   :  { %v1217_v9 = vadd.f32 %v1216_v6, %v1154_v39  ;;  %v1085_v11 = vadd.f32 %v1703_v5, %v1084_v4  ;;  %v1159_v5 = vmul.f32 %v1739_v25, %v1739_v25  ;;  %v1172_v6 = vmul.f32 %v1874_v56, %v1874_v56 }
 0x127   :  { %v1086_v0 = vadd.f32 %v1085_v11, %v1730_v20  ;;  %v1218_v13 = vadd.f32 %v1217_v9, %v1155_v49  ;;  %v1173_v11 = vmul.f32 %v1892_v7, %v1892_v7 }
 0x129   :  { %v1219_v17 = vadd.f32 %v1218_v13, %v1156_v12  ;;  %v1087_v10 = vadd.f32 %v1086_v0, %v1748_v30 }
 0x12b   :  { %v1088_v19 = vadd.f32 %v1721_v15, %v1087_v10  ;;  %v1220_v22 = vadd.f32 %v1219_v17, %v1157_v18  ;;  %v1162_v15 = vmul.f32 %v1757_v35, %v1757_v35  ;;  %v1176_v10 = vmul.f32 %v1910_v23, %v1910_v23 }
 0x12d   :  { %v1221_v24 = vadd.f32 %v1220_v22, %v1158_v59  ;;  %v1089_v26 = vadd.f32 %v1739_v25, %v1088_v19  ;;  %v1163_v25 = vmul.f32 %v1775_v47, %v1775_v47  ;;  %v1177_v19 = vmul.f32 %v1922_v36, %v1922_v36 }
 0x12f   :  { %v1090_v20 = vadd.f32 %v1089_v26, %v1766_v41  ;;  %v1222_v31 = vadd.f32 %v1221_v24, %v1159_v5 }
 0x131   :  { %v1223_v32 = vadd.f32 %v1222_v31, %v1160_v28  ;;  %v1091_v30 = vadd.f32 %v1090_v20, %v1784_v53 }
 0x133   :  { %v1092_v37 = vadd.f32 %v1757_v35, %v1091_v30  ;;  %v1224_v38 = vadd.f32 %v1223_v32, %v1161_v34  ;;  %v1166_v35 = vmul.f32 %v1793_v60, %v1793_v60 }
 0x135   :  { %v1225_v42 = vadd.f32 %v1224_v38, %v1162_v15  ;;  %v1093_v43 = vadd.f32 %v1775_v47, %v1092_v37  ;;  %v1167_v47 = vmul.f32 %v1811_v8, %v1811_v8 }
 0x137   :  { %v1094_v41 = vadd.f32 %v1093_v43, %v1802_v2  ;;  %v1226_v46 = vadd.f32 %v1225_v42, %v1163_v25 }
 0x139   :  { %v1227_v50 = vadd.f32 %v1226_v46, %v1164_v45  ;;  %v1095_v53 = vadd.f32 %v1094_v41, %v1820_v14 }
 0x13b   :  { %v1096_v52 = vadd.f32 %v1793_v60, %v1095_v53  ;;  %v1228_v55 = vadd.f32 %v1227_v50, %v1165_v51  ;;  %v1170_v60 = vmul.f32 %v1829_v21, %v1829_v21 }
 0x13d   :  { %v1229_v57 = vadd.f32 %v1228_v55, %v1166_v35  ;;  %v1097_v58 = vadd.f32 %v1811_v8, %v1096_v52  ;;  %v1171_v8 = vmul.f32 %v1847_v33, %v1847_v33 }
 0x13f   :  { %v1098_v2 = vadd.f32 %v1097_v58, %v1838_v27  ;;  %v1230_v61 = vadd.f32 %v1229_v57, %v1167_v47 }
 0x141   :  { %v1231_v62 = vadd.f32 %v1230_v61, %v1168_v44  ;;  %v1099_v14 = vadd.f32 %v1098_v2, %v1856_v40 }
 0x143   :  { %v1100_v1 = vadd.f32 %v1829_v21, %v1099_v14  ;;  %v1232_v3 = vadd.f32 %v1231_v62, %v1169_v54  ;;  %v1174_v21 = vmul.f32 %v1865_v48, %v1865_v48 }
 0x145   :  { %v1233_v39 = vadd.f32 %v1232_v3, %v1170_v60  ;;  %v1101_v4 = vadd.f32 %v1847_v33, %v1100_v1  ;;  %v1175_v33 = vmul.f32 %v1883_v63, %v1883_v63 }
 0x147   :  { %v1102_v27 = vadd.f32 %v1101_v4, %v1874_v56  ;;  %v1234_v49 = vadd.f32 %v1233_v39, %v1171_v8 }
 0x149   :  { %v1235_v9 = vadd.f32 %v1234_v49, %v1172_v6  ;;  %v1103_v40 = vadd.f32 %v1102_v27, %v1892_v7 }
 0x14b   :  { %v1104_v0 = vadd.f32 %v1865_v48, %v1103_v40  ;;  %v1236_v12 = vadd.f32 %v1235_v9, %v1173_v11  ;;  %v1178_v48 = vmul.f32 %v1901_v16, %v1901_v16 }
 0x14d   :  { %v1237_v13 = vadd.f32 %v1236_v12, %v1174_v21  ;;  %v1105_v17 = vadd.f32 %v1883_v63, %v1104_v0  ;;  %v1179_v63 = vmul.f32 %v1916_v29, %v1916_v29 }
 0x14f   :  { %v1106_v56 = vadd.f32 %v1105_v17, %v1910_v23  ;;  %v1238_v18 = vadd.f32 %v1237_v13, %v1175_v33 }
 0x151   :  { %v1239_v59 = vadd.f32 %v1238_v18, %v1176_v10  ;;  %v1107_v7 = vadd.f32 %v1106_v56, %v1922_v36 }
 0x153   :  { %v1108_v22 = vadd.f32 %v1901_v16, %v1107_v7  ;;  %v1240_v5 = vadd.f32 %v1239_v59, %v1177_v19 }
 0x155   :  { %v1109_v24 = vadd.f32 %v1916_v29, %v1108_v22  ;;  %v1241_v26 = vadd.f32 %v1240_v5, %v1178_v48 }
 0x157   :  { %v1110_v23 = vrot.slane %v1109_v24, 4  ;;  %v1242_v20 = vadd.f32 %v1241_v26, %v1179_v63 }
 0x159   :  { %v1111_v28 = vadd.f32 %v1110_v23, %v1109_v24  ;;  %v1243_v31 = vrot.slane %v1242_v20, 4 }
 0x15b   :  { %v1112_v32 = vrot.slane %v1111_v28, 2  ;;  %v1244_v30 = vadd.f32 %v1243_v31, %v1242_v20 }
 0x15d   :  { %v1113_v34 = vadd.f32 %v1112_v32, %v1111_v28  ;;  %v1245_v36 = vrot.slane %v1244_v30, 2 }
 0x15f   :  { %v1114_v15 = vrot.slane %v1113_v34, 1  ;;  %v1246_v37 = vadd.f32 %v1245_v36, %v1244_v30 }
 0x161   :  { %v1247_v38 = vrot.slane %v1246_v37, 1  ;;  %v1115_v16 = vadd.f32 %v1114_v15, %v1113_v34 }
 0x163   :  { %v1248_v25 = vadd.f32 %v1247_v38, %v1246_v37 }
 0x165   :  { %v1250_v42 = vsel %vm1249_vm1, %v1115_v16, %v1248_v25 }
 0x166   :  { %1251 = vst [vmem:[%s2030_s3] sm:$0x3] %v1250_v42 }

// kernel: generator_forward.56
= control target key start
LH: loop header
LB: loop body
LE: loop exit
PB: predicated region body
PF: predicated region fallthrough
CT: control target
= control target key end

     0   :  { %s1808_s9 = smov 0   ;;  %s1810_s10 = smov 0   ;;  %s1983_s0 = inlined_call_operand.vmem [shape: bf16[2048,32], index: 0, kind: input, shape index: {}]   ;;  %s1984_s1 = inlined_call_operand.vmem [shape: bf16[32,128], index: 1, kind: input, shape index: {}]   ;;  %s1985_s2 = inlined_call_operand.vmem [shape: f32[2048,128], index: 2, kind: output, shape index: {}]  }
   0x1   :  { %s1812_s11 = smov 0  }
   0x2 LB: > { %s31_s12 = sadd.s32 1, %s1787_s10  ;;  %p1404_p0 = scmp.ge.s32.totalorder %s1791_s11, 1  ;;  %s1791_s11 = sphi %s1812_s11, %s12_s11   ;;  %s1787_s10 = sphi %s1810_s10, %s1987_s10   ;;  %s1783_s9 = sphi %s1808_s9, %s1986_s9  }
   0x3   : > { %p33_p1 = scmp.ge.s32.totalorder %s31_s12, 4  ;;  %p155_p2 = scmp.lt.s32.totalorder %s1791_s11, 5 }
   0x5   : > { %s1989_s12 = smov (%p33_p1, %s31_s12), 0  ;;  %p156_p3 = pnand %p1404_p0, %p155_p2 }
   0x6   : > { %s1405_s15 = sshll.u32 (!%p156_p3), %s1783_s9, 6 }
   0x7   : > { %159 = sbr.rel (%p156_p3) target bundleno = 292 (0x124), region = 28  ;;  %p192_p4 = scmp.lt.s32.totalorder (!%p156_p3), %s1405_s15, 255 }
   0xc   : > { %v1607_v0 = vld [vmem:[%s1984_s1 + $0x8] sm:$0xff]   ;;  %v1608_v1 = vld [vmem:[%s1984_s1] sm:$0xff]   ;;  %s1991_s15 = smov (!%p192_p4, %s1405_s15), 255  ;;  %vm591_vm0 = vcmask 261120  }
   0xd   : > { %1511 = vmatprep.subr.bf16.mxu0 %v1607_v0  ;;  %1579 = vmatprep.subr.bf16.mxu1 %v1607_v0  ;;  %s1406_s18 = sshll.u32 %s1991_s15, 2  ;;  %s1408_s22 = sshll.u32 %s1991_s15, 3 }
   0xe   : > { %1512 = vmatpush3.bf16.msra.mxu0 %v1607_v0  ;;  %1581 = vmatpush3.bf16.msra.mxu1 %v1607_v0  ;;  %s1838_s21 = scalar_lea.vmem %s1983_s0, %s1406_s18  ;;  %s1908_s25 = scalar_lea.vmem %s1985_s2, %s1408_s22 }
   0xf   : > { %1513 = vmatprep.subr.bf16.mxu0 %v1608_v1  ;;  %1580 = vmatprep.subr.bf16.mxu1 %v1608_v1  ;;  %v1609_v2 = vld [vmem:[%s1838_s21] sm:$0xff]   ;;  %v1611_v4 = vld [vmem:[%s1838_s21 + $0x8] sm:$0xff]   ;;  %v1613_v6 = vld [vmem:[%s1838_s21 + $0x10] sm:$0xff]  }
  0x10   : > { %v1610_v3 = vld [vmem:[%s1838_s21 + $0x80] sm:$0xff]   ;;  %1515 = vmatprep.mubr.msk.bf16.mxu0 %vm591_vm0, %v1609_v2  ;;  %v1612_v5 = vld [vmem:[%s1838_s21 + $0x88] sm:$0xff]   ;;  %v1614_v7 = vld [vmem:[%s1838_s21 + $0x90] sm:$0xff]  }
  0x11   : > { %1547 = vmatprep.mubr.msk.bf16.mxu1 %vm591_vm0, %v1610_v3  ;;  %v1615_v8 = vld [vmem:[%s1838_s21 + $0x18] sm:$0xff]   ;;  %v1617_v10 = vld [vmem:[%s1838_s21 + $0x20] sm:$0xff]   ;;  %v1619_v12 = vld [vmem:[%s1838_s21 + $0x28] sm:$0xff]  }
  0x12   : > { %1514 = vmatpush3.bf16.msra.mxu0 %v1608_v1  ;;  %1582 = vmatpush3.bf16.msra.mxu1 %v1608_v1  ;;  %v1616_v9 = vld [vmem:[%s1838_s21 + $0x98] sm:$0xff]   ;;  %v1618_v11 = vld [vmem:[%s1838_s21 + $0xa0] sm:$0xff]   ;;  %v1620_v13 = vld [vmem:[%s1838_s21 + $0xa8] sm:$0xff]  }
  0x13   : > { %v1621_v14 = vld [vmem:[%s1838_s21 + $0x30] sm:$0xff]   ;;  %v1623_v16 = vld [vmem:[%s1838_s21 + $0x38] sm:$0xff]   ;;  %v1625_v18 = vld [vmem:[%s1838_s21 + $0x40] sm:$0xff]  }
  0x14   : > { %v1622_v15 = vld [vmem:[%s1838_s21 + $0xb0] sm:$0xff]   ;;  %v1624_v17 = vld [vmem:[%s1838_s21 + $0xb8] sm:$0xff]   ;;  %v1626_v19 = vld [vmem:[%s1838_s21 + $0xc0] sm:$0xff]  }
  0x15   : > { %1516 = vmatmul.mubr.msk.bf16.vlgmr.msra.gmra.mxu0 %vm591_vm0, %v1611_v4  ;;  %1548 = vmatmul.mubr.msk.bf16.vlgmr.msra.gmra.mxu1 %vm591_vm0, %v1612_v5  ;;  %v1627_v20 = vld [vmem:[%s1838_s21 + $0x48] sm:$0xff]   ;;  %v1629_v22 = vld [vmem:[%s1838_s21 + $0x50] sm:$0xff]   ;;  %v1631_v24 = vld [vmem:[%s1838_s21 + $0x58] sm:$0xff]  }
  0x16   : > { %1519 = vmatprep.mubr.msk.bf16.mxu0 %vm591_vm0, %v1613_v6  ;;  %1551 = vmatprep.mubr.msk.bf16.mxu1 %vm591_vm0, %v1614_v7  ;;  %v1628_v21 = vld [vmem:[%s1838_s21 + $0xc8] sm:$0xff]   ;;  %v1630_v23 = vld [vmem:[%s1838_s21 + $0xd0] sm:$0xff]   ;;  %v1632_v25 = vld [vmem:[%s1838_s21 + $0xd8] sm:$0xff]  }
  0x17   : > { %v1633_v26 = vld [vmem:[%s1838_s21 + $0x60] sm:$0xff]   ;;  %v1635_v28 = vld [vmem:[%s1838_s21 + $0x68] sm:$0xff]   ;;  %v1637_v30 = vld [vmem:[%s1838_s21 + $0x70] sm:$0xff]  }
  0x18   : > { %v1634_v27 = vld [vmem:[%s1838_s21 + $0xe0] sm:$0xff]   ;;  %v1636_v29 = vld [vmem:[%s1838_s21 + $0xe8] sm:$0xff]   ;;  %v1638_v31 = vld [vmem:[%s1838_s21 + $0xf0] sm:$0xff]  }
  0x19   : > { %v1639_v32 = vld [vmem:[%s1838_s21 + $0x78] sm:$0xff]  }
  0x1a   : > { %v1640_v33 = vld [vmem:[%s1838_s21 + $0xf8] sm:$0xff]  }
  0x1d   : > { %1520 = vmatmul.mubr.msk.bf16.gmra.mxu0 %vm591_vm0, %v1615_v8  ;;  %1552 = vmatmul.mubr.msk.bf16.gmra.mxu1 %vm591_vm0, %v1616_v9 }
  0x1e   : > { %1523 = vmatprep.mubr.msk.bf16.mxu0 %vm591_vm0, %v1617_v10  ;;  %1555 = vmatprep.mubr.msk.bf16.mxu1 %vm591_vm0, %v1618_v11 }
  0x25   : > { %1524 = vmatmul.mubr.msk.bf16.gmra.mxu0 %vm591_vm0, %v1619_v12  ;;  %1556 = vmatmul.mubr.msk.bf16.gmra.mxu1 %vm591_vm0, %v1620_v13 }
  0x26   : > { %1527 = vmatprep.mubr.msk.bf16.mxu0 %vm591_vm0, %v1621_v14  ;;  %1559 = vmatprep.mubr.msk.bf16.mxu1 %vm591_vm0, %v1622_v15 }
  0x2d   : > { %1528 = vmatmul.mubr.msk.bf16.gmra.mxu0 %vm591_vm0, %v1623_v16  ;;  %1560 = vmatmul.mubr.msk.bf16.gmra.mxu1 %vm591_vm0, %v1624_v17 }
  0x2e   : > { %1531 = vmatprep.mubr.msk.bf16.mxu0 %vm591_vm0, %v1625_v18  ;;  %1563 = vmatprep.mubr.msk.bf16.mxu1 %vm591_vm0, %v1626_v19 }
  0x35   : > { %1532 = vmatmul.mubr.msk.bf16.gmra.mxu0 %vm591_vm0, %v1627_v20  ;;  %1564 = vmatmul.mubr.msk.bf16.gmra.mxu1 %vm591_vm0, %v1628_v21 }
  0x36   : > { %1535 = vmatprep.mubr.msk.bf16.mxu0 %vm591_vm0, %v1629_v22  ;;  %1567 = vmatprep.mubr.msk.bf16.mxu1 %vm591_vm0, %v1630_v23 }
  0x3d   : > { %1536 = vmatmul.mubr.msk.bf16.gmra.mxu0 %vm591_vm0, %v1631_v24  ;;  %1568 = vmatmul.mubr.msk.bf16.gmra.mxu1 %vm591_vm0, %v1632_v25 }
  0x3e   : > { %1539 = vmatprep.mubr.msk.bf16.mxu0 %vm591_vm0, %v1633_v26  ;;  %1571 = vmatprep.mubr.msk.bf16.mxu1 %vm591_vm0, %v1634_v27 }
  0x45   : > { %1540 = vmatmul.mubr.msk.bf16.gmra.mxu0 %vm591_vm0, %v1635_v28  ;;  %1572 = vmatmul.mubr.msk.bf16.gmra.mxu1 %vm591_vm0, %v1636_v29 }
  0x46   : > { %1543 = vmatprep.mubr.msk.bf16.mxu0 %vm591_vm0, %v1637_v30  ;;  %1575 = vmatprep.mubr.msk.bf16.mxu1 %vm591_vm0, %v1638_v31 }
  0x4d   : > { %1544 = vmatmul.mubr.msk.bf16.gmra.mxu0 %vm591_vm0, %v1639_v32  ;;  %1576 = vmatmul.mubr.msk.bf16.gmra.mxu1 %vm591_vm0, %v1640_v33 }
  0xd5   : > { %v1517_v34 = vpop.f32.mrf.mxu0  ;;  %v1549_v35 = vpop.f32.mrf.mxu1 }
  0xd6   : > { %1641 = vtanh.f32 %v1517_v34 }
  0xd7   : > { %1643 = vtanh.f32 %v1549_v35  ;;  %v722_v36 = vpop.f32.mrf.mxu0  ;;  %v850_v37 = vpop.f32.mrf.mxu1 }
  0xd8   : > { %1645 = vtanh.f32 %v722_v36 }
  0xd9   : > { %1647 = vtanh.f32 %v850_v37  ;;  %v1518_v38 = vpop.f32.mrf.mxu0  ;;  %v1550_v39 = vpop.f32.mrf.mxu1 }
  0xda   : > { %1649 = vtanh.f32 %v1518_v38 }
  0xdb   : > { %1651 = vtanh.f32 %v1550_v39  ;;  %v725_v40 = vpop.f32.mrf.mxu0  ;;  %v853_v41 = vpop.f32.mrf.mxu1 }
  0xdc   : > { %1653 = vtanh.f32 %v725_v40 }
  0xdd   : > { %1655 = vtanh.f32 %v853_v41  ;;  %v1521_v42 = vpop.f32.mrf.mxu0  ;;  %v1553_v43 = vpop.f32.mrf.mxu1 }
  0xde   : > { %1657 = vtanh.f32 %v1521_v42 }
  0xdf   : > { %1659 = vtanh.f32 %v1553_v43  ;;  %v738_v44 = vpop.f32.mrf.mxu0  ;;  %v866_v45 = vpop.f32.mrf.mxu1 }
  0xe0   : > { %1661 = vtanh.f32 %v738_v44 }
  0xe1   : > { %1663 = vtanh.f32 %v866_v45  ;;  %v1522_v46 = vpop.f32.mrf.mxu0  ;;  %v1554_v47 = vpop.f32.mrf.mxu1 }
  0xe2   : > { %1665 = vtanh.f32 %v1522_v46 }
  0xe3   : > { %v1642_v48 = vpop.eup %1641  ;;  %1667 = vtanh.f32 %v1554_v47  ;;  %v741_v49 = vpop.f32.mrf.mxu0 }
  0xe4   : > { %v1644_v50 = vpop.eup %1643  ;;  %1238 = vst [vmem:[%s1908_s25 + $0x10] sm:$0xff] %v1642_v48  ;;  %1669 = vtanh.f32 %v741_v49  ;;  %v869_v51 = vpop.f32.mrf.mxu1 }
  0xe5   : > { %v1646_v52 = vpop.eup %1645  ;;  %1270 = vst [vmem:[%s1908_s25 + $0x110] sm:$0xff] %v1644_v50  ;;  %1671 = vtanh.f32 %v869_v51  ;;  %v1525_v53 = vpop.f32.mrf.mxu0 }
  0xe6   : > { %v1648_v54 = vpop.eup %1647  ;;  %1236 = vst [vmem:[%s1908_s25] sm:$0xff] %v1646_v52  ;;  %1673 = vtanh.f32 %v1525_v53  ;;  %v1557_v55 = vpop.f32.mrf.mxu1 }
  0xe7   : > { %v1650_v56 = vpop.eup %1649  ;;  %1268 = vst [vmem:[%s1908_s25 + $0x100] sm:$0xff] %v1648_v54  ;;  %1675 = vtanh.f32 %v1557_v55  ;;  %v754_v57 = vpop.f32.mrf.mxu0 }
  0xe8   : > { %v1652_v58 = vpop.eup %1651  ;;  %1239 = vst [vmem:[%s1908_s25 + $0x18] sm:$0xff] %v1650_v56  ;;  %1677 = vtanh.f32 %v754_v57  ;;  %v882_v59 = vpop.f32.mrf.mxu1 }
  0xe9   : > { %v1654_v60 = vpop.eup %1653  ;;  %1271 = vst [vmem:[%s1908_s25 + $0x118] sm:$0xff] %v1652_v58  ;;  %1679 = vtanh.f32 %v882_v59  ;;  %v1526_v61 = vpop.f32.mrf.mxu0 }
  0xea   : > { %v1656_v62 = vpop.eup %1655  ;;  %1237 = vst [vmem:[%s1908_s25 + $0x8] sm:$0xff] %v1654_v60  ;;  %1681 = vtanh.f32 %v1526_v61  ;;  %v1558_v63 = vpop.f32.mrf.mxu1 }
  0xeb   : > { %v1658_v0 = vpop.eup %1657  ;;  %1269 = vst [vmem:[%s1908_s25 + $0x108] sm:$0xff] %v1656_v62  ;;  %1683 = vtanh.f32 %v1558_v63  ;;  %v757_v1 = vpop.f32.mrf.mxu0 }
  0xec   : > { %v1660_v2 = vpop.eup %1659  ;;  %1242 = vst [vmem:[%s1908_s25 + $0x30] sm:$0xff] %v1658_v0  ;;  %1685 = vtanh.f32 %v757_v1  ;;  %v885_v3 = vpop.f32.mrf.mxu1 }
  0xed   : > { %v1662_v4 = vpop.eup %1661  ;;  %1274 = vst [vmem:[%s1908_s25 + $0x130] sm:$0xff] %v1660_v2  ;;  %1687 = vtanh.f32 %v885_v3  ;;  %v1529_v5 = vpop.f32.mrf.mxu0 }
  0xee   : > { %v1664_v6 = vpop.eup %1663  ;;  %1240 = vst [vmem:[%s1908_s25 + $0x20] sm:$0xff] %v1662_v4  ;;  %1689 = vtanh.f32 %v1529_v5  ;;  %v1561_v7 = vpop.f32.mrf.mxu1 }
  0xef   : > { %v1666_v8 = vpop.eup %1665  ;;  %1272 = vst [vmem:[%s1908_s25 + $0x120] sm:$0xff] %v1664_v6  ;;  %1691 = vtanh.f32 %v1561_v7  ;;  %v770_v9 = vpop.f32.mrf.mxu0 }
  0xf0   : > { %v1668_v10 = vpop.eup %1667  ;;  %1243 = vst [vmem:[%s1908_s25 + $0x38] sm:$0xff] %v1666_v8  ;;  %1693 = vtanh.f32 %v770_v9  ;;  %v898_v11 = vpop.f32.mrf.mxu1 }
  0xf1   : > { %v1670_v12 = vpop.eup %1669  ;;  %1275 = vst [vmem:[%s1908_s25 + $0x138] sm:$0xff] %v1668_v10  ;;  %1695 = vtanh.f32 %v898_v11  ;;  %v1530_v13 = vpop.f32.mrf.mxu0 }
  0xf2   : > { %v1672_v14 = vpop.eup %1671  ;;  %1241 = vst [vmem:[%s1908_s25 + $0x28] sm:$0xff] %v1670_v12  ;;  %1697 = vtanh.f32 %v1530_v13  ;;  %v1562_v15 = vpop.f32.mrf.mxu1 }
  0xf3   : > { %v1674_v16 = vpop.eup %1673  ;;  %1273 = vst [vmem:[%s1908_s25 + $0x128] sm:$0xff] %v1672_v14  ;;  %1699 = vtanh.f32 %v1562_v15  ;;  %v773_v17 = vpop.f32.mrf.mxu0 }
  0xf4   : > { %v1676_v18 = vpop.eup %1675  ;;  %1246 = vst [vmem:[%s1908_s25 + $0x50] sm:$0xff] %v1674_v16  ;;  %1701 = vtanh.f32 %v773_v17  ;;  %v901_v19 = vpop.f32.mrf.mxu1 }
  0xf5   : > { %v1678_v20 = vpop.eup %1677  ;;  %1278 = vst [vmem:[%s1908_s25 + $0x150] sm:$0xff] %v1676_v18  ;;  %1703 = vtanh.f32 %v901_v19  ;;  %v1533_v21 = vpop.f32.mrf.mxu0 }
  0xf6   : > { %v1680_v22 = vpop.eup %1679  ;;  %1244 = vst [vmem:[%s1908_s25 + $0x40] sm:$0xff] %v1678_v20  ;;  %1705 = vtanh.f32 %v1533_v21  ;;  %v1565_v23 = vpop.f32.mrf.mxu1 }
  0xf7   : > { %v1682_v24 = vpop.eup %1681  ;;  %1276 = vst [vmem:[%s1908_s25 + $0x140] sm:$0xff] %v1680_v22  ;;  %1707 = vtanh.f32 %v1565_v23  ;;  %v786_v25 = vpop.f32.mrf.mxu0 }
  0xf8   : > { %v1684_v26 = vpop.eup %1683  ;;  %1247 = vst [vmem:[%s1908_s25 + $0x58] sm:$0xff] %v1682_v24  ;;  %1709 = vtanh.f32 %v786_v25  ;;  %v914_v27 = vpop.f32.mrf.mxu1 }
  0xf9   : > { %v1686_v28 = vpop.eup %1685  ;;  %1279 = vst [vmem:[%s1908_s25 + $0x158] sm:$0xff] %v1684_v26  ;;  %1711 = vtanh.f32 %v914_v27  ;;  %v1534_v29 = vpop.f32.mrf.mxu0 }
  0xfa   : > { %v1688_v30 = vpop.eup %1687  ;;  %1245 = vst [vmem:[%s1908_s25 + $0x48] sm:$0xff] %v1686_v28  ;;  %1713 = vtanh.f32 %v1534_v29  ;;  %v1566_v31 = vpop.f32.mrf.mxu1 }
  0xfb   : > { %v1690_v32 = vpop.eup %1689  ;;  %1277 = vst [vmem:[%s1908_s25 + $0x148] sm:$0xff] %v1688_v30  ;;  %1715 = vtanh.f32 %v1566_v31  ;;  %v789_v33 = vpop.f32.mrf.mxu0 }
  0xfc   : > { %v1692_v34 = vpop.eup %1691  ;;  %1250 = vst [vmem:[%s1908_s25 + $0x70] sm:$0xff] %v1690_v32  ;;  %1717 = vtanh.f32 %v789_v33  ;;  %v917_v35 = vpop.f32.mrf.mxu1 }
  0xfd   : > { %v1694_v36 = vpop.eup %1693  ;;  %1282 = vst [vmem:[%s1908_s25 + $0x170] sm:$0xff] %v1692_v34  ;;  %1719 = vtanh.f32 %v917_v35  ;;  %v1537_v37 = vpop.f32.mrf.mxu0 }
  0xfe   : > { %v1696_v38 = vpop.eup %1695  ;;  %1248 = vst [vmem:[%s1908_s25 + $0x60] sm:$0xff] %v1694_v36  ;;  %1721 = vtanh.f32 %v1537_v37  ;;  %v1569_v39 = vpop.f32.mrf.mxu1 }
  0xff   : > { %v1698_v40 = vpop.eup %1697  ;;  %1280 = vst [vmem:[%s1908_s25 + $0x160] sm:$0xff] %v1696_v38  ;;  %1723 = vtanh.f32 %v1569_v39  ;;  %v802_v41 = vpop.f32.mrf.mxu0 }
 0x100   : > { %v1700_v42 = vpop.eup %1699  ;;  %1251 = vst [vmem:[%s1908_s25 + $0x78] sm:$0xff] %v1698_v40  ;;  %1725 = vtanh.f32 %v802_v41  ;;  %v930_v43 = vpop.f32.mrf.mxu1 }
 0x101   : > { %v1702_v44 = vpop.eup %1701  ;;  %1283 = vst [vmem:[%s1908_s25 + $0x178] sm:$0xff] %v1700_v42  ;;  %1727 = vtanh.f32 %v930_v43  ;;  %v1538_v45 = vpop.f32.mrf.mxu0 }
 0x102   : > { %v1704_v46 = vpop.eup %1703  ;;  %1249 = vst [vmem:[%s1908_s25 + $0x68] sm:$0xff] %v1702_v44  ;;  %1729 = vtanh.f32 %v1538_v45  ;;  %v1570_v47 = vpop.f32.mrf.mxu1 }
 0x103   : > { %v1706_v48 = vpop.eup %1705  ;;  %1281 = vst [vmem:[%s1908_s25 + $0x168] sm:$0xff] %v1704_v46  ;;  %1731 = vtanh.f32 %v1570_v47  ;;  %v805_v49 = vpop.f32.mrf.mxu0 }
 0x104   : > { %v1708_v50 = vpop.eup %1707  ;;  %1254 = vst [vmem:[%s1908_s25 + $0x90] sm:$0xff] %v1706_v48  ;;  %1733 = vtanh.f32 %v805_v49  ;;  %v933_v51 = vpop.f32.mrf.mxu1 }
 0x105   : > { %v1710_v52 = vpop.eup %1709  ;;  %1286 = vst [vmem:[%s1908_s25 + $0x190] sm:$0xff] %v1708_v50  ;;  %1735 = vtanh.f32 %v933_v51  ;;  %v1541_v53 = vpop.f32.mrf.mxu0 }
 0x106   : > { %v1712_v54 = vpop.eup %1711  ;;  %1252 = vst [vmem:[%s1908_s25 + $0x80] sm:$0xff] %v1710_v52  ;;  %1737 = vtanh.f32 %v1541_v53  ;;  %v1573_v55 = vpop.f32.mrf.mxu1 }
 0x107   : > { %v1714_v56 = vpop.eup %1713  ;;  %1284 = vst [vmem:[%s1908_s25 + $0x180] sm:$0xff] %v1712_v54  ;;  %1739 = vtanh.f32 %v1573_v55  ;;  %v818_v57 = vpop.f32.mrf.mxu0 }
 0x108   : > { %v1716_v58 = vpop.eup %1715  ;;  %1255 = vst [vmem:[%s1908_s25 + $0x98] sm:$0xff] %v1714_v56  ;;  %1741 = vtanh.f32 %v818_v57  ;;  %v946_v59 = vpop.f32.mrf.mxu1 }
 0x109   : > { %v1718_v60 = vpop.eup %1717  ;;  %1287 = vst [vmem:[%s1908_s25 + $0x198] sm:$0xff] %v1716_v58  ;;  %1743 = vtanh.f32 %v946_v59  ;;  %v1542_v61 = vpop.f32.mrf.mxu0 }
 0x10a   : > { %v1720_v62 = vpop.eup %1719  ;;  %1253 = vst [vmem:[%s1908_s25 + $0x88] sm:$0xff] %v1718_v60  ;;  %1745 = vtanh.f32 %v1542_v61  ;;  %v1574_v63 = vpop.f32.mrf.mxu1 }
 0x10b   : > { %v1722_v0 = vpop.eup %1721  ;;  %1285 = vst [vmem:[%s1908_s25 + $0x188] sm:$0xff] %v1720_v62  ;;  %1747 = vtanh.f32 %v1574_v63  ;;  %v821_v1 = vpop.f32.mrf.mxu0 }
 0x10c   : > { %v1724_v2 = vpop.eup %1723  ;;  %1258 = vst [vmem:[%s1908_s25 + $0xb0] sm:$0xff] %v1722_v0  ;;  %1749 = vtanh.f32 %v821_v1  ;;  %v949_v3 = vpop.f32.mrf.mxu1 }
 0x10d   : > { %v1726_v4 = vpop.eup %1725  ;;  %1290 = vst [vmem:[%s1908_s25 + $0x1b0] sm:$0xff] %v1724_v2  ;;  %1751 = vtanh.f32 %v949_v3  ;;  %v1545_v5 = vpop.f32.mrf.mxu0 }
 0x10e   : > { %v1728_v6 = vpop.eup %1727  ;;  %1256 = vst [vmem:[%s1908_s25 + $0xa0] sm:$0xff] %v1726_v4  ;;  %1753 = vtanh.f32 %v1545_v5  ;;  %v1577_v7 = vpop.f32.mrf.mxu1 }
 0x10f   : > { %v1730_v8 = vpop.eup %1729  ;;  %1288 = vst [vmem:[%s1908_s25 + $0x1a0] sm:$0xff] %v1728_v6  ;;  %1755 = vtanh.f32 %v1577_v7  ;;  %v834_v9 = vpop.f32.mrf.mxu0 }
 0x110   : > { %v1732_v10 = vpop.eup %1731  ;;  %1259 = vst [vmem:[%s1908_s25 + $0xb8] sm:$0xff] %v1730_v8  ;;  %1757 = vtanh.f32 %v834_v9  ;;  %v962_v11 = vpop.f32.mrf.mxu1 }
 0x111   : > { %v1734_v12 = vpop.eup %1733  ;;  %1291 = vst [vmem:[%s1908_s25 + $0x1b8] sm:$0xff] %v1732_v10  ;;  %1759 = vtanh.f32 %v962_v11  ;;  %v1546_v13 = vpop.f32.mrf.mxu0 }
 0x112   : > { %v1736_v14 = vpop.eup %1735  ;;  %1257 = vst [vmem:[%s1908_s25 + $0xa8] sm:$0xff] %v1734_v12  ;;  %1761 = vtanh.f32 %v1546_v13  ;;  %v1578_v15 = vpop.f32.mrf.mxu1 }
 0x113   : > { %v1738_v16 = vpop.eup %1737  ;;  %1289 = vst [vmem:[%s1908_s25 + $0x1a8] sm:$0xff] %v1736_v14  ;;  %1763 = vtanh.f32 %v1578_v15  ;;  %v837_v17 = vpop.f32.mrf.mxu0 }
 0x114   : > { %v1740_v18 = vpop.eup %1739  ;;  %1262 = vst [vmem:[%s1908_s25 + $0xd0] sm:$0xff] %v1738_v16  ;;  %1765 = vtanh.f32 %v837_v17  ;;  %v965_v19 = vpop.f32.mrf.mxu1 }
 0x115   : > { %v1742_v20 = vpop.eup %1741  ;;  %1294 = vst [vmem:[%s1908_s25 + $0x1d0] sm:$0xff] %v1740_v18  ;;  %1767 = vtanh.f32 %v965_v19 }
 0x116   : > { %v1744_v21 = vpop.eup %1743  ;;  %1260 = vst [vmem:[%s1908_s25 + $0xc0] sm:$0xff] %v1742_v20 }
 0x117   : > { %v1746_v22 = vpop.eup %1745  ;;  %1292 = vst [vmem:[%s1908_s25 + $0x1c0] sm:$0xff] %v1744_v21 }
 0x118   : > { %v1748_v23 = vpop.eup %1747  ;;  %1263 = vst [vmem:[%s1908_s25 + $0xd8] sm:$0xff] %v1746_v22 }
 0x119   : > { %v1750_v24 = vpop.eup %1749  ;;  %1295 = vst [vmem:[%s1908_s25 + $0x1d8] sm:$0xff] %v1748_v23 }
 0x11a   : > { %v1752_v25 = vpop.eup %1751  ;;  %1261 = vst [vmem:[%s1908_s25 + $0xc8] sm:$0xff] %v1750_v24 }
 0x11b   : > { %v1754_v26 = vpop.eup %1753  ;;  %1293 = vst [vmem:[%s1908_s25 + $0x1c8] sm:$0xff] %v1752_v25 }
 0x11c   : > { %v1756_v27 = vpop.eup %1755  ;;  %1266 = vst [vmem:[%s1908_s25 + $0xf0] sm:$0xff] %v1754_v26 }
 0x11d   : > { %v1758_v28 = vpop.eup %1757  ;;  %1298 = vst [vmem:[%s1908_s25 + $0x1f0] sm:$0xff] %v1756_v27 }
 0x11e   : > { %v1760_v29 = vpop.eup %1759  ;;  %1264 = vst [vmem:[%s1908_s25 + $0xe0] sm:$0xff] %v1758_v28 }
 0x11f   : > { %v1762_v30 = vpop.eup %1761  ;;  %1296 = vst [vmem:[%s1908_s25 + $0x1e0] sm:$0xff] %v1760_v29 }
 0x120   : > { %v1764_v31 = vpop.eup %1763  ;;  %1267 = vst [vmem:[%s1908_s25 + $0xf8] sm:$0xff] %v1762_v30 }
 0x121   : > { %v1766_v32 = vpop.eup %1765  ;;  %1299 = vst [vmem:[%s1908_s25 + $0x1f8] sm:$0xff] %v1764_v31 }
 0x122   : > { %v1768_v33 = vpop.eup %1767  ;;  %1265 = vst [vmem:[%s1908_s25 + $0xe8] sm:$0xff] %v1766_v32 }
 0x123   : > { %1297 = vst [vmem:[%s1908_s25 + $0x1e8] sm:$0xff] %v1768_v33 }
 0x124 PF: > { %s12_s11 = sadd.s32 1, %s1791_s11   ;;  %s1986_s9 = smov %s1787_s10 }
 0x125   : > { %p9_p5 = scmp.ge.s32.totalorder %s12_s11, 6   ;;  %s1987_s10 = smov %s1989_s12 }
 0x127   :  { %11 = sbr.rel (!%p9_p5) target bundleno = 2 (0x2), region = 69 }

</bundles_post_ra>
